<compile_context>
chip_gen: v6e
topology: v6e:2x2x1
jax: 0.10.0
libtpu: 0.0.40
codegen_flags: <defaults>
</compile_context>

<pallas_src>
import math

import numpy as np

import jax
import jax.numpy as jnp
from jax.experimental import pallas as pl
from jax.experimental.pallas import tpu as pltpu  # noqa: F401


# -----------------------------------------------------------------------------
# Row-packing helpers (8-aligned segments, common lane width)
# -----------------------------------------------------------------------------
def _r8(n):
    return ((n + 7) // 8) * 8


def _pack_rows(arrays, use_np=False):
    """Pack 2-D arrays into one (R, W) f32 slab; each segment starts on an
    8-row boundary.  Returns (slab, [(row_off, rows, cols), ...])."""
    xp = np if use_np else jnp
    arrays = [xp.asarray(a, xp.float32) for a in arrays]
    width = max(int(a.shape[1]) for a in arrays)
    parts, offs, row = [], [], 0
    for a in arrays:
        r, c = int(a.shape[0]), int(a.shape[1])
        seg = xp.zeros((_r8(r), width), xp.float32)
        if use_np:
            seg[:r, :c] = a
        else:
            seg = seg.at[:r, :c].set(a)
        parts.append(seg)
        offs.append((row, r, c))
        row += _r8(r)
    return xp.concatenate(parts, axis=0), offs


# -----------------------------------------------------------------------------
# Trace-time (numpy) constant builders: conv taps, pooling, flatten, softmax mask
# -----------------------------------------------------------------------------
def _conv_taps_np(B, lin, lout, K, pad):
    mats = []
    for k in range(K):
        g = np.zeros((B * lin, B * lout), np.float32)
        for b in range(B):
            for j in range(lout):
                src = j + k - pad
                if 0 <= src < lin:
                    g[b * lin + src, b * lout + j] = 1.0
        mats.append(g)
    return mats


def _pool_taps_np(B, lin):                 # MaxPool1d(2): even / odd selectors
    lout = lin // 2
    mats = []
    for k in range(2):
        g = np.zeros((B * lin, B * lout), np.float32)
        for b in range(B):
            for j in range(lout):
                g[b * lin + 2 * j + k, b * lout + j] = 1.0
        mats.append(g)
    return mats


def _avg_np(B, lin):                       # AvgPool1d(2) as a single matmul
    lout = lin // 2
    g = np.zeros((B * lin, B * lout), np.float32)
    for b in range(B):
        for j in range(lout):
            g[b * lin + 2 * j, b * lout + j] = 0.5
            g[b * lin + 2 * j + 1, b * lout + j] = 0.5
    return g


def _fc_taps_np(B, l2):                    # picks column b*l2 + j for each batch
    mats = []
    for j in range(l2):
        g = np.zeros((B * l2, B), np.float32)
        for b in range(B):
            g[b * l2 + j, b] = 1.0
        mats.append(g)
    return mats


def _block_mask_bias_np(B, T, Q):          # block-diagonal additive softmax mask
    bias = np.full((B * T, B * Q), -1e9, np.float32)
    for b in range(B):
        bias[b * T:(b + 1) * T, b * Q:(b + 1) * Q] = 0.0
    return bias


def _tap_stack(w):                         # (Cout, Cin, K) -> (K*Cout, Cin)
    cout, cin, k = w.shape
    return jnp.transpose(w, (2, 0, 1)).reshape(k * cout, cin).astype(jnp.float32)


# -----------------------------------------------------------------------------
# Wrapper: packs operands into 3 slabs and launches the single fused kernel
# -----------------------------------------------------------------------------
def mtan_enc_forward(x, time_steps, query_times, p):
    B, T, D = map(int, x.shape)
    Q = int(query_times.shape[0])
    E = int(p["att_w0"].shape[0])
    H = int(p["att_w2"].shape[0])
    n_classes = int(p["fc3_w"].shape[0])
    F1 = int(p["fc1_w"].shape[0])
    F2 = int(p["fc2_w"].shape[0])
    K, pool = 3, 2

    C1 = int(p["conv1_w"].shape[0])        # conv_l1 == nhidden
    C2 = int(p["conv2_w"].shape[0])        # conv_l2 == 2 * conv_l1
    Lc1 = Q - (K - 1)                      # after conv1 (valid)
    Lp1 = Lc1 // pool                      # after maxpool
    Lav = Lp1 // pool                      # after avgpool
    Lc2 = Lav - (K - 1)                    # after conv2 (valid)
    Lp2 = Lc2 // pool                      # after final maxpool
    assert p["fc1_w"].shape[1] == C2 * Lp2, "fc1 width mismatch"

    BT, BQ = B * T, B * Q
    f32 = jnp.float32

    # ---------------- slab 1: dynamic per-call inputs ------------------------
    qt_tiled = jnp.tile(query_times.reshape(1, Q).astype(f32), (1, B))     # (1, BQ)
    ts_col = time_steps.reshape(BT, 1).astype(f32)                          # (BT, 1)
    xT_flat = jnp.transpose(x, (2, 0, 1)).reshape(D, BT).astype(f32)        # (D, BT)
    x_slab, (O_QT, O_TS, O_X) = _pack_rows([qt_tiled, ts_col, xT_flat])

    # ---------------- slab 2: all weights & biases ----------------------------
    wemb_r = jnp.concatenate([p["lin_w"].T, p["per_w"].T], axis=1).astype(f32)   # (1, E)
    bemb_r = jnp.concatenate([p["lin_b"], p["per_b"]]).reshape(1, E).astype(f32)
    f1w_cat = jnp.transpose(p["fc1_w"].reshape(F1, C2, Lp2), (2, 0, 1)
                            ).reshape(Lp2 * F1, C2).astype(f32)

    w_entries = [
        p["att_w0"].astype(f32),                        # (E, E)
        p["att_w1"].T.astype(f32),                      # (E, E)
        p["att_w2"].astype(f32),                        # (H, D)
        wemb_r, bemb_r,
        p["att_b1"].reshape(1, E).astype(f32),
        jnp.transpose(wemb_r), jnp.transpose(bemb_r),   # column forms (E, 1)
        p["att_b0"].reshape(E, 1).astype(f32),
        p["att_b2"].reshape(H, 1).astype(f32),
        _tap_stack(p["conv1_w"]), p["conv1_b"].reshape(C1, 1).astype(f32),
        _tap_stack(p["res1_conv1_w"]), p["res1_conv1_b"].reshape(C1, 1).astype(f32),
        _tap_stack(p["res1_conv2_w"]), p["res1_conv2_b"].reshape(C1, 1).astype(f32),
        _tap_stack(p["res2_conv1_w"]), p["res2_conv1_b"].reshape(C1, 1).astype(f32),
        _tap_stack(p["res2_conv2_w"]), p["res2_conv2_b"].reshape(C1, 1).astype(f32),
        _tap_stack(p["conv2_w"]), p["conv2_b"].reshape(C2, 1).astype(f32),
        f1w_cat, p["fc1_b"].reshape(F1, 1).astype(f32),
        p["fc2_w"].astype(f32), p["fc2_b"].reshape(F2, 1).astype(f32),
        p["fc3_w"].astype(f32), p["fc3_b"].reshape(n_classes, 1).astype(f32),
    ]
    w_slab, w_offs = _pack_rows(w_entries)
    (O_W0, O_W1T, O_W2, O_WEMB_R, O_BEMB_R, O_B1, O_WEMB_C, O_BEMB_C, O_B0, O_B2,
     O_C1W, O_C1B, O_R1AW, O_R1AB, O_R1BW, O_R1BB, O_R2AW, O_R2AB, O_R2BW, O_R2BB,
     O_C2W, O_C2B, O_F1W, O_F1B, O_F2W, O_F2B, O_F3W, O_F3B) = w_offs

    # ---------------- slab 3: static selection / mask constants ---------------
    gc1 = _conv_taps_np(B, Q, Lc1, K, 0)
    gp1 = _pool_taps_np(B, Lc1)
    gres = _conv_taps_np(B, Lp1, Lp1, K, 1)
    gavg = _avg_np(B, Lp1)
    gc2 = _conv_taps_np(B, Lav, Lc2, K, 0)
    gp2 = _pool_taps_np(B, Lc2)
    gfc = _fc_taps_np(B, Lp2)
    mbias = _block_mask_bias_np(B, T, Q)

    c_arrays = [mbias] + gc1 + gp1 + gres + [gavg] + gc2 + gp2 + gfc
    c_slab_np, c_offs = _pack_rows(c_arrays, use_np=True)
    c_slab = jnp.asarray(c_slab_np)
    i = 0
    O_MASK = c_offs[i]; i += 1
    O_GC1 = c_offs[i:i + K]; i += K
    O_GP1 = c_offs[i:i + 2]; i += 2
    O_GRES = c_offs[i:i + K]; i += K
    O_GAVG = c_offs[i]; i += 1
    O_GC2 = c_offs[i:i + K]; i += K
    O_GP2 = c_offs[i:i + 2]; i += 2
    O_GFC = c_offs[i:i + Lp2]

    # ---------------- fused kernel (closure over static offsets/dims) ---------
    inv_sqrt_e = 1.0 / math.sqrt(E)

    def kernel(x_ref, w_ref, c_ref, out_ref):
        def take(ref, spec):
            off, r, c = spec
            return ref[off:off + r, 0:c]

        def mm(a, b):
            return jnp.dot(a, b, preferred_element_type=jnp.float32)

        def relu(v):
            return jnp.maximum(v, 0.0)

        def lrelu(v):                       # PyTorch LeakyReLU default slope
            return jnp.where(v > 0, v, 0.01 * v)

        # ---------- multiTimeAttention (whole batch, block-diagonal softmax) --
        qt = take(x_ref, O_QT)              # (1, BQ)  query times, tiled per batch
        ts = take(x_ref, O_TS)              # (BT, 1)  observation times
        xT = take(x_ref, O_X)               # (D, BT)  values, batch folded in lanes

        wemb_c = take(w_ref, O_WEMB_C); bemb_c = take(w_ref, O_BEMB_C)
        wemb_r = take(w_ref, O_WEMB_R); bemb_r = take(w_ref, O_BEMB_R)

        # query path, directly in transposed (E, BQ) orientation
        aq = wemb_c * qt + bemb_c                                       # (E, BQ)
        rr = jax.lax.broadcasted_iota(jnp.int32, aq.shape, 0)
        embq = jnp.where(rr == 0, aq, jnp.sin(aq))                      # linear | sin
        qT = mm(take(w_ref, O_W0), embq) + take(w_ref, O_B0)            # (E, BQ)

        # key path for all batch elements
        ak = ts * wemb_r + bemb_r                                       # (BT, E)
        cc = jax.lax.broadcasted_iota(jnp.int32, ak.shape, 1)
        embk = jnp.where(cc == 0, ak, jnp.sin(ak))
        k_all = mm(embk, take(w_ref, O_W1T)) + take(w_ref, O_B1)        # (BT, E)

        # single block-diagonal softmax over the sublane (time) axis
        scores = mm(k_all, qT) * inv_sqrt_e + take(c_ref, O_MASK)       # (BT, BQ)
        m = jnp.max(scores, axis=0, keepdims=True)
        pexp = jnp.exp(scores - m)
        denom = jnp.sum(pexp, axis=0, keepdims=True)
        attn = pexp * pl.reciprocal(denom, approx=False)                # exact (parity)

        # one block-diagonal context matmul + output projection -> NCL input
        ctxT = mm(xT, attn)                                             # (D, BQ)
        h = mm(take(w_ref, O_W2), ctxT) + take(w_ref, O_B2)             # (H, BQ)

        # ---------- mTANCNN (batch folded along lanes) -------------------------
        def loadg(specs):
            return [take(c_ref, s) for s in specs]

        def conv(v, wspec, bspec, gmats):
            # v: (Cin, B*Lin); packed weight: (K*Cout, Cin); gmats[k]: (B*Lin, B*Lout)
            cout = wspec[1] // K
            taps = mm(take(w_ref, wspec), v)                            # (K*Cout, B*Lin)
            acc = mm(taps[0:cout, :], gmats[0])
            for k in range(1, K):
                acc = acc + mm(taps[k * cout:(k + 1) * cout, :], gmats[k])
            return acc + take(w_ref, bspec)

        def batchnorm(v):          # training-mode BN (batch stats, biased var)
            mu = jnp.mean(v, axis=1, keepdims=True)
            var = jnp.mean((v - mu) ** 2, axis=1, keepdims=True)
            return (v - mu) * jax.lax.rsqrt(var + 1e-5)

        def maxpool(v, gmats):     # MaxPool1d(2): max of even/odd gathers
            return jnp.maximum(mm(v, gmats[0]), mm(v, gmats[1]))

        g_res = loadg(O_GRES)      # reused by all 4 res-block convs

        def res_block(v, wa, ba, wb, bb):
            u = lrelu(batchnorm(conv(v, wa, ba, g_res)))
            u = lrelu(batchnorm(conv(u, wb, bb, g_res)))
            return lrelu(u + v)

        h = conv(h, O_C1W, O_C1B, loadg(O_GC1))                         # (C1, B*Lc1)
        h = maxpool(relu(batchnorm(h)), loadg(O_GP1))                   # (C1, B*Lp1)
        h = res_block(h, O_R1AW, O_R1AB, O_R1BW, O_R1BB)
        h = res_block(h, O_R2AW, O_R2AB, O_R2BW, O_R2BB)
        h = mm(h, take(c_ref, O_GAVG))                                  # AvgPool1d(2)
        h = conv(h, O_C2W, O_C2B, loadg(O_GC2))                         # (C2, B*Lc2)
        h = maxpool(relu(batchnorm(h)), loadg(O_GP2))                   # (C2, B*Lp2)

        # ---------- FC head: 1 stacked weight matmul + Lp2 tiny gathers --------
        t = mm(take(w_ref, O_F1W), h)                                   # (Lp2*F1, B*Lp2)
        acc = mm(t[0:F1, :], take(c_ref, O_GFC[0]))
        for j in range(1, Lp2):
            acc = acc + mm(t[j * F1:(j + 1) * F1, :], take(c_ref, O_GFC[j]))
        h1 = relu(acc + take(w_ref, O_F1B))                             # (F1, B)
        h2 = relu(mm(take(w_ref, O_F2W), h1) + take(w_ref, O_F2B))      # (F2, B)
        # NOTE: the reference mTANCNN applies F.relu to the fc_3 output too.
        h3 = relu(mm(take(w_ref, O_F3W), h2) + take(w_ref, O_F3B))      # (n_cls, B)
        out_ref[...] = h3

    # ---------------- cost estimate (advisory hint for XLA) -------------------
    mm_dims = [(E, E, BQ), (BT, E, E), (BT, E, BQ), (D, BT, BQ), (H, D, BQ),
               (K * C1, H, BQ)]
    mm_dims += [(C1, BQ, B * Lc1)] * K + [(C1, B * Lc1, B * Lp1)] * 2
    mm_dims += ([(K * C1, C1, B * Lp1)] + [(C1, B * Lp1, B * Lp1)] * K) * 4
    mm_dims += [(C1, B * Lp1, B * Lav), (K * C2, C1, B * Lav)]
    mm_dims += [(C2, B * Lav, B * Lc2)] * K + [(C2, B * Lc2, B * Lp2)] * 2
    mm_dims += [(Lp2 * F1, C2, B * Lp2)] + [(F1, B * Lp2, B)] * Lp2
    mm_dims += [(F2, F1, B), (n_classes, F2, B)]
    flops = sum(2 * m * k * n for m, k, n in mm_dims)
    transcendentals = BQ * (E - 1) + BT * (E - 1) + BT * BQ
    bytes_accessed = 4 * (x_slab.size + w_slab.size + c_slab.size + n_classes * B)

    out = pl.pallas_call(
        kernel,
        out_shape=jax.ShapeDtypeStruct((n_classes, B), jnp.float32),
        cost_estimate=pl.CostEstimate(flops=int(flops),
                                      transcendentals=int(transcendentals),
                                      bytes_accessed=int(bytes_accessed)),
    )(x_slab, w_slab, c_slab)
    return jnp.transpose(out)              # (B, n_classes)


# -----------------------------------------------------------------------------
# Deterministic parameter init (shapes follow the PyTorch __init__)
# -----------------------------------------------------------------------------
def init_params(key, D, E, H, Q_len, n_classes):
    conv_l1, conv_l2, k_sz, pool = H, 2 * H, 3, 2
    conv_l1_dim = (Q_len - (k_sz - 1)) // pool
    res_l1_dim = conv_l1_dim // pool
    conv_l2_dim = (res_l1_dim - (k_sz - 1)) // pool
    flat = conv_l2 * conv_l2_dim
    assert conv_l2_dim >= 1, "query length too small for the CNN head"

    keys = iter(jax.random.split(key, 64))

    def w(shape, fan_in):
        return jax.random.normal(next(keys), shape, jnp.float32) / math.sqrt(fan_in)

    def b(n, fan_in):
        return jax.random.normal(next(keys), (n,), jnp.float32) * (0.5 / math.sqrt(fan_in))

    return {
        # learned time embedding
        "lin_w": w((1, 1), 1), "lin_b": b(1, 1),
        "per_w": w((E - 1, 1), 1), "per_b": b(E - 1, 1),
        # multiTimeAttention linears
        "att_w0": w((E, E), E), "att_b0": b(E, E),
        "att_w1": w((E, E), E), "att_b1": b(E, E),
        "att_w2": w((H, D), D), "att_b2": b(H, D),
        # mTANCNN (BatchNorm affine params are identity at init, omitted)
        "conv1_w": w((conv_l1, H, k_sz), H * k_sz), "conv1_b": b(conv_l1, H * k_sz),
        "res1_conv1_w": w((conv_l1, conv_l1, k_sz), conv_l1 * k_sz),
        "res1_conv1_b": b(conv_l1, conv_l1 * k_sz),
        "res1_conv2_w": w((conv_l1, conv_l1, k_sz), conv_l1 * k_sz),
        "res1_conv2_b": b(conv_l1, conv_l1 * k_sz),
        "res2_conv1_w": w((conv_l1, conv_l1, k_sz), conv_l1 * k_sz),
        "res2_conv1_b": b(conv_l1, conv_l1 * k_sz),
        "res2_conv2_w": w((conv_l1, conv_l1, k_sz), conv_l1 * k_sz),
        "res2_conv2_b": b(conv_l1, conv_l1 * k_sz),
        "conv2_w": w((conv_l2, conv_l1, k_sz), conv_l1 * k_sz),
        "conv2_b": b(conv_l2, conv_l1 * k_sz),
        "fc1_w": w((128, flat), flat), "fc1_b": b(128, flat),
        "fc2_w": w((64, 128), 128), "fc2_b": b(64, 128),
        "fc3_w": w((n_classes, 64), 64), "fc3_b": b(n_classes, 64),
    }


if __name__ == "__main__":
    B, T, D = 2, 8, 4          # batch, #observation times, input_dim
    E, H = 16, 32              # embed_time, nhidden
    Q_len = 32                 # len(self.query): reference time points
    n_classes = 6

    root = jax.random.PRNGKey(0)
    k_x, k_t, k_p = jax.random.split(root, 3)
    x = jax.random.normal(k_x, (B, T, D), jnp.float32)
    time_steps = jnp.sort(jax.random.uniform(k_t, (B, T), jnp.float32), axis=1)
    query_times = jnp.linspace(0.0, 1.0, Q_len, dtype=jnp.float32)
    params = init_params(k_p, D, E, H, Q_len, n_classes)

    out = jax.jit(mtan_enc_forward)(x, time_steps, query_times, params)
    out = jax.block_until_ready(out)
    assert out.shape == (B, n_classes) and out.dtype == jnp.float32
    print("KERNEL_OK")
</pallas_src>

<mosaic_0001>
module attributes {stable_mosaic.version = 11 : i64} {
  func.func @kernel(%arg0: memref<32x64xf32, #tpu.memory_space<vmem>>, %arg1: memref<1592x128xf32, #tpu.memory_space<vmem>>, %arg2: memref<560x64xf32, #tpu.memory_space<vmem>>, %arg3: memref<6x2xf32, #tpu.memory_space<vmem>>) attributes {dimension_semantics = [], scalar_prefetch = 0 : i64, scratch_operands = 0 : i64, tpu.core_type = #tpu.core_type<tc>} {
    %c0 = arith.constant 0 : index
    %c0_0 = arith.constant 0 : index
    %0 = vector.load %arg0[%c0, %c0_0] : memref<32x64xf32, #tpu.memory_space<vmem>>, vector<1x64xf32>
    %c8 = arith.constant 8 : index
    %c0_1 = arith.constant 0 : index
    %1 = vector.load %arg0[%c8, %c0_1] : memref<32x64xf32, #tpu.memory_space<vmem>>, vector<16x1xf32>
    %c24 = arith.constant 24 : index
    %c0_2 = arith.constant 0 : index
    %2 = vector.load %arg0[%c24, %c0_2] : memref<32x64xf32, #tpu.memory_space<vmem>>, vector<4x16xf32>
    %c88 = arith.constant 88 : index
    %c0_3 = arith.constant 0 : index
    %3 = vector.load %arg1[%c88, %c0_3] : memref<1592x128xf32, #tpu.memory_space<vmem>>, vector<16x1xf32>
    %c104 = arith.constant 104 : index
    %c0_4 = arith.constant 0 : index
    %4 = vector.load %arg1[%c104, %c0_4] : memref<1592x128xf32, #tpu.memory_space<vmem>>, vector<16x1xf32>
    %c64 = arith.constant 64 : index
    %c0_5 = arith.constant 0 : index
    %5 = vector.load %arg1[%c64, %c0_5] : memref<1592x128xf32, #tpu.memory_space<vmem>>, vector<1x16xf32>
    %c72 = arith.constant 72 : index
    %c0_6 = arith.constant 0 : index
    %6 = vector.load %arg1[%c72, %c0_6] : memref<1592x128xf32, #tpu.memory_space<vmem>>, vector<1x16xf32>
    %7 = vector.broadcast %3 : vector<16x1xf32> to vector<16x64xf32>
    %8 = vector.broadcast %0 : vector<1x64xf32> to vector<16x64xf32>
    %9 = arith.mulf %7, %8 : vector<16x64xf32>
    %10 = vector.broadcast %4 : vector<16x1xf32> to vector<16x64xf32>
    %11 = arith.addf %9, %10 : vector<16x64xf32>
    %12 = tpu.iota {dimensions = array<i32: 0>} : vector<16x64xi32>
    %c0_i32 = arith.constant 0 : i32
    %13 = vector.broadcast %c0_i32 : i32 to vector<16x64xi32>
    %14 = arith.cmpi eq, %12, %13 : vector<16x64xi32>
    %15 = math.sin %11 : vector<16x64xf32>
    %16 = arith.select %14, %11, %15 : vector<16x64xi1>, vector<16x64xf32>
    %c0_7 = arith.constant 0 : index
    %c0_8 = arith.constant 0 : index
    %17 = vector.load %arg1[%c0_7, %c0_8] : memref<1592x128xf32, #tpu.memory_space<vmem>>, vector<16x16xf32>
    %cst = arith.constant dense<0.000000e+00> : vector<16x64xf32>
    %18 = tpu.matmul %17, %16, %cst {dimension_numbers = #tpu.dot_dimension_numbers<[1], [0], [0], [1], [0, 0, 1, 1], [], []>} : vector<16x16xf32>, vector<16x64xf32>, vector<16x64xf32> -> vector<16x64xf32>
    %c120 = arith.constant 120 : index
    %c0_9 = arith.constant 0 : index
    %19 = vector.load %arg1[%c120, %c0_9] : memref<1592x128xf32, #tpu.memory_space<vmem>>, vector<16x1xf32>
    %20 = vector.broadcast %19 : vector<16x1xf32> to vector<16x64xf32>
    %21 = arith.addf %18, %20 : vector<16x64xf32>
    %22 = vector.broadcast %1 : vector<16x1xf32> to vector<16x16xf32>
    %23 = vector.broadcast %5 : vector<1x16xf32> to vector<16x16xf32>
    %24 = arith.mulf %22, %23 : vector<16x16xf32>
    %25 = vector.broadcast %6 : vector<1x16xf32> to vector<16x16xf32>
    %26 = arith.addf %24, %25 : vector<16x16xf32>
    %27 = tpu.iota {dimensions = array<i32: 1>} : vector<16x16xi32>
    %c0_i32_10 = arith.constant 0 : i32
    %28 = vector.broadcast %c0_i32_10 : i32 to vector<16x16xi32>
    %29 = arith.cmpi eq, %27, %28 : vector<16x16xi32>
    %30 = math.sin %26 : vector<16x16xf32>
    %31 = arith.select %29, %26, %30 : vector<16x16xi1>, vector<16x16xf32>
    %c16 = arith.constant 16 : index
    %c0_11 = arith.constant 0 : index
    %32 = vector.load %arg1[%c16, %c0_11] : memref<1592x128xf32, #tpu.memory_space<vmem>>, vector<16x16xf32>
    %cst_12 = arith.constant dense<0.000000e+00> : vector<16x16xf32>
    %33 = tpu.matmul %31, %32, %cst_12 {dimension_numbers = #tpu.dot_dimension_numbers<[1], [0], [0], [1], [0, 0, 1, 1], [], []>} : vector<16x16xf32>, vector<16x16xf32>, vector<16x16xf32> -> vector<16x16xf32>
    %c80 = arith.constant 80 : index
    %c0_13 = arith.constant 0 : index
    %34 = vector.load %arg1[%c80, %c0_13] : memref<1592x128xf32, #tpu.memory_space<vmem>>, vector<1x16xf32>
    %35 = vector.broadcast %34 : vector<1x16xf32> to vector<16x16xf32>
    %36 = arith.addf %33, %35 : vector<16x16xf32>
    %cst_14 = arith.constant dense<0.000000e+00> : vector<16x64xf32>
    %37 = tpu.matmul %36, %21, %cst_14 {dimension_numbers = #tpu.dot_dimension_numbers<[1], [0], [0], [1], [0, 0, 1, 1], [], []>} : vector<16x16xf32>, vector<16x64xf32>, vector<16x64xf32> -> vector<16x64xf32>
    %cst_15 = arith.constant 2.500000e-01 : f32
    %38 = vector.broadcast %cst_15 : f32 to vector<16x64xf32>
    %39 = arith.mulf %37, %38 : vector<16x64xf32>
    %c0_16 = arith.constant 0 : index
    %c0_17 = arith.constant 0 : index
    %40 = vector.load %arg2[%c0_16, %c0_17] : memref<560x64xf32, #tpu.memory_space<vmem>>, vector<16x64xf32>
    %41 = arith.addf %39, %40 : vector<16x64xf32>
    %cst_18 = arith.constant dense<0xFF800000> : vector<64xf32>
    %42 = vector.multi_reduction <maximumf>, %41, %cst_18 [0] : vector<16x64xf32> to vector<64xf32>
    %43 = vector.shape_cast %42 : vector<64xf32> to vector<1x64xf32>
    %44 = vector.broadcast %43 : vector<1x64xf32> to vector<16x64xf32>
    %45 = arith.subf %41, %44 : vector<16x64xf32>
    %46 = math.exp %45 : vector<16x64xf32>
    %cst_19 = arith.constant dense<0.000000e+00> : vector<64xf32>
    %47 = vector.multi_reduction <add>, %46, %cst_19 [0] : vector<16x64xf32> to vector<64xf32>
    %48 = vector.shape_cast %47 : vector<64xf32> to vector<1x64xf32>
    %49 = tpu.reciprocal %48 : vector<1x64xf32> -> vector<1x64xf32>
    %50 = vector.broadcast %49 : vector<1x64xf32> to vector<16x64xf32>
    %51 = arith.mulf %46, %50 : vector<16x64xf32>
    %cst_20 = arith.constant dense<0.000000e+00> : vector<4x64xf32>
    %52 = tpu.matmul %2, %51, %cst_20 {dimension_numbers = #tpu.dot_dimension_numbers<[1], [0], [0], [1], [0, 0, 1, 1], [], []>} : vector<4x16xf32>, vector<16x64xf32>, vector<4x64xf32> -> vector<4x64xf32>
    %c32 = arith.constant 32 : index
    %c0_21 = arith.constant 0 : index
    %53 = vector.load %arg1[%c32, %c0_21] : memref<1592x128xf32, #tpu.memory_space<vmem>>, vector<32x4xf32>
    %cst_22 = arith.constant dense<0.000000e+00> : vector<32x64xf32>
    %54 = tpu.matmul %53, %52, %cst_22 {dimension_numbers = #tpu.dot_dimension_numbers<[1], [0], [0], [1], [0, 0, 1, 1], [], []>} : vector<32x4xf32>, vector<4x64xf32>, vector<32x64xf32> -> vector<32x64xf32>
    %c136 = arith.constant 136 : index
    %c0_23 = arith.constant 0 : index
    %55 = vector.load %arg1[%c136, %c0_23] : memref<1592x128xf32, #tpu.memory_space<vmem>>, vector<32x1xf32>
    %56 = vector.broadcast %55 : vector<32x1xf32> to vector<32x64xf32>
    %57 = arith.addf %54, %56 : vector<32x64xf32>
    %c336 = arith.constant 336 : index
    %c0_24 = arith.constant 0 : index
    %58 = vector.load %arg2[%c336, %c0_24] : memref<560x64xf32, #tpu.memory_space<vmem>>, vector<30x30xf32>
    %c368 = arith.constant 368 : index
    %c0_25 = arith.constant 0 : index
    %59 = vector.load %arg2[%c368, %c0_25] : memref<560x64xf32, #tpu.memory_space<vmem>>, vector<30x30xf32>
    %c400 = arith.constant 400 : index
    %c0_26 = arith.constant 0 : index
    %60 = vector.load %arg2[%c400, %c0_26] : memref<560x64xf32, #tpu.memory_space<vmem>>, vector<30x30xf32>
    %c16_27 = arith.constant 16 : index
    %c0_28 = arith.constant 0 : index
    %61 = vector.load %arg2[%c16_27, %c0_28] : memref<560x64xf32, #tpu.memory_space<vmem>>, vector<64x60xf32>
    %c80_29 = arith.constant 80 : index
    %c0_30 = arith.constant 0 : index
    %62 = vector.load %arg2[%c80_29, %c0_30] : memref<560x64xf32, #tpu.memory_space<vmem>>, vector<64x60xf32>
    %c144 = arith.constant 144 : index
    %c0_31 = arith.constant 0 : index
    %63 = vector.load %arg2[%c144, %c0_31] : memref<560x64xf32, #tpu.memory_space<vmem>>, vector<64x60xf32>
    %c168 = arith.constant 168 : index
    %c0_32 = arith.constant 0 : index
    %64 = vector.load %arg1[%c168, %c0_32] : memref<1592x128xf32, #tpu.memory_space<vmem>>, vector<96x32xf32>
    %cst_33 = arith.constant dense<0.000000e+00> : vector<96x64xf32>
    %65 = tpu.matmul %64, %57, %cst_33 {dimension_numbers = #tpu.dot_dimension_numbers<[1], [0], [0], [1], [0, 0, 1, 1], [], []>} : vector<96x32xf32>, vector<32x64xf32>, vector<96x64xf32> -> vector<96x64xf32>
    %66 = vector.extract_strided_slice %65 {offsets = [0, 0], sizes = [32, 64], strides = [1, 1]} : vector<96x64xf32> to vector<32x64xf32>
    %cst_34 = arith.constant dense<0.000000e+00> : vector<32x60xf32>
    %67 = tpu.matmul %66, %61, %cst_34 {dimension_numbers = #tpu.dot_dimension_numbers<[1], [0], [0], [1], [0, 0, 1, 1], [], []>} : vector<32x64xf32>, vector<64x60xf32>, vector<32x60xf32> -> vector<32x60xf32>
    %68 = vector.extract_strided_slice %65 {offsets = [32, 0], sizes = [32, 64], strides = [1, 1]} : vector<96x64xf32> to vector<32x64xf32>
    %cst_35 = arith.constant dense<0.000000e+00> : vector<32x60xf32>
    %69 = tpu.matmul %68, %62, %cst_35 {dimension_numbers = #tpu.dot_dimension_numbers<[1], [0], [0], [1], [0, 0, 1, 1], [], []>} : vector<32x64xf32>, vector<64x60xf32>, vector<32x60xf32> -> vector<32x60xf32>
    %70 = arith.addf %67, %69 : vector<32x60xf32>
    %71 = vector.extract_strided_slice %65 {offsets = [64, 0], sizes = [32, 64], strides = [1, 1]} : vector<96x64xf32> to vector<32x64xf32>
    %cst_36 = arith.constant dense<0.000000e+00> : vector<32x60xf32>
    %72 = tpu.matmul %71, %63, %cst_36 {dimension_numbers = #tpu.dot_dimension_numbers<[1], [0], [0], [1], [0, 0, 1, 1], [], []>} : vector<32x64xf32>, vector<64x60xf32>, vector<32x60xf32> -> vector<32x60xf32>
    %73 = arith.addf %70, %72 : vector<32x60xf32>
    %c264 = arith.constant 264 : index
    %c0_37 = arith.constant 0 : index
    %74 = vector.load %arg1[%c264, %c0_37] : memref<1592x128xf32, #tpu.memory_space<vmem>>, vector<32x1xf32>
    %75 = vector.broadcast %74 : vector<32x1xf32> to vector<32x60xf32>
    %76 = arith.addf %73, %75 : vector<32x60xf32>
    %cst_38 = arith.constant dense<0.000000e+00> : vector<32xf32>
    %77 = vector.multi_reduction <add>, %76, %cst_38 [1] : vector<32x60xf32> to vector<32xf32>
    %78 = vector.shape_cast %77 : vector<32xf32> to vector<32x1xf32>
    %cst_39 = arith.constant 6.000000e+01 : f32
    %79 = vector.broadcast %cst_39 : f32 to vector<32x1xf32>
    %80 = arith.divf %78, %79 : vector<32x1xf32>
    %81 = vector.broadcast %80 : vector<32x1xf32> to vector<32x60xf32>
    %82 = arith.subf %76, %81 : vector<32x60xf32>
    %83 = arith.mulf %82, %82 : vector<32x60xf32>
    %cst_40 = arith.constant dense<0.000000e+00> : vector<32xf32>
    %84 = vector.multi_reduction <add>, %83, %cst_40 [1] : vector<32x60xf32> to vector<32xf32>
    %85 = vector.shape_cast %84 : vector<32xf32> to vector<32x1xf32>
    %cst_41 = arith.constant 6.000000e+01 : f32
    %86 = vector.broadcast %cst_41 : f32 to vector<32x1xf32>
    %87 = arith.divf %85, %86 : vector<32x1xf32>
    %88 = vector.broadcast %80 : vector<32x1xf32> to vector<32x60xf32>
    %89 = arith.subf %76, %88 : vector<32x60xf32>
    %cst_42 = arith.constant 9.99999974E-6 : f32
    %90 = vector.broadcast %cst_42 : f32 to vector<32x1xf32>
    %91 = arith.addf %87, %90 : vector<32x1xf32>
    %92 = math.rsqrt %91 : vector<32x1xf32>
    %93 = vector.broadcast %92 : vector<32x1xf32> to vector<32x60xf32>
    %94 = arith.mulf %89, %93 : vector<32x60xf32>
    %cst_43 = arith.constant 0.000000e+00 : f32
    %95 = vector.broadcast %cst_43 : f32 to vector<32x60xf32>
    %96 = arith.maximumf %94, %95 : vector<32x60xf32>
    %c208 = arith.constant 208 : index
    %c0_44 = arith.constant 0 : index
    %97 = vector.load %arg2[%c208, %c0_44] : memref<560x64xf32, #tpu.memory_space<vmem>>, vector<60x30xf32>
    %c272 = arith.constant 272 : index
    %c0_45 = arith.constant 0 : index
    %98 = vector.load %arg2[%c272, %c0_45] : memref<560x64xf32, #tpu.memory_space<vmem>>, vector<60x30xf32>
    %cst_46 = arith.constant dense<0.000000e+00> : vector<32x30xf32>
    %99 = tpu.matmul %96, %97, %cst_46 {dimension_numbers = #tpu.dot_dimension_numbers<[1], [0], [0], [1], [0, 0, 1, 1], [], []>} : vector<32x60xf32>, vector<60x30xf32>, vector<32x30xf32> -> vector<32x30xf32>
    %cst_47 = arith.constant dense<0.000000e+00> : vector<32x30xf32>
    %100 = tpu.matmul %96, %98, %cst_47 {dimension_numbers = #tpu.dot_dimension_numbers<[1], [0], [0], [1], [0, 0, 1, 1], [], []>} : vector<32x60xf32>, vector<60x30xf32>, vector<32x30xf32> -> vector<32x30xf32>
    %101 = arith.maximumf %99, %100 : vector<32x30xf32>
    %c296 = arith.constant 296 : index
    %c0_48 = arith.constant 0 : index
    %102 = vector.load %arg1[%c296, %c0_48] : memref<1592x128xf32, #tpu.memory_space<vmem>>, vector<96x32xf32>
    %cst_49 = arith.constant dense<0.000000e+00> : vector<96x30xf32>
    %103 = tpu.matmul %102, %101, %cst_49 {dimension_numbers = #tpu.dot_dimension_numbers<[1], [0], [0], [1], [0, 0, 1, 1], [], []>} : vector<96x32xf32>, vector<32x30xf32>, vector<96x30xf32> -> vector<96x30xf32>
    %104 = vector.extract_strided_slice %103 {offsets = [0, 0], sizes = [32, 30], strides = [1, 1]} : vector<96x30xf32> to vector<32x30xf32>
    %cst_50 = arith.constant dense<0.000000e+00> : vector<32x30xf32>
    %105 = tpu.matmul %104, %58, %cst_50 {dimension_numbers = #tpu.dot_dimension_numbers<[1], [0], [0], [1], [0, 0, 1, 1], [], []>} : vector<32x30xf32>, vector<30x30xf32>, vector<32x30xf32> -> vector<32x30xf32>
    %106 = vector.extract_strided_slice %103 {offsets = [32, 0], sizes = [32, 30], strides = [1, 1]} : vector<96x30xf32> to vector<32x30xf32>
    %cst_51 = arith.constant dense<0.000000e+00> : vector<32x30xf32>
    %107 = tpu.matmul %106, %59, %cst_51 {dimension_numbers = #tpu.dot_dimension_numbers<[1], [0], [0], [1], [0, 0, 1, 1], [], []>} : vector<32x30xf32>, vector<30x30xf32>, vector<32x30xf32> -> vector<32x30xf32>
    %108 = arith.addf %105, %107 : vector<32x30xf32>
    %109 = vector.extract_strided_slice %103 {offsets = [64, 0], sizes = [32, 30], strides = [1, 1]} : vector<96x30xf32> to vector<32x30xf32>
    %cst_52 = arith.constant dense<0.000000e+00> : vector<32x30xf32>
    %110 = tpu.matmul %109, %60, %cst_52 {dimension_numbers = #tpu.dot_dimension_numbers<[1], [0], [0], [1], [0, 0, 1, 1], [], []>} : vector<32x30xf32>, vector<30x30xf32>, vector<32x30xf32> -> vector<32x30xf32>
    %111 = arith.addf %108, %110 : vector<32x30xf32>
    %c392 = arith.constant 392 : index
    %c0_53 = arith.constant 0 : index
    %112 = vector.load %arg1[%c392, %c0_53] : memref<1592x128xf32, #tpu.memory_space<vmem>>, vector<32x1xf32>
    %113 = vector.broadcast %112 : vector<32x1xf32> to vector<32x30xf32>
    %114 = arith.addf %111, %113 : vector<32x30xf32>
    %cst_54 = arith.constant dense<0.000000e+00> : vector<32xf32>
    %115 = vector.multi_reduction <add>, %114, %cst_54 [1] : vector<32x30xf32> to vector<32xf32>
    %116 = vector.shape_cast %115 : vector<32xf32> to vector<32x1xf32>
    %cst_55 = arith.constant 3.000000e+01 : f32
    %117 = vector.broadcast %cst_55 : f32 to vector<32x1xf32>
    %118 = arith.divf %116, %117 : vector<32x1xf32>
    %119 = vector.broadcast %118 : vector<32x1xf32> to vector<32x30xf32>
    %120 = arith.subf %114, %119 : vector<32x30xf32>
    %121 = arith.mulf %120, %120 : vector<32x30xf32>
    %cst_56 = arith.constant dense<0.000000e+00> : vector<32xf32>
    %122 = vector.multi_reduction <add>, %121, %cst_56 [1] : vector<32x30xf32> to vector<32xf32>
    %123 = vector.shape_cast %122 : vector<32xf32> to vector<32x1xf32>
    %cst_57 = arith.constant 3.000000e+01 : f32
    %124 = vector.broadcast %cst_57 : f32 to vector<32x1xf32>
    %125 = arith.divf %123, %124 : vector<32x1xf32>
    %126 = vector.broadcast %118 : vector<32x1xf32> to vector<32x30xf32>
    %127 = arith.subf %114, %126 : vector<32x30xf32>
    %cst_58 = arith.constant 9.99999974E-6 : f32
    %128 = vector.broadcast %cst_58 : f32 to vector<32x1xf32>
    %129 = arith.addf %125, %128 : vector<32x1xf32>
    %130 = math.rsqrt %129 : vector<32x1xf32>
    %131 = vector.broadcast %130 : vector<32x1xf32> to vector<32x30xf32>
    %132 = arith.mulf %127, %131 : vector<32x30xf32>
    %cst_59 = arith.constant 0.000000e+00 : f32
    %133 = vector.broadcast %cst_59 : f32 to vector<32x30xf32>
    %134 = arith.cmpf ogt, %132, %133 : vector<32x30xf32>
    %cst_60 = arith.constant 0.00999999977 : f32
    %135 = vector.broadcast %cst_60 : f32 to vector<32x30xf32>
    %136 = arith.mulf %135, %132 : vector<32x30xf32>
    %137 = arith.select %134, %132, %136 : vector<32x30xi1>, vector<32x30xf32>
    %c424 = arith.constant 424 : index
    %c0_61 = arith.constant 0 : index
    %138 = vector.load %arg1[%c424, %c0_61] : memref<1592x128xf32, #tpu.memory_space<vmem>>, vector<96x32xf32>
    %cst_62 = arith.constant dense<0.000000e+00> : vector<96x30xf32>
    %139 = tpu.matmul %138, %137, %cst_62 {dimension_numbers = #tpu.dot_dimension_numbers<[1], [0], [0], [1], [0, 0, 1, 1], [], []>} : vector<96x32xf32>, vector<32x30xf32>, vector<96x30xf32> -> vector<96x30xf32>
    %140 = vector.extract_strided_slice %139 {offsets = [0, 0], sizes = [32, 30], strides = [1, 1]} : vector<96x30xf32> to vector<32x30xf32>
    %cst_63 = arith.constant dense<0.000000e+00> : vector<32x30xf32>
    %141 = tpu.matmul %140, %58, %cst_63 {dimension_numbers = #tpu.dot_dimension_numbers<[1], [0], [0], [1], [0, 0, 1, 1], [], []>} : vector<32x30xf32>, vector<30x30xf32>, vector<32x30xf32> -> vector<32x30xf32>
    %142 = vector.extract_strided_slice %139 {offsets = [32, 0], sizes = [32, 30], strides = [1, 1]} : vector<96x30xf32> to vector<32x30xf32>
    %cst_64 = arith.constant dense<0.000000e+00> : vector<32x30xf32>
    %143 = tpu.matmul %142, %59, %cst_64 {dimension_numbers = #tpu.dot_dimension_numbers<[1], [0], [0], [1], [0, 0, 1, 1], [], []>} : vector<32x30xf32>, vector<30x30xf32>, vector<32x30xf32> -> vector<32x30xf32>
    %144 = arith.addf %141, %143 : vector<32x30xf32>
    %145 = vector.extract_strided_slice %139 {offsets = [64, 0], sizes = [32, 30], strides = [1, 1]} : vector<96x30xf32> to vector<32x30xf32>
    %cst_65 = arith.constant dense<0.000000e+00> : vector<32x30xf32>
    %146 = tpu.matmul %145, %60, %cst_65 {dimension_numbers = #tpu.dot_dimension_numbers<[1], [0], [0], [1], [0, 0, 1, 1], [], []>} : vector<32x30xf32>, vector<30x30xf32>, vector<32x30xf32> -> vector<32x30xf32>
    %147 = arith.addf %144, %146 : vector<32x30xf32>
    %c520 = arith.constant 520 : index
    %c0_66 = arith.constant 0 : index
    %148 = vector.load %arg1[%c520, %c0_66] : memref<1592x128xf32, #tpu.memory_space<vmem>>, vector<32x1xf32>
    %149 = vector.broadcast %148 : vector<32x1xf32> to vector<32x30xf32>
    %150 = arith.addf %147, %149 : vector<32x30xf32>
    %cst_67 = arith.constant dense<0.000000e+00> : vector<32xf32>
    %151 = vector.multi_reduction <add>, %150, %cst_67 [1] : vector<32x30xf32> to vector<32xf32>
    %152 = vector.shape_cast %151 : vector<32xf32> to vector<32x1xf32>
    %cst_68 = arith.constant 3.000000e+01 : f32
    %153 = vector.broadcast %cst_68 : f32 to vector<32x1xf32>
    %154 = arith.divf %152, %153 : vector<32x1xf32>
    %155 = vector.broadcast %154 : vector<32x1xf32> to vector<32x30xf32>
    %156 = arith.subf %150, %155 : vector<32x30xf32>
    %157 = arith.mulf %156, %156 : vector<32x30xf32>
    %cst_69 = arith.constant dense<0.000000e+00> : vector<32xf32>
    %158 = vector.multi_reduction <add>, %157, %cst_69 [1] : vector<32x30xf32> to vector<32xf32>
    %159 = vector.shape_cast %158 : vector<32xf32> to vector<32x1xf32>
    %cst_70 = arith.constant 3.000000e+01 : f32
    %160 = vector.broadcast %cst_70 : f32 to vector<32x1xf32>
    %161 = arith.divf %159, %160 : vector<32x1xf32>
    %162 = vector.broadcast %154 : vector<32x1xf32> to vector<32x30xf32>
    %163 = arith.subf %150, %162 : vector<32x30xf32>
    %cst_71 = arith.constant 9.99999974E-6 : f32
    %164 = vector.broadcast %cst_71 : f32 to vector<32x1xf32>
    %165 = arith.addf %161, %164 : vector<32x1xf32>
    %166 = math.rsqrt %165 : vector<32x1xf32>
    %167 = vector.broadcast %166 : vector<32x1xf32> to vector<32x30xf32>
    %168 = arith.mulf %163, %167 : vector<32x30xf32>
    %cst_72 = arith.constant 0.000000e+00 : f32
    %169 = vector.broadcast %cst_72 : f32 to vector<32x30xf32>
    %170 = arith.cmpf ogt, %168, %169 : vector<32x30xf32>
    %cst_73 = arith.constant 0.00999999977 : f32
    %171 = vector.broadcast %cst_73 : f32 to vector<32x30xf32>
    %172 = arith.mulf %171, %168 : vector<32x30xf32>
    %173 = arith.select %170, %168, %172 : vector<32x30xi1>, vector<32x30xf32>
    %174 = arith.addf %173, %101 : vector<32x30xf32>
    %cst_74 = arith.constant 0.000000e+00 : f32
    %175 = vector.broadcast %cst_74 : f32 to vector<32x30xf32>
    %176 = arith.cmpf ogt, %174, %175 : vector<32x30xf32>
    %cst_75 = arith.constant 0.00999999977 : f32
    %177 = vector.broadcast %cst_75 : f32 to vector<32x30xf32>
    %178 = arith.mulf %177, %174 : vector<32x30xf32>
    %179 = arith.select %176, %174, %178 : vector<32x30xi1>, vector<32x30xf32>
    %c552 = arith.constant 552 : index
    %c0_76 = arith.constant 0 : index
    %180 = vector.load %arg1[%c552, %c0_76] : memref<1592x128xf32, #tpu.memory_space<vmem>>, vector<96x32xf32>
    %cst_77 = arith.constant dense<0.000000e+00> : vector<96x30xf32>
    %181 = tpu.matmul %180, %179, %cst_77 {dimension_numbers = #tpu.dot_dimension_numbers<[1], [0], [0], [1], [0, 0, 1, 1], [], []>} : vector<96x32xf32>, vector<32x30xf32>, vector<96x30xf32> -> vector<96x30xf32>
    %182 = vector.extract_strided_slice %181 {offsets = [0, 0], sizes = [32, 30], strides = [1, 1]} : vector<96x30xf32> to vector<32x30xf32>
    %cst_78 = arith.constant dense<0.000000e+00> : vector<32x30xf32>
    %183 = tpu.matmul %182, %58, %cst_78 {dimension_numbers = #tpu.dot_dimension_numbers<[1], [0], [0], [1], [0, 0, 1, 1], [], []>} : vector<32x30xf32>, vector<30x30xf32>, vector<32x30xf32> -> vector<32x30xf32>
    %184 = vector.extract_strided_slice %181 {offsets = [32, 0], sizes = [32, 30], strides = [1, 1]} : vector<96x30xf32> to vector<32x30xf32>
    %cst_79 = arith.constant dense<0.000000e+00> : vector<32x30xf32>
    %185 = tpu.matmul %184, %59, %cst_79 {dimension_numbers = #tpu.dot_dimension_numbers<[1], [0], [0], [1], [0, 0, 1, 1], [], []>} : vector<32x30xf32>, vector<30x30xf32>, vector<32x30xf32> -> vector<32x30xf32>
    %186 = arith.addf %183, %185 : vector<32x30xf32>
    %187 = vector.extract_strided_slice %181 {offsets = [64, 0], sizes = [32, 30], strides = [1, 1]} : vector<96x30xf32> to vector<32x30xf32>
    %cst_80 = arith.constant dense<0.000000e+00> : vector<32x30xf32>
    %188 = tpu.matmul %187, %60, %cst_80 {dimension_numbers = #tpu.dot_dimension_numbers<[1], [0], [0], [1], [0, 0, 1, 1], [], []>} : vector<32x30xf32>, vector<30x30xf32>, vector<32x30xf32> -> vector<32x30xf32>
    %189 = arith.addf %186, %188 : vector<32x30xf32>
    %c648 = arith.constant 648 : index
    %c0_81 = arith.constant 0 : index
    %190 = vector.load %arg1[%c648, %c0_81] : memref<1592x128xf32, #tpu.memory_space<vmem>>, vector<32x1xf32>
    %191 = vector.broadcast %190 : vector<32x1xf32> to vector<32x30xf32>
    %192 = arith.addf %189, %191 : vector<32x30xf32>
    %cst_82 = arith.constant dense<0.000000e+00> : vector<32xf32>
    %193 = vector.multi_reduction <add>, %192, %cst_82 [1] : vector<32x30xf32> to vector<32xf32>
    %194 = vector.shape_cast %193 : vector<32xf32> to vector<32x1xf32>
    %cst_83 = arith.constant 3.000000e+01 : f32
    %195 = vector.broadcast %cst_83 : f32 to vector<32x1xf32>
    %196 = arith.divf %194, %195 : vector<32x1xf32>
    %197 = vector.broadcast %196 : vector<32x1xf32> to vector<32x30xf32>
    %198 = arith.subf %192, %197 : vector<32x30xf32>
    %199 = arith.mulf %198, %198 : vector<32x30xf32>
    %cst_84 = arith.constant dense<0.000000e+00> : vector<32xf32>
    %200 = vector.multi_reduction <add>, %199, %cst_84 [1] : vector<32x30xf32> to vector<32xf32>
    %201 = vector.shape_cast %200 : vector<32xf32> to vector<32x1xf32>
    %cst_85 = arith.constant 3.000000e+01 : f32
    %202 = vector.broadcast %cst_85 : f32 to vector<32x1xf32>
    %203 = arith.divf %201, %202 : vector<32x1xf32>
    %204 = vector.broadcast %196 : vector<32x1xf32> to vector<32x30xf32>
    %205 = arith.subf %192, %204 : vector<32x30xf32>
    %cst_86 = arith.constant 9.99999974E-6 : f32
    %206 = vector.broadcast %cst_86 : f32 to vector<32x1xf32>
    %207 = arith.addf %203, %206 : vector<32x1xf32>
    %208 = math.rsqrt %207 : vector<32x1xf32>
    %209 = vector.broadcast %208 : vector<32x1xf32> to vector<32x30xf32>
    %210 = arith.mulf %205, %209 : vector<32x30xf32>
    %cst_87 = arith.constant 0.000000e+00 : f32
    %211 = vector.broadcast %cst_87 : f32 to vector<32x30xf32>
    %212 = arith.cmpf ogt, %210, %211 : vector<32x30xf32>
    %cst_88 = arith.constant 0.00999999977 : f32
    %213 = vector.broadcast %cst_88 : f32 to vector<32x30xf32>
    %214 = arith.mulf %213, %210 : vector<32x30xf32>
    %215 = arith.select %212, %210, %214 : vector<32x30xi1>, vector<32x30xf32>
    %c680 = arith.constant 680 : index
    %c0_89 = arith.constant 0 : index
    %216 = vector.load %arg1[%c680, %c0_89] : memref<1592x128xf32, #tpu.memory_space<vmem>>, vector<96x32xf32>
    %cst_90 = arith.constant dense<0.000000e+00> : vector<96x30xf32>
    %217 = tpu.matmul %216, %215, %cst_90 {dimension_numbers = #tpu.dot_dimension_numbers<[1], [0], [0], [1], [0, 0, 1, 1], [], []>} : vector<96x32xf32>, vector<32x30xf32>, vector<96x30xf32> -> vector<96x30xf32>
    %218 = vector.extract_strided_slice %217 {offsets = [0, 0], sizes = [32, 30], strides = [1, 1]} : vector<96x30xf32> to vector<32x30xf32>
    %cst_91 = arith.constant dense<0.000000e+00> : vector<32x30xf32>
    %219 = tpu.matmul %218, %58, %cst_91 {dimension_numbers = #tpu.dot_dimension_numbers<[1], [0], [0], [1], [0, 0, 1, 1], [], []>} : vector<32x30xf32>, vector<30x30xf32>, vector<32x30xf32> -> vector<32x30xf32>
    %220 = vector.extract_strided_slice %217 {offsets = [32, 0], sizes = [32, 30], strides = [1, 1]} : vector<96x30xf32> to vector<32x30xf32>
    %cst_92 = arith.constant dense<0.000000e+00> : vector<32x30xf32>
    %221 = tpu.matmul %220, %59, %cst_92 {dimension_numbers = #tpu.dot_dimension_numbers<[1], [0], [0], [1], [0, 0, 1, 1], [], []>} : vector<32x30xf32>, vector<30x30xf32>, vector<32x30xf32> -> vector<32x30xf32>
    %222 = arith.addf %219, %221 : vector<32x30xf32>
    %223 = vector.extract_strided_slice %217 {offsets = [64, 0], sizes = [32, 30], strides = [1, 1]} : vector<96x30xf32> to vector<32x30xf32>
    %cst_93 = arith.constant dense<0.000000e+00> : vector<32x30xf32>
    %224 = tpu.matmul %223, %60, %cst_93 {dimension_numbers = #tpu.dot_dimension_numbers<[1], [0], [0], [1], [0, 0, 1, 1], [], []>} : vector<32x30xf32>, vector<30x30xf32>, vector<32x30xf32> -> vector<32x30xf32>
    %225 = arith.addf %222, %224 : vector<32x30xf32>
    %c776 = arith.constant 776 : index
    %c0_94 = arith.constant 0 : index
    %226 = vector.load %arg1[%c776, %c0_94] : memref<1592x128xf32, #tpu.memory_space<vmem>>, vector<32x1xf32>
    %227 = vector.broadcast %226 : vector<32x1xf32> to vector<32x30xf32>
    %228 = arith.addf %225, %227 : vector<32x30xf32>
    %cst_95 = arith.constant dense<0.000000e+00> : vector<32xf32>
    %229 = vector.multi_reduction <add>, %228, %cst_95 [1] : vector<32x30xf32> to vector<32xf32>
    %230 = vector.shape_cast %229 : vector<32xf32> to vector<32x1xf32>
    %cst_96 = arith.constant 3.000000e+01 : f32
    %231 = vector.broadcast %cst_96 : f32 to vector<32x1xf32>
    %232 = arith.divf %230, %231 : vector<32x1xf32>
    %233 = vector.broadcast %232 : vector<32x1xf32> to vector<32x30xf32>
    %234 = arith.subf %228, %233 : vector<32x30xf32>
    %235 = arith.mulf %234, %234 : vector<32x30xf32>
    %cst_97 = arith.constant dense<0.000000e+00> : vector<32xf32>
    %236 = vector.multi_reduction <add>, %235, %cst_97 [1] : vector<32x30xf32> to vector<32xf32>
    %237 = vector.shape_cast %236 : vector<32xf32> to vector<32x1xf32>
    %cst_98 = arith.constant 3.000000e+01 : f32
    %238 = vector.broadcast %cst_98 : f32 to vector<32x1xf32>
    %239 = arith.divf %237, %238 : vector<32x1xf32>
    %240 = vector.broadcast %232 : vector<32x1xf32> to vector<32x30xf32>
    %241 = arith.subf %228, %240 : vector<32x30xf32>
    %cst_99 = arith.constant 9.99999974E-6 : f32
    %242 = vector.broadcast %cst_99 : f32 to vector<32x1xf32>
    %243 = arith.addf %239, %242 : vector<32x1xf32>
    %244 = math.rsqrt %243 : vector<32x1xf32>
    %245 = vector.broadcast %244 : vector<32x1xf32> to vector<32x30xf32>
    %246 = arith.mulf %241, %245 : vector<32x30xf32>
    %cst_100 = arith.constant 0.000000e+00 : f32
    %247 = vector.broadcast %cst_100 : f32 to vector<32x30xf32>
    %248 = arith.cmpf ogt, %246, %247 : vector<32x30xf32>
    %cst_101 = arith.constant 0.00999999977 : f32
    %249 = vector.broadcast %cst_101 : f32 to vector<32x30xf32>
    %250 = arith.mulf %249, %246 : vector<32x30xf32>
    %251 = arith.select %248, %246, %250 : vector<32x30xi1>, vector<32x30xf32>
    %252 = arith.addf %251, %179 : vector<32x30xf32>
    %cst_102 = arith.constant 0.000000e+00 : f32
    %253 = vector.broadcast %cst_102 : f32 to vector<32x30xf32>
    %254 = arith.cmpf ogt, %252, %253 : vector<32x30xf32>
    %cst_103 = arith.constant 0.00999999977 : f32
    %255 = vector.broadcast %cst_103 : f32 to vector<32x30xf32>
    %256 = arith.mulf %255, %252 : vector<32x30xf32>
    %257 = arith.select %254, %252, %256 : vector<32x30xi1>, vector<32x30xf32>
    %c432 = arith.constant 432 : index
    %c0_104 = arith.constant 0 : index
    %258 = vector.load %arg2[%c432, %c0_104] : memref<560x64xf32, #tpu.memory_space<vmem>>, vector<30x14xf32>
    %cst_105 = arith.constant dense<0.000000e+00> : vector<32x14xf32>
    %259 = tpu.matmul %257, %258, %cst_105 {dimension_numbers = #tpu.dot_dimension_numbers<[1], [0], [0], [1], [0, 0, 1, 1], [], []>} : vector<32x30xf32>, vector<30x14xf32>, vector<32x14xf32> -> vector<32x14xf32>
    %c464 = arith.constant 464 : index
    %c0_106 = arith.constant 0 : index
    %260 = vector.load %arg2[%c464, %c0_106] : memref<560x64xf32, #tpu.memory_space<vmem>>, vector<14x10xf32>
    %c480 = arith.constant 480 : index
    %c0_107 = arith.constant 0 : index
    %261 = vector.load %arg2[%c480, %c0_107] : memref<560x64xf32, #tpu.memory_space<vmem>>, vector<14x10xf32>
    %c496 = arith.constant 496 : index
    %c0_108 = arith.constant 0 : index
    %262 = vector.load %arg2[%c496, %c0_108] : memref<560x64xf32, #tpu.memory_space<vmem>>, vector<14x10xf32>
    %c808 = arith.constant 808 : index
    %c0_109 = arith.constant 0 : index
    %263 = vector.load %arg1[%c808, %c0_109] : memref<1592x128xf32, #tpu.memory_space<vmem>>, vector<192x32xf32>
    %cst_110 = arith.constant dense<0.000000e+00> : vector<192x14xf32>
    %264 = tpu.matmul %263, %259, %cst_110 {dimension_numbers = #tpu.dot_dimension_numbers<[1], [0], [0], [1], [0, 0, 1, 1], [], []>} : vector<192x32xf32>, vector<32x14xf32>, vector<192x14xf32> -> vector<192x14xf32>
    %265 = vector.extract_strided_slice %264 {offsets = [0, 0], sizes = [64, 14], strides = [1, 1]} : vector<192x14xf32> to vector<64x14xf32>
    %cst_111 = arith.constant dense<0.000000e+00> : vector<64x10xf32>
    %266 = tpu.matmul %265, %260, %cst_111 {dimension_numbers = #tpu.dot_dimension_numbers<[1], [0], [0], [1], [0, 0, 1, 1], [], []>} : vector<64x14xf32>, vector<14x10xf32>, vector<64x10xf32> -> vector<64x10xf32>
    %267 = vector.extract_strided_slice %264 {offsets = [64, 0], sizes = [64, 14], strides = [1, 1]} : vector<192x14xf32> to vector<64x14xf32>
    %cst_112 = arith.constant dense<0.000000e+00> : vector<64x10xf32>
    %268 = tpu.matmul %267, %261, %cst_112 {dimension_numbers = #tpu.dot_dimension_numbers<[1], [0], [0], [1], [0, 0, 1, 1], [], []>} : vector<64x14xf32>, vector<14x10xf32>, vector<64x10xf32> -> vector<64x10xf32>
    %269 = arith.addf %266, %268 : vector<64x10xf32>
    %270 = vector.extract_strided_slice %264 {offsets = [128, 0], sizes = [64, 14], strides = [1, 1]} : vector<192x14xf32> to vector<64x14xf32>
    %cst_113 = arith.constant dense<0.000000e+00> : vector<64x10xf32>
    %271 = tpu.matmul %270, %262, %cst_113 {dimension_numbers = #tpu.dot_dimension_numbers<[1], [0], [0], [1], [0, 0, 1, 1], [], []>} : vector<64x14xf32>, vector<14x10xf32>, vector<64x10xf32> -> vector<64x10xf32>
    %272 = arith.addf %269, %271 : vector<64x10xf32>
    %c1000 = arith.constant 1000 : index
    %c0_114 = arith.constant 0 : index
    %273 = vector.load %arg1[%c1000, %c0_114] : memref<1592x128xf32, #tpu.memory_space<vmem>>, vector<64x1xf32>
    %274 = vector.broadcast %273 : vector<64x1xf32> to vector<64x10xf32>
    %275 = arith.addf %272, %274 : vector<64x10xf32>
    %cst_115 = arith.constant dense<0.000000e+00> : vector<64xf32>
    %276 = vector.multi_reduction <add>, %275, %cst_115 [1] : vector<64x10xf32> to vector<64xf32>
    %277 = vector.shape_cast %276 : vector<64xf32> to vector<64x1xf32>
    %cst_116 = arith.constant 1.000000e+01 : f32
    %278 = vector.broadcast %cst_116 : f32 to vector<64x1xf32>
    %279 = arith.divf %277, %278 : vector<64x1xf32>
    %280 = vector.broadcast %279 : vector<64x1xf32> to vector<64x10xf32>
    %281 = arith.subf %275, %280 : vector<64x10xf32>
    %282 = arith.mulf %281, %281 : vector<64x10xf32>
    %cst_117 = arith.constant dense<0.000000e+00> : vector<64xf32>
    %283 = vector.multi_reduction <add>, %282, %cst_117 [1] : vector<64x10xf32> to vector<64xf32>
    %284 = vector.shape_cast %283 : vector<64xf32> to vector<64x1xf32>
    %cst_118 = arith.constant 1.000000e+01 : f32
    %285 = vector.broadcast %cst_118 : f32 to vector<64x1xf32>
    %286 = arith.divf %284, %285 : vector<64x1xf32>
    %287 = vector.broadcast %279 : vector<64x1xf32> to vector<64x10xf32>
    %288 = arith.subf %275, %287 : vector<64x10xf32>
    %cst_119 = arith.constant 9.99999974E-6 : f32
    %289 = vector.broadcast %cst_119 : f32 to vector<64x1xf32>
    %290 = arith.addf %286, %289 : vector<64x1xf32>
    %291 = math.rsqrt %290 : vector<64x1xf32>
    %292 = vector.broadcast %291 : vector<64x1xf32> to vector<64x10xf32>
    %293 = arith.mulf %288, %292 : vector<64x10xf32>
    %cst_120 = arith.constant 0.000000e+00 : f32
    %294 = vector.broadcast %cst_120 : f32 to vector<64x10xf32>
    %295 = arith.maximumf %293, %294 : vector<64x10xf32>
    %c512 = arith.constant 512 : index
    %c0_121 = arith.constant 0 : index
    %296 = vector.load %arg2[%c512, %c0_121] : memref<560x64xf32, #tpu.memory_space<vmem>>, vector<10x4xf32>
    %c528 = arith.constant 528 : index
    %c0_122 = arith.constant 0 : index
    %297 = vector.load %arg2[%c528, %c0_122] : memref<560x64xf32, #tpu.memory_space<vmem>>, vector<10x4xf32>
    %cst_123 = arith.constant dense<0.000000e+00> : vector<64x4xf32>
    %298 = tpu.matmul %295, %296, %cst_123 {dimension_numbers = #tpu.dot_dimension_numbers<[1], [0], [0], [1], [0, 0, 1, 1], [], []>} : vector<64x10xf32>, vector<10x4xf32>, vector<64x4xf32> -> vector<64x4xf32>
    %cst_124 = arith.constant dense<0.000000e+00> : vector<64x4xf32>
    %299 = tpu.matmul %295, %297, %cst_124 {dimension_numbers = #tpu.dot_dimension_numbers<[1], [0], [0], [1], [0, 0, 1, 1], [], []>} : vector<64x10xf32>, vector<10x4xf32>, vector<64x4xf32> -> vector<64x4xf32>
    %300 = arith.maximumf %298, %299 : vector<64x4xf32>
    %c1064 = arith.constant 1064 : index
    %c0_125 = arith.constant 0 : index
    %301 = vector.load %arg1[%c1064, %c0_125] : memref<1592x128xf32, #tpu.memory_space<vmem>>, vector<256x64xf32>
    %cst_126 = arith.constant dense<0.000000e+00> : vector<256x4xf32>
    %302 = tpu.matmul %301, %300, %cst_126 {dimension_numbers = #tpu.dot_dimension_numbers<[1], [0], [0], [1], [0, 0, 1, 1], [], []>} : vector<256x64xf32>, vector<64x4xf32>, vector<256x4xf32> -> vector<256x4xf32>
    %303 = vector.extract_strided_slice %302 {offsets = [0, 0], sizes = [128, 4], strides = [1, 1]} : vector<256x4xf32> to vector<128x4xf32>
    %c544 = arith.constant 544 : index
    %c0_127 = arith.constant 0 : index
    %304 = vector.load %arg2[%c544, %c0_127] : memref<560x64xf32, #tpu.memory_space<vmem>>, vector<4x2xf32>
    %cst_128 = arith.constant dense<0.000000e+00> : vector<128x2xf32>
    %305 = tpu.matmul %303, %304, %cst_128 {dimension_numbers = #tpu.dot_dimension_numbers<[1], [0], [0], [1], [0, 0, 1, 1], [], []>} : vector<128x4xf32>, vector<4x2xf32>, vector<128x2xf32> -> vector<128x2xf32>
    %306 = vector.extract_strided_slice %302 {offsets = [128, 0], sizes = [128, 4], strides = [1, 1]} : vector<256x4xf32> to vector<128x4xf32>
    %c552_129 = arith.constant 552 : index
    %c0_130 = arith.constant 0 : index
    %307 = vector.load %arg2[%c552_129, %c0_130] : memref<560x64xf32, #tpu.memory_space<vmem>>, vector<4x2xf32>
    %cst_131 = arith.constant dense<0.000000e+00> : vector<128x2xf32>
    %308 = tpu.matmul %306, %307, %cst_131 {dimension_numbers = #tpu.dot_dimension_numbers<[1], [0], [0], [1], [0, 0, 1, 1], [], []>} : vector<128x4xf32>, vector<4x2xf32>, vector<128x2xf32> -> vector<128x2xf32>
    %309 = arith.addf %305, %308 : vector<128x2xf32>
    %c1320 = arith.constant 1320 : index
    %c0_132 = arith.constant 0 : index
    %310 = vector.load %arg1[%c1320, %c0_132] : memref<1592x128xf32, #tpu.memory_space<vmem>>, vector<128x1xf32>
    %311 = vector.broadcast %310 : vector<128x1xf32> to vector<128x2xf32>
    %312 = arith.addf %309, %311 : vector<128x2xf32>
    %cst_133 = arith.constant 0.000000e+00 : f32
    %313 = vector.broadcast %cst_133 : f32 to vector<128x2xf32>
    %314 = arith.maximumf %312, %313 : vector<128x2xf32>
    %c1448 = arith.constant 1448 : index
    %c0_134 = arith.constant 0 : index
    %315 = vector.load %arg1[%c1448, %c0_134] : memref<1592x128xf32, #tpu.memory_space<vmem>>, vector<64x128xf32>
    %cst_135 = arith.constant dense<0.000000e+00> : vector<64x2xf32>
    %316 = tpu.matmul %315, %314, %cst_135 {dimension_numbers = #tpu.dot_dimension_numbers<[1], [0], [0], [1], [0, 0, 1, 1], [], []>} : vector<64x128xf32>, vector<128x2xf32>, vector<64x2xf32> -> vector<64x2xf32>
    %c1512 = arith.constant 1512 : index
    %c0_136 = arith.constant 0 : index
    %317 = vector.load %arg1[%c1512, %c0_136] : memref<1592x128xf32, #tpu.memory_space<vmem>>, vector<64x1xf32>
    %318 = vector.broadcast %317 : vector<64x1xf32> to vector<64x2xf32>
    %319 = arith.addf %316, %318 : vector<64x2xf32>
    %cst_137 = arith.constant 0.000000e+00 : f32
    %320 = vector.broadcast %cst_137 : f32 to vector<64x2xf32>
    %321 = arith.maximumf %319, %320 : vector<64x2xf32>
    %c1576 = arith.constant 1576 : index
    %c0_138 = arith.constant 0 : index
    %322 = vector.load %arg1[%c1576, %c0_138] : memref<1592x128xf32, #tpu.memory_space<vmem>>, vector<6x64xf32>
    %cst_139 = arith.constant dense<0.000000e+00> : vector<6x2xf32>
    %323 = tpu.matmul %322, %321, %cst_139 {dimension_numbers = #tpu.dot_dimension_numbers<[1], [0], [0], [1], [0, 0, 1, 1], [], []>} : vector<6x64xf32>, vector<64x2xf32>, vector<6x2xf32> -> vector<6x2xf32>
    %c1584 = arith.constant 1584 : index
    %c0_140 = arith.constant 0 : index
    %324 = vector.load %arg1[%c1584, %c0_140] : memref<1592x128xf32, #tpu.memory_space<vmem>>, vector<6x1xf32>
    %325 = vector.broadcast %324 : vector<6x1xf32> to vector<6x2xf32>
    %326 = arith.addf %323, %325 : vector<6x2xf32>
    %cst_141 = arith.constant 0.000000e+00 : f32
    %327 = vector.broadcast %cst_141 : f32 to vector<6x2xf32>
    %328 = arith.maximumf %326, %327 : vector<6x2xf32>
    %c0_142 = arith.constant 0 : index
    %c0_143 = arith.constant 0 : index
    %329 = vector.load %arg3[%c0_142, %c0_143] : memref<6x2xf32, #tpu.memory_space<vmem>>, vector<6x2xf32>
    tpu.vector_store %arg3[%c0_142, %c0_143], %328 {strides = array<i32>} : memref<6x2xf32, #tpu.memory_space<vmem>>, vector<6x2xf32>,
    return
  }
}

</mosaic_0001>

<bundles_post_ra>
// kernel: mtan_enc_forward.1
= control target key start
LH: loop header
LB: loop body
LE: loop exit
PB: predicated region body
PF: predicated region fallthrough
CT: control target
= control target key end

     0   :  { %v8075_v0 = vmov 0   ;;  %vm281_vm0 = vcmask 130048   ;;  %v8076_v60 = vmov 683565275   ;;  %v8077_v62 = vmov 2475754826   ;;  %s9881_s1 = inlined_call_operand.vmem [shape: f32[1592,128], index: 1, kind: input, shape index: {}]   ;;  %s9882_s0 = inlined_call_operand.vmem [shape: f32[32,64], index: 0, kind: input, shape index: {}]   ;;  %s9883_s2 = inlined_call_operand.vmem [shape: f32[560,64], index: 2, kind: input, shape index: {}]   ;;  %s9884_s3 = inlined_call_operand.vmem [shape: f32[6,2], index: 3, kind: output, shape index: {}]  }
   0x1   :  { %7988 = vset.pattern.permute.xlu1 %v8075_v0  ;;  %7987 = vset.pattern.permute.xlu0 %v8075_v0  ;;  %v21_v1 = vld [vmem:[%s9881_s1 + $0x70] sm:$0xff]  ;;  %v19_v2 = vld [vmem:[%s9881_s1 + $0x60] sm:$0xff]  ;;  %v20_v3 = vld [vmem:[%s9881_s1 + $0x68] sm:$0xff]  ;;  %v8078_v0 = vmov 2131351028  }
   0x2   :  { %47 = vperm.xlu1 %7988, %v21_v1   ;;  %31 = vperm.xlu0 %7987, %v19_v2   ;;  %v18_v4 = vld [vmem:[%s9881_s1 + $0x58] sm:$0xff]  ;;  %v16_v5 = vld [vmem:[%s9882_s0 + $0x10] sm:$0xff]  ;;  %v15_v6 = vld [vmem:[%s9882_s0 + $0x8] sm:$0xff]  ;;  %v8079_v2 = vmov 2102212464  }
   0x3   :  { %v269_v7 = vld [vmem:[%s9881_s1 + $0x78] sm:$0xff]  ;;  %v270_v8 = vld [vmem:[%s9881_s1 + $0x80] sm:$0xff]  ;;  %v878_v11 = vld [vmem:[%s9881_s1 + $0x88] sm:$0xff] }
   0x4   :  { %v880_v9 = vld [vmem:[%s9881_s1 + $0x98] sm:$0xff]  ;;  %v881_v10 = vld [vmem:[%s9881_s1 + $0xa0] sm:$0xff]  ;;  %v879_v12 = vld [vmem:[%s9881_s1 + $0x90] sm:$0xff] }
   0x5   :  { %v1510_v13 = vld [vmem:[%s9881_s1 + $0x110] sm:$0xff]  ;;  %v1509_v14 = vld [vmem:[%s9881_s1 + $0x108] sm:$0xff]  ;;  %v1512_v15 = vld [vmem:[%s9881_s1 + $0x120] sm:$0xff] }
   0x6   :  { %42 = vperm.xlu1 %7988, %v20_v3   ;;  %26 = vperm.xlu0 %7987, %v18_v4   ;;  %v1511_v16 = vld [vmem:[%s9881_s1 + $0x118] sm:$0xff]  ;;  %v267_v17 = vld [vmem:[%s9881_s1] sm:$0xff]  ;;  %v6449_v30 = vld [vmem:[%s9881_s1 + $0x48] ss:$0 sm:$0xff] }
   0x7   :  { %7205 = vmatprep.mubr.msk.f32.mxu1 %vm281_vm0, %v267_v17  ;;  %v6437_v18 = vld [vmem:[%s9882_s0] ss:$0 sm:$0xff] }
   0x8   :  { %v6448_v27 = vld [vmem:[%s9881_s1 + $0x40] ss:$0 sm:$0xff] }
   0xa   :  { %370 = vperm.xlu1 %7988, %v16_v5   ;;  %365 = vperm.xlu0 %7987, %v15_v6  }
   0xe   :  { %273 = vperm.xlu1 %7988, %v269_v7   ;;  %278 = vperm.xlu0 %7987, %v270_v8   ;;  %v8080_v7 = vmov 920167782  }
  0x12   :  { %894 = vperm.xlu1 %7988, %v880_v9   ;;  %899 = vperm.xlu0 %7987, %v881_v10  }
  0x16   :  { %884 = vperm.xlu1 %7988, %v878_v11   ;;  %889 = vperm.xlu0 %7987, %v879_v12  }
  0x1a   :  { %1520 = vperm.xlu1 %7988, %v1510_v13   ;;  %1515 = vperm.xlu0 %7987, %v1509_v14  }
  0x1e   :  { %1530 = vperm.xlu1 %7988, %v1512_v15   ;;  %1525 = vperm.xlu0 %7987, %v1511_v16  }
  0x7d   :  { %v48_v19 = vpop.permute.xlu1 %47  ;;  %v32_v20 = vpop.permute.xlu0 %31 }
  0x7e   :  { %v39_v21 = vmul.f32 %v6437_v18, %v32_v20 }
  0x80   :  { %v8159_v22 = vadd.f32 %v48_v19, %v39_v21 }
  0x81   :  { %v43_v23 = vpop.permute.xlu1 %42  ;;  %v27_v24 = vpop.permute.xlu0 %26 }
  0x82   :  { %v164_v25 = vand.u32 2139095040, %v8159_v22  ;;  %v38_v26 = vmul.f32 %v6437_v18, %v27_v24  ;;  %v161_v37 = vand.u32 2147483647, %v8159_v22  ;;  %v8081_v24 = vmov 1326507024  }
  0x84   :  { %v165_v28 = vshrl.u32 %v164_v25, 23  ;;  %v8165_v29 = vadd.f32 %v43_v23, %v38_v26  ;;  %v168_v47 = vand.u32 8388607, %v161_v37 }
  0x85   :  { %v371_v31 = vpop.permute.xlu1 %370  ;;  %v366_v32 = vpop.permute.xlu0 %365 }
  0x86   :  { %v6442_v33 = vadd.s32 4294967169, %v165_v28  ;;  %v60_v34 = vand.u32 2139095040, %v8165_v29  ;;  %v378_v35 = vmul.f32 %v6448_v27, %v371_v31  ;;  %v377_v36 = vmul.f32 %v6448_v27, %v366_v32 }
  0x87   :  { %v57_v38 = vand.u32 2147483647, %v8165_v29  ;;  %v169_v56 = vor.u32 8388608, %v168_v47 }
  0x88   :  { %v171_v39 = vadd.s32 1, %v6442_v33  ;;  %v61_v40 = vshrl.u32 %v60_v34, 23  ;;  %v8173_v41 = vadd.f32 %v6449_v30, %v378_v35  ;;  %v8175_v42 = vadd.f32 %v6449_v30, %v377_v36 }
  0x89   :  { %v64_v51 = vand.u32 8388607, %v57_v38  ;;  %v8191_v12 = vshll.u32 %v169_v56, 8 }
  0x8a   :  { %vm172_vm1 = vcmp.gt.s32.totalorder %v171_v39, 0  ;;  %v6438_v43 = vadd.s32 4294967169, %v61_v40  ;;  %v495_v44 = vand.u32 2139095040, %v8173_v41  ;;  %v391_v45 = vand.u32 2139095040, %v8175_v42 }
  0x8b   :  { %v173_v46 = vsel %vm172_vm1, %v171_v39, 0  ;;  %v65_v59 = vor.u32 8388608, %v64_v51  ;;  %v388_v16 = vand.u32 2147483647, %v8175_v42 }
  0x8c   :  { %v175_v48 = vand.u32 31, %v173_v46  ;;  %v67_v49 = vadd.s32 1, %v6438_v43  ;;  %v496_v50 = vshrl.u32 %v495_v44, 23  ;;  %v392_v52 = vshrl.u32 %v391_v45, 23 }
  0x8d   :  { %v174_v57 = vshrl.u32 %v173_v46, 5  ;;  %v8193_v15 = vshll.u32 %v65_v59, 8 }
  0x8e   :  { %v176_v53 = vsub.s32 32, %v175_v48  ;;  %vm68_vm2 = vcmp.gt.s32.totalorder %v67_v49, 0  ;;  %v6450_v55 = vadd.s32 4294967169, %v392_v52  ;;  %v6454_v58 = vadd.s32 4294967169, %v496_v50 }
  0x8f   :  { %v69_v54 = vsel %vm68_vm2, %v67_v49, 0  ;;  %v178_v61 = vshll.u32 %v8076_v60, %v175_v48  ;;  %v181_v5 = vshll.u32 %v8077_v62, %v175_v48  ;;  %v184_v6 = vshll.u32 %v8078_v0, %v175_v48 }
  0x90   :  { %v179_v63 = vshrl.u32 %v8077_v62, %v176_v53  ;;  %v182_v1 = vshrl.u32 %v8078_v0, %v176_v53  ;;  %v185_v3 = vshrl.u32 %v8079_v2, %v176_v53  ;;  %v71_v4 = vand.u32 31, %v69_v54 }
  0x91   :  { %v188_v8 = vshrl.u32 %v8080_v7, %v176_v53  ;;  %v398_v9 = vadd.s32 1, %v6450_v55  ;;  %v187_v11 = vshll.u32 %v8079_v2, %v175_v48  ;;  %v8196_v17 = vshrl.u32 %v69_v54, 5 }
  0x92   :  { %v180_v10 = vor.u32 %v179_v63, %v178_v61  ;;  %v183_v13 = vor.u32 %v182_v1, %v181_v5  ;;  %v186_v14 = vor.u32 %v185_v3, %v184_v6  ;;  %v8198_v18 = vadd.s32 1, %v6454_v58 }
  0x93   :  { %v177_v19 = vshrl.u32 %v8076_v60, %v176_v53  ;;  %v189_v20 = vor.u32 %v188_v8, %v187_v11  ;;  %v72_v21 = vsub.s32 32, %v71_v4  ;;  %v190_v23 = vshll.u32 %v8080_v7, %v175_v48 }
  0x94   :  { %v191_v25 = vshrl.u32 %v8081_v24, %v176_v53  ;;  %vm193_vm3 = vcmp.lt.s32.totalorder %v174_v57, 1  ;;  %vm399_vm4 = vcmp.gt.s32.totalorder %v398_v9, 0  ;;  %vm195_vm5 = vcmp.lt.s32.totalorder %v174_v57, 3 }
  0x95   :  { %vm196_vm6 = vcmp.lt.s32.totalorder %v174_v57, 4  ;;  %v197_v26 = vsel %vm193_vm3, %v177_v19, %v180_v10  ;;  %v201_v30 = vsel %vm193_vm3, %v180_v10, %v183_v13  ;;  %vm194_vm7 = vcmp.lt.s32.totalorder %v174_v57, 2 }
  0x96   :  { %v192_v27 = vor.u32 %v191_v25, %v190_v23  ;;  %v198_v28 = vsel %vm196_vm6, %v186_v14, 2102212464  ;;  %v202_v31 = vsel %vm196_vm6, %v189_v20, 920167782  ;;  %v205_v34 = vsel %vm193_vm3, %v183_v13, %v186_v14 }
  0x97   :  { %v199_v32 = vsel %vm195_vm5, %v183_v13, %v198_v28  ;;  %v203_v33 = vsel %vm195_vm5, %v186_v14, %v202_v31  ;;  %v8203_v35 = vsel %vm399_vm4, %v398_v9, 0  ;;  %v74_v46 = vshll.u32 %v8076_v60, %v71_v4 }
  0x98   :  { %v200_v36 = vsel %vm194_vm7, %v197_v26, %v199_v32  ;;  %v204_v39 = vsel %vm194_vm7, %v201_v30, %v203_v33  ;;  %v206_v40 = vsel %vm196_vm6, %v192_v27, 1326507024  ;;  %v75_v48 = vshrl.u32 %v8077_v62, %v72_v21 }
  0x99   :  { %v207_v43 = vsel %vm195_vm5, %v189_v20, %v206_v40  ;;  %v8206_v44 = vmul.u32.u64.low %v8191_v12, %v204_v39  ;;  %v8207_v45 = vmul.u32.u64.high %v8191_v12, %v204_v39, %v8206_v44  ;;  %v77_v49 = vshll.u32 %v8077_v62, %v71_v4 }
  0x9a   :  { %v208_v47 = vsel %vm194_vm7, %v205_v34, %v207_v43  ;;  %v78_v50 = vshrl.u32 %v8078_v0, %v72_v21  ;;  %v80_v53 = vshll.u32 %v8078_v0, %v71_v4  ;;  %v81_v54 = vshrl.u32 %v8079_v2, %v72_v21 }
  0x9b   :  { %v8215_v51 = vmul.u32.u64.low %v8191_v12, %v208_v47  ;;  %v8216_v52 = vmul.u32.u64.high %v8191_v12, %v208_v47, %v8215_v51  ;;  %v76_v55 = vor.u32 %v75_v48, %v74_v46  ;;  %v83_v57 = vshll.u32 %v8079_v2, %v71_v4 }
  0x9c   :  { %v79_v56 = vor.u32 %v78_v50, %v77_v49  ;;  %v84_v58 = vshrl.u32 %v8080_v7, %v72_v21  ;;  %v219_v59 = vadd.s32 1, %v8207_v45  ;;  %v82_v61 = vor.u32 %v81_v54, %v80_v53 }
  0x9d   :  { %v86_v63 = vshll.u32 %v8080_v7, %v71_v4  ;;  %v87_v1 = vshrl.u32 %v8081_v24, %v72_v21  ;;  %v402_v3 = vand.u32 31, %v8203_v35  ;;  %v216_v5 = vmul.u32 %v8191_v12, %v200_v36 }
  0x9e   :  { %v73_v6 = vshrl.u32 %v8076_v60, %v72_v21  ;;  %v85_v8 = vor.u32 %v84_v58, %v83_v57  ;;  %vm218_vm8 = vc.u32 %v8216_v52, %v8206_v44  ;;  %vm89_vm9 = vcmp.lt.s32.totalorder %v8196_v17, 1 }
  0x9f   :  { %v88_v9 = vor.u32 %v87_v1, %v86_v63  ;;  %vm92_vm10 = vcmp.lt.s32.totalorder %v8196_v17, 4  ;;  %v220_v10 = vsel %vm218_vm8, %v219_v59, %v8207_v45  ;;  %vm90_vm11 = vcmp.lt.s32.totalorder %v8196_v17, 2 }
  0xa0   :  { %v94_v4 = vsel %vm92_vm10, %v82_v61, 2102212464  ;;  %v97_v11 = vsel %vm89_vm9, %v76_v55, %v79_v56  ;;  %v221_v13 = vadd.s32 %v220_v10, %v216_v5  ;;  %vm91_vm12 = vcmp.lt.s32.totalorder %v8196_v17, 3 }
  0xa1   :  { %v98_v12 = vsel %vm92_vm10, %v85_v8, 920167782  ;;  %v101_v14 = vsel %vm89_vm9, %v79_v56, %v82_v61  ;;  %v93_v19 = vsel %vm89_vm9, %v73_v6, %v76_v55  ;;  %v95_v20 = vsel %vm91_vm12, %v79_v56, %v94_v4 }
  0xa2   :  { %v99_v21 = vsel %vm91_vm12, %v82_v61, %v98_v12  ;;  %v102_v23 = vsel %vm92_vm10, %v88_v9, 1326507024  ;;  %v403_v25 = vsub.s32 32, %v402_v3  ;;  %v222_v26 = vadd.s32 536870912, %v221_v13 }
  0xa3   :  { %v100_v27 = vsel %vm90_vm11, %v97_v11, %v99_v21  ;;  %v103_v28 = vsel %vm91_vm12, %v85_v8, %v102_v23  ;;  %vm503_vm13 = vcmp.gt.s32.totalorder %v8198_v18, 0  ;;  %v96_v34 = vsel %vm90_vm11, %v93_v19, %v95_v20 }
  0xa4   :  { %v104_v30 = vsel %vm90_vm11, %v101_v14, %v103_v28  ;;  %v8241_v31 = vmul.u32.u64.low %v8193_v15, %v100_v27  ;;  %v8242_v32 = vmul.u32.u64.high %v8193_v15, %v100_v27, %v8241_v31  ;;  %v8245_v33 = vshrl.u32 %v222_v26, 30 }
  0xa5   :  { %v8250_v36 = vmul.u32.u64.low %v8193_v15, %v104_v30  ;;  %v8251_v39 = vmul.u32.u64.high %v8193_v15, %v104_v30, %v8250_v36  ;;  %v8254_v40 = vsel %vm503_vm13, %v8198_v18, 0  ;;  %v395_v45 = vand.u32 8388607, %v388_v16 }
  0xa6   :  { %v224_v43 = vshll.u32 %v8245_v33, 30  ;;  %v409_v46 = vshrl.u32 %v8078_v0, %v403_v25  ;;  %v112_v47 = vmul.u32 %v8193_v15, %v96_v34  ;;  %v115_v48 = vadd.s32 1, %v8242_v32 }
  0xa7   :  { %v412_v17 = vshrl.u32 %v8079_v2, %v403_v25  ;;  %v415_v49 = vshrl.u32 %v8080_v7, %v403_v25  ;;  %vm114_vm14 = vc.u32 %v8251_v39, %v8241_v31  ;;  %v406_v18 = vshrl.u32 %v8077_v62, %v403_v25 }
  0xa8   :  { %v225_v50 = vsub.s32 %v221_v13, %v224_v43  ;;  %v408_v51 = vshll.u32 %v8077_v62, %v402_v3  ;;  %v401_v53 = vshrl.u32 %v8203_v35, 5  ;;  %v116_v54 = vsel %vm114_vm14, %v115_v48, %v8242_v32 }
  0xa9   :  { %v411_v15 = vshll.u32 %v8078_v0, %v402_v3  ;;  %v414_v55 = vshll.u32 %v8079_v2, %v402_v3  ;;  %v117_v57 = vadd.s32 %v116_v54, %v112_v47  ;;  %v405_v58 = vshll.u32 %v8076_v60, %v402_v3 }
  0xaa   :  { %v227_v56 = vsub.s32 0, %v225_v50  ;;  %v410_v59 = vor.u32 %v409_v46, %v408_v51  ;;  %v417_v1 = vshll.u32 %v8080_v7, %v402_v3  ;;  %v418_v5 = vshrl.u32 %v8081_v24, %v403_v25 }
  0xab   :  { %v413_v61 = vor.u32 %v412_v17, %v411_v15  ;;  %v416_v63 = vor.u32 %v415_v49, %v414_v55  ;;  %v118_v8 = vadd.s32 536870912, %v117_v57  ;;  %v407_v35 = vor.u32 %v406_v18, %v405_v58 }
  0xac   :  { %v6443_v6 = vmin.u32 %v227_v56, %v225_v50  ;;  %v8276_v9 = vand.u32 31, %v8254_v40  ;;  %v217_v10 = vadd.s32 %v8206_v44, %v8216_v52  ;;  %v419_v4 = vor.u32 %v418_v5, %v417_v1 }
  0xad   :  { %v396_v13 = vor.u32 8388608, %v395_v45  ;;  %vm420_vm15 = vcmp.lt.s32.totalorder %v401_v53, 1  ;;  %vm423_vm1 = vcmp.lt.s32.totalorder %v401_v53, 4  ;;  %v8280_v12 = vshrl.u32 %v118_v8, 30 }
  0xae   :  { %v229_v11 = vclz %v6443_v6  ;;  %vm422_vm2 = vcmp.lt.s32.totalorder %v401_v53, 3  ;;  %v429_v3 = vsel %vm423_vm1, %v416_v63, 920167782  ;;  %v432_v14 = vsel %vm420_vm15, %v410_v59, %v413_v61 }
  0xaf   :  { %v428_v20 = vsel %vm420_vm15, %v407_v35, %v410_v59  ;;  %v430_v21 = vsel %vm422_vm2, %v413_v61, %v429_v3  ;;  %v433_v23 = vsel %vm423_vm1, %v419_v4, 1326507024  ;;  %v120_v26 = vshll.u32 %v8280_v12, 30 }
  0xb0   :  { %v6444_v19 = vadd.s32 4294967294, %v229_v11  ;;  %vm421_vm3 = vcmp.lt.s32.totalorder %v401_v53, 2  ;;  %v425_v44 = vsel %vm423_vm1, %v413_v61, 2102212464  ;;  %v434_v52 = vsel %vm422_vm2, %v416_v63, %v433_v23 }
  0xb1   :  { %v247_v27 = vsub.s32 4, %v8245_v33  ;;  %v404_v28 = vshrl.u32 %v8076_v60, %v403_v25  ;;  %v435_v30 = vsel %vm421_vm3, %v432_v14, %v434_v52  ;;  %v121_v34 = vsub.s32 %v117_v57, %v120_v26 }
  0xb2   :  { %vm6445_vm4 = vcmp.lt.s32.totalorder %v6444_v19, 0  ;;  %v431_v36 = vsel %vm421_vm3, %v428_v20, %v430_v21  ;;  %v436_v43 = vshll.u32 %v396_v13, 8  ;;  %v426_v48 = vsel %vm422_vm2, %v410_v59, %v425_v44 }
  0xb3   :  { %v232_v32 = vsel %vm6445_vm4, 0, %v6444_v19  ;;  %v424_v47 = vsel %vm420_vm15, %v404_v28, %v407_v35  ;;  %v123_v49 = vsub.s32 0, %v121_v34  ;;  %vm163_vm5 = vcmp.lt.s32.totalorder %v8159_v22, 0 }
  0xb4   :  { %v233_v45 = vsub.s32 32, %v232_v32  ;;  %v237_v46 = vsub.s32 4294967266, %v232_v32  ;;  %v234_v17 = vshll.u32 %v225_v50, %v232_v32  ;;  %v248_v59 = vsel %vm163_vm5, %v247_v27, %v8245_v33 }
  0xb5   :  { %v8293_v18 = vmul.u32.u64.low %v436_v43, %v435_v30  ;;  %v8294_v51 = vmul.u32.u64.high %v436_v43, %v435_v30, %v8293_v18  ;;  %v8296_v15 = vmul.u32.u64.low %v436_v43, %v431_v36  ;;  %v8297_v55 = vmul.u32.u64.high %v436_v43, %v431_v36, %v8296_v15 }
  0xb6   :  { %v235_v54 = vshrl.u32 %v217_v10, %v233_v45  ;;  %v238_v25 = vadd.s32 127, %v237_v46  ;;  %v6439_v56 = vmin.u32 %v123_v49, %v121_v34  ;;  %v427_v61 = vsel %vm421_vm3, %v424_v47, %v426_v48 }
  0xb7   :  { %v492_v63 = vand.u32 2147483647, %v8173_v41  ;;  %v507_v1 = vsub.s32 32, %v8276_v9  ;;  %vm8309_vm6 = vcmp.le.f32.partialorder %v161_v37, 0.7853982  ;;  %vm445_vm7 = vc.u32 %v8294_v51, %v8296_v15 }
  0xb8   :  { %v236_v57 = vor.u32 %v235_v54, %v234_v17  ;;  %v239_v58 = vshll.u32 %v238_v25, 23  ;;  %v125_v50 = vclz %v6439_v56  ;;  %v8316_v8 = vshrl.u32 %v8254_v40, 5 }
  0xb9   :  { %v113_v33 = vadd.s32 %v8241_v31, %v8251_v39  ;;  %v446_v35 = vadd.s32 1, %v8297_v55  ;;  %v250_v37 = vsel %vm8309_vm6, 0, %v248_v59  ;;  %v443_v11 = vmul.u32 %v436_v43, %v427_v61 }
  0xba   :  { %v240_v6 = vor.u32 4788187, %v239_v58  ;;  %v6440_v53 = vadd.s32 4294967294, %v125_v50  ;;  %v243_v4 = vcvt.s32.f32 %v236_v57  ;;  %v499_v3 = vand.u32 8388607, %v492_v63 }
  0xbb   :  { %v447_v13 = vsel %vm445_vm7, %v446_v35, %v8297_v55  ;;  %v509_v40 = vshll.u32 %v8076_v60, %v8276_v9  ;;  %v510_v19 = vshrl.u32 %v8077_v62, %v507_v1  ;;  %v512_v23 = vshll.u32 %v8077_v62, %v8276_v9 }
  0xbc   :  { %v241_v10 = vand.u32 2147483647, %v240_v6  ;;  %vm6441_vm8 = vcmp.lt.s32.totalorder %v6440_v53, 0  ;;  %v448_v39 = vadd.s32 %v447_v13, %v443_v11  ;;  %v513_v26 = vshrl.u32 %v8078_v0, %v507_v1 }
  0xbd   :  { %v128_v31 = vsel %vm6441_vm8, 0, %v6440_v53  ;;  %v515_v28 = vshll.u32 %v8078_v0, %v8276_v9  ;;  %v516_v36 = vshrl.u32 %v8079_v2, %v507_v1  ;;  %v519_v43 = vshrl.u32 %v8080_v7, %v507_v1 }
  0xbe   :  { %v244_v14 = vmul.f32 %v243_v4, %v241_v10  ;;  %v129_v20 = vsub.s32 32, %v128_v31  ;;  %v133_v21 = vsub.s32 4294967266, %v128_v31  ;;  %v130_v52 = vshll.u32 %v121_v34, %v128_v31 }
  0xbf   :  { %v449_v27 = vadd.s32 536870912, %v448_v39  ;;  %v511_v62 = vor.u32 %v510_v19, %v509_v40  ;;  %v518_v47 = vshll.u32 %v8079_v2, %v8276_v9  ;;  %v522_v17 = vshrl.u32 %v8081_v24, %v507_v1 }
  0xc0   :  { %v245_v44 = vxor.u32 2147483648, %v244_v14  ;;  %v131_v30 = vshrl.u32 %v113_v33, %v129_v20  ;;  %v134_v32 = vadd.s32 127, %v133_v21  ;;  %vm59_vm9 = vcmp.lt.s32.totalorder %v8165_v29, 0 }
  0xc1   :  { %v8338_v46 = vshrl.u32 %v449_v27, 30  ;;  %v514_v18 = vor.u32 %v513_v26, %v512_v23  ;;  %v521_v54 = vshll.u32 %v8080_v7, %v8276_v9  ;;  %vm8352_vm10 = vcmp.le.f32.partialorder %v57_v38, 0.7853982 }
  0xc2   :  { %v246_v45 = vsel %vm163_vm5, %v245_v44, %v244_v14  ;;  %v132_v0 = vor.u32 %v131_v30, %v130_v52  ;;  %v135_v48 = vshll.u32 %v134_v32, 23  ;;  %v517_v55 = vor.u32 %v516_v36, %v515_v28 }
  0xc3   :  { %v249_v34 = vsel %vm8309_vm6, %v8159_v22, %v246_v45  ;;  %v451_v49 = vshll.u32 %v8338_v46, 30  ;;  %v520_v56 = vor.u32 %v519_v43, %v518_v47  ;;  %v254_v24 = vadd.s32 3, %v250_v37 }
  0xc4   :  { %7989 = vcosq.f32 %v249_v34  ;;  %v136_v25 = vor.u32 4788187, %v135_v48  ;;  %v143_v57 = vsub.s32 4, %v8280_v12  ;;  %v500_v59 = vor.u32 8388608, %v499_v3 }
  0xc5   :  { %7991 = vsinq.f32 %v249_v34  ;;  %v8357_v58 = vsub.s32 %v448_v39, %v451_v49  ;;  %v139_v61 = vcvt.s32.f32 %v132_v0  ;;  %v523_v5 = vor.u32 %v522_v17, %v521_v54 }
  0xc6   :  { %v137_v50 = vand.u32 2147483647, %v136_v25  ;;  %vm524_vm11 = vcmp.lt.s32.totalorder %v8316_v8, 1  ;;  %v508_v38 = vshrl.u32 %v8076_v60, %v507_v1  ;;  %vm527_vm12 = vcmp.lt.s32.totalorder %v8316_v8, 4 }
  0xc7   :  { %v454_v7 = vsub.s32 0, %v8357_v58  ;;  %v532_v9 = vsel %vm524_vm11, %v511_v62, %v514_v18  ;;  %vm526_vm13 = vcmp.lt.s32.totalorder %v8316_v8, 3  ;;  %v529_v33 = vsel %vm527_vm12, %v517_v55, 2102212464 }
  0xc8   :  { %v140_v6 = vmul.f32 %v139_v61, %v137_v50  ;;  %v533_v53 = vsel %vm527_vm12, %v520_v56, 920167782  ;;  %vm525_vm14 = vcmp.lt.s32.totalorder %v8316_v8, 2  ;;  %v536_v60 = vsel %vm524_vm11, %v514_v18, %v517_v55 }
  0xc9   :  { %v6451_v35 = vmin.u32 %v454_v7, %v8357_v58  ;;  %v534_v10 = vsel %vm526_vm13, %v517_v55, %v533_v53  ;;  %v537_v37 = vsel %vm527_vm12, %v523_v5, 1326507024  ;;  %v540_v11 = vshll.u32 %v500_v59, 8 }
  0xca   :  { %v141_v1 = vxor.u32 2147483648, %v140_v6  ;;  %v535_v4 = vsel %vm525_vm14, %v532_v9, %v534_v10  ;;  %v255_v13 = vand.u32 3, %v254_v24  ;;  %v528_v40 = vsel %vm524_vm11, %v508_v38, %v511_v62 }
  0xcb   :  { %v456_v3 = vclz %v6451_v35  ;;  %v530_v14 = vsel %vm526_vm13, %v514_v18, %v529_v33  ;;  %v538_v39 = vsel %vm526_vm13, %v520_v56, %v537_v37  ;;  %v144_v21 = vsel %vm59_vm9, %v143_v57, %v8280_v12 }
  0xcc   :  { %v142_v31 = vsel %vm59_vm9, %v141_v1, %v140_v6  ;;  %v8382_v19 = vmul.u32.u64.low %v540_v11, %v535_v4  ;;  %v8383_v20 = vmul.u32.u64.high %v540_v11, %v535_v4, %v8382_v19  ;;  %v539_v44 = vsel %vm525_vm14, %v536_v60, %v538_v39 }
  0xcd   :  { %v145_v23 = vsel %vm8352_vm10, %v8165_v29, %v142_v31  ;;  %v6452_v26 = vadd.s32 4294967294, %v456_v3  ;;  %v52_v52 = vlaneseq  ;;  %vm257_vm15 = vcmp.eq.s32.totalorder %v255_v13, 0 }
  0xce   :  { %7993 = vcosq.f32 %v145_v23  ;;  %v8394_v27 = vmul.u32.u64.low %v540_v11, %v539_v44  ;;  %v8395_v28 = vmul.u32.u64.high %v540_v11, %v539_v44, %v8394_v27  ;;  %v531_v30 = vsel %vm525_vm14, %v528_v40, %v530_v14 }
  0xcf   :  { %7995 = vsinq.f32 %v145_v23  ;;  %vm6453_vm1 = vcmp.lt.s32.totalorder %v6452_v26, 0  ;;  %vm260_vm2 = vcmp.eq.s32.totalorder %v255_v13, 2  ;;  %v146_v32 = vsel %vm8352_vm10, 0, %v144_v21  ;;  %v599_v21 = vld [vmem:[%s9881_s1 + $0x18] sm:$0xff] }
  0xd0   :  { %v459_v36 = vsel %vm6453_vm1, 0, %v6452_v26  ;;  %v550_v43 = vadd.s32 1, %v8383_v20  ;;  %v444_v47 = vadd.s32 %v8296_v15, %v8294_v51  ;;  %v547_v8 = vmul.u32 %v540_v11, %v531_v30 }
  0xd1   :  { %v7990_v12 = vpop.eup %7989  ;;  %v460_v34 = vsub.s32 32, %v459_v36  ;;  %v464_v0 = vsub.s32 4294967266, %v459_v36  ;;  %v461_v17 = vshll.u32 %v8357_v58, %v459_v36  ;;  %vm549_vm3 = vc.u32 %v8395_v28, %v8382_v19 }
  0xd2   :  { %v7992_v45 = vpop.eup %7991  ;;  %v261_v62 = vxor.u32 2147483648, %v7990_v12  ;;  %v551_v2 = vsel %vm549_vm3, %v550_v43, %v8383_v20  ;;  %vm253_vm4 = vweird.f32 %v8159_v22  ;;  %vm256_vm5 = vcmp.lt.s32.totalorder %v255_v13, 2  ;;  %v6458_v13 = vld [vmem:[%s9881_s1 + $0x50] ss:$0 sm:$0xff] }
  0xd3   :  { %v258_v48 = vxor.u32 2147483648, %v7992_v45  ;;  %v462_v18 = vshrl.u32 %v444_v47, %v460_v34  ;;  %v465_v54 = vadd.s32 127, %v464_v0  ;;  %v552_v51 = vadd.s32 %v551_v2, %v547_v8 }
  0xd4   :  { %v262_v49 = vsel %vm260_vm2, %v261_v62, %v7992_v45  ;;  %v150_v55 = vadd.s32 3, %v146_v32  ;;  %v53_v50 = vshrl.u32 %v52_v52, 7  ;;  %vm390_vm8 = vcmp.lt.s32.totalorder %v8175_v42, 0 }
  0xd5   :  { %v259_v25 = vsel %vm257_vm15, %v7990_v12, %v258_v48  ;;  %v463_v56 = vor.u32 %v462_v18, %v461_v17  ;;  %v466_v24 = vshll.u32 %v465_v54, 23  ;;  %v553_v58 = vadd.s32 536870912, %v552_v51 }
  0xd6   :  { %v263_v15 = vsel %vm256_vm5, %v259_v25, %v262_v49  ;;  %v151_v5 = vand.u32 3, %v150_v55  ;;  %vm55_vm6 = vcmp.eq.s32.totalorder %v53_v50, 0  ;;  %v474_v4 = vsub.s32 4, %v8338_v46 }
  0xd7   :  { %v264_v57 = vsel %vm253_vm4, nan, %v263_v15  ;;  %v467_v59 = vor.u32 4788187, %v466_v24  ;;  %v8411_v61 = vshrl.u32 %v553_v58, 30  ;;  %v470_v22 = vcvt.s32.f32 %v463_v56 }
  0xd8   :  { %7201 = vmatprep.subr.mxu1 %v264_v57  ;;  %vm156_vm7 = vcmp.eq.s32.totalorder %v151_v5, 2  ;;  %vm153_vm9 = vcmp.eq.s32.totalorder %v151_v5, 0  ;;  %vm152_vm10 = vcmp.lt.s32.totalorder %v151_v5, 2  ;;  %vm8418_vm11 = vcmp.le.f32.partialorder %v388_v16, 0.7853982  ;;  %v268_v16 = vld [vmem:[%s9881_s1 + $0x8] sm:$0xff] }
  0xd9   :  { %7202 = vmatpush3.msra.mxu1 %v264_v57  ;;  %v468_v7 = vand.u32 2147483647, %v467_v59  ;;  %v555_v38 = vshll.u32 %v8411_v61, 30  ;;  %vm149_vm12 = vweird.f32 %v8165_v29  ;;  %v475_v23 = vsel %vm390_vm8, %v474_v4, %v8338_v46 }
  0xda   :  { %v477_v27 = vsel %vm8418_vm11, 0, %v475_v23  ;;  %v548_v12 = vadd.s32 %v8382_v19, %v8395_v28  ;;  %v386_v17 = vand.u32 127, %v52_v52  ;;  %vm480_vm3 = vweird.f32 %v8175_v42 }
  0xdb   :  { %v7994_v9 = vpop.eup %7993  ;;  %v471_v6 = vmul.f32 %v470_v22, %v468_v7  ;;  %v556_v35 = vsub.s32 %v552_v51, %v555_v38  ;;  %v481_v46 = vadd.s32 3, %v477_v27  ;;  %vm494_vm4 = vcmp.lt.s32.totalorder %v8173_v41, 0 }
  0xdc   :  { %v7996_v33 = vpop.eup %7995  ;;  %v157_v53 = vxor.u32 2147483648, %v7994_v9  ;;  %vm387_vm1 = vcmp.eq.s32.totalorder %v386_v17, 0  ;;  %v578_v24 = vsub.s32 4, %v8411_v61  ;;  %vm493_vm5 = vcmp.le.f32.partialorder %v492_v63, 0.7853982 }
  0xdd   :  { %v154_v10 = vxor.u32 2147483648, %v7996_v33  ;;  %v472_v60 = vxor.u32 2147483648, %v471_v6  ;;  %v558_v37 = vsub.s32 0, %v556_v35  ;;  %v482_v47 = vand.u32 3, %v481_v46 }
  0xde   :  { %v158_v1 = vsel %vm156_vm7, %v157_v53, %v7996_v33  ;;  %v579_v59 = vsel %vm494_vm4, %v578_v24, %v8411_v61  ;;  %v874_v24 = vld [vmem:[%s9881_s1 + $0x20] sm:$0xff] }
  0xdf   :  { %v155_v11 = vsel %vm153_vm9, %v7994_v9, %v154_v10  ;;  %v473_v3 = vsel %vm390_vm8, %v472_v60, %v471_v6  ;;  %v6455_v31 = vmin.u32 %v558_v37, %v556_v35  ;;  %vm487_vm14 = vcmp.eq.s32.totalorder %v482_v47, 2 }
  0xe0   :  { %v159_v40 = vsel %vm152_vm10, %v155_v11, %v158_v1  ;;  %v476_v14 = vsel %vm8418_vm11, %v8175_v42, %v473_v3  ;;  %vm484_vm15 = vcmp.eq.s32.totalorder %v482_v47, 0  ;;  %vm483_vm2 = vcmp.lt.s32.totalorder %v482_v47, 2  ;;  %v274_v1 = vpop.permute.xlu1 %273 }
  0xe1   :  { %v160_v39 = vsel %vm149_vm12, nan, %v159_v40  ;;  %7997 = vcosq.f32 %v476_v14  ;;  %v560_v26 = vclz %v6455_v31  ;;  %v581_v50 = vsel %vm493_vm5, 0, %v579_v59  ;;  %v876_v59 = vld [vmem:[%s9881_s1 + $0x30] sm:$0xff] }
  0xe2   :  { %v265_v20 = vsel %vm55_vm6, %v8165_v29, %v160_v39  ;;  %7999 = vsinq.f32 %v476_v14  ;;  %v598_v29 = vld [vmem:[%s9881_s1 + $0x10] sm:$0xff]  ;;  %v585_v5 = vadd.s32 3, %v581_v50  ;;  %vm584_vm9 = vweird.f32 %v8173_v41  ;;  %v770_v39 = vld [vmem:[%s9883_s2 + $0x8] sm:$0xff] }
  0xe3   :  { %7203 = vmatprep.subr.mxu1 %v265_v20  ;;  %v6456_v44 = vadd.s32 4294967294, %v560_v26  ;;  %v8082_v14 = vmov 0.0   ;;  %vm8083_vm10 = vmmov 0   ;;  %vm773_vm11 = vcmask 523264  }
  0xe4   :  { %7204 = vmatpush3.msra.mxu1 %v265_v20  ;;  %v586_v7 = vand.u32 3, %v585_v5  ;;  %vm902_vm12 = vcmask 31744   ;;  %v877_v5 = vld [vmem:[%s9881_s1 + $0x38] sm:$0xff] }
  0xe5   :  { %7206 = vmatmul.mubr.msk.f32.vlgmr.msra.gmra.mxu1 %vm281_vm0, %v268_v16  ;;  %7208 = vmatprep.subr.mxu1 %v599_v21  ;;  %vm6457_vm13 = vcmp.lt.s32.totalorder %v6456_v44, 0 }
  0xe6   :  { %7209 = vmatpush3.msra.mxu1 %v599_v21  ;;  %v563_v30 = vsel %vm6457_vm13, 0, %v6456_v44  ;;  %vm591_vm6 = vcmp.eq.s32.totalorder %v586_v7, 2  ;;  %vm588_vm7 = vcmp.eq.s32.totalorder %v586_v7, 0  ;;  %vm587_vm8 = vcmp.lt.s32.totalorder %v586_v7, 2  ;;  %v769_v21 = vld [vmem:[%s9883_s2] sm:$0xff]  ;;  %v1040_v7 = vld [vmem:[%s9881_s1 + $0xa8] sm:$0xff] }
  0xe7   :  { %7210 = vmatprep.subr.mxu1 %v598_v29  ;;  %v564_v32 = vsub.s32 32, %v563_v30  ;;  %v568_v36 = vsub.s32 4294967266, %v563_v30  ;;  %v565_v43 = vshll.u32 %v556_v35, %v563_v30  ;;  %v279_v35 = vpop.permute.xlu0 %278  ;;  %vm915_vm13 = vcmask 1043456  }
  0xe8   :  { %7211 = vmatpush3.msra.mxu1 %v598_v29 }
  0xe9   :  { %v566_v45 = vshrl.u32 %v548_v12, %v564_v32  ;;  %v569_v62 = vadd.s32 127, %v568_v36  ;;  %7222 = vmatprep.subr.mxu1 %v8082_v14 }
  0xeb   :  { %v567_v34 = vor.u32 %v566_v45, %v565_v43  ;;  %v570_v0 = vshll.u32 %v569_v62, 23 }
  0xed   :  { %v571_v8 = vor.u32 4788187, %v570_v0  ;;  %v574_v25 = vcvt.s32.f32 %v567_v34 }
  0xee   :  { %v7998_v48 = vpop.eup %7997 }
  0xef   :  { %v8000_v49 = vpop.eup %7999  ;;  %v488_v18 = vxor.u32 2147483648, %v7998_v48  ;;  %v572_v2 = vand.u32 2147483647, %v571_v8 }
  0xf0   :  { %v485_v54 = vxor.u32 2147483648, %v8000_v49 }
  0xf1   :  { %v489_v19 = vsel %vm487_vm14, %v488_v18, %v8000_v49  ;;  %v575_v51 = vmul.f32 %v574_v25, %v572_v2  ;;  %vm1537_vm14 = vcmask 490496  }
  0xf2   :  { %v486_v28 = vsel %vm484_vm15, %v7998_v48, %v485_v54  ;;  %vm1989_vm15 = vcmask 1045504  }
  0xf3   :  { %v490_v15 = vsel %vm483_vm2, %v486_v28, %v489_v19  ;;  %v576_v56 = vxor.u32 2147483648, %v575_v51 }
  0xf4   :  { %v491_v55 = vsel %vm480_vm3, nan, %v490_v15 }
  0xf5   :  { %v596_v52 = vsel %vm387_vm1, %v8175_v42, %v491_v55  ;;  %v577_v57 = vsel %vm494_vm4, %v576_v56, %v575_v51 }
  0xf6   :  { %7212 = vmatprep.mubr.msk.f32.mxu1 %vm281_vm0, %v596_v52  ;;  %v580_v58 = vsel %vm493_vm5, %v8173_v41, %v577_v57  ;;  %v17_v52 = vld [vmem:[%s9882_s0 + $0x18] sm:$0xf] }
  0xf7   :  { %8001 = vcosq.f32 %v580_v58 }
  0xf8   :  { %8003 = vsinq.f32 %v580_v58  ;;  %v875_v58 = vld [vmem:[%s9881_s1 + $0x28] sm:$0xff] }
 0x104   :  { %v8002_v42 = vpop.eup %8001 }
 0x105   :  { %v8004_v22 = vpop.eup %8003  ;;  %v592_v38 = vxor.u32 2147483648, %v8002_v42 }
 0x106   :  { %v589_v9 = vxor.u32 2147483648, %v8004_v22 }
 0x107   :  { %v593_v6 = vsel %vm591_vm6, %v592_v38, %v8004_v22  ;;  %v1030_v22 = vld [vmem:[%s9883_s2 + $0x80] sm:$0xff]  ;;  %v1029_v38 = vld [vmem:[%s9883_s2 + $0x78] sm:$0xff] }
 0x108   :  { %v590_v33 = vsel %vm588_vm7, %v8002_v42, %v589_v9  ;;  %v1031_v42 = vld [vmem:[%s9883_s2 + $0x88] sm:$0xff] }
 0x109   :  { %v594_v63 = vsel %vm587_vm8, %v590_v33, %v593_v6  ;;  %v900_v6 = vpop.permute.xlu0 %899 }
 0x10a   :  { %v595_v53 = vsel %vm584_vm9, nan, %v594_v63  ;;  %v895_v63 = vpop.permute.xlu1 %894 }
 0x10b   :  { %v597_v61 = vsel %vm387_vm1, %v8173_v41, %v595_v53  ;;  %vm1976_vm1 = vcmask 244736  }
 0x10c   :  { %7213 = vmatmul.mubr.msk.f32.vlgmr.msra.gmra.mxu1 %vm281_vm0, %v597_v61 }
 0x10d   :  { %7226 = vmatprep.mubr.msk.f32.mxu1 %vm8083_vm10, %v8082_v14 }
 0x1a5   :  { %v7207_v10 = vpop.f32.mrf.mxu1 }
 0x1a6   :  { %v360_v60 = vadd.f32 %v7207_v10, %v279_v35 }
 0x1a7   :  { %v354_v4 = vpop.f32.mrf.mxu1 }
 0x1a8   :  { %v355_v37 = vadd.f32 %v354_v4, %v274_v1  ;;  %7215 = vmatprep.subr.mxu0 %v360_v60  ;;  %v885_v4 = vpop.permute.xlu1 %884 }
 0x1a9   :  { %7216 = vmatpush3.msra.mxu0 %v360_v60  ;;  %v890_v60 = vpop.permute.xlu0 %889 }
 0x1aa   :  { %7217 = vmatprep.subr.mxu0 %v355_v37 }
 0x1ab   :  { %7218 = vmatpush3.msra.mxu0 %v355_v37 }
 0x1cc   :  { %v7214_v11 = vpop.f32.mrf.mxu1 }
 0x1cd   :  { %v683_v41 = vadd.f32 %v7214_v11, %v6458_v13  ;;  %v1041_v11 = vld [vmem:[%s9881_s1 + $0xb0] sm:$0xff] }
 0x1ce   :  { %v677_v3 = vpop.f32.mrf.mxu1 }
 0x1cf   :  { %v678_v40 = vadd.f32 %v6458_v13, %v677_v3  ;;  %v1023_v13 = vld [vmem:[%s9883_s2 + $0x48] sm:$0xff]  ;;  %v1042_v3 = vld [vmem:[%s9881_s1 + $0xb8] sm:$0xff] }
 0x1d1   :  { %7219 = vmatprep.mubr.msk.f32.mxu0 %vm281_vm0, %v678_v40  ;;  %v1022_v40 = vld [vmem:[%s9883_s2 + $0x40] sm:$0xff] }
 0x1d2   :  { %7220 = vmatmul.mubr.msk.f32.vlgmr.msra.gmra.mxu0 %vm281_vm0, %v683_v41  ;;  %v1043_v41 = vld [vmem:[%s9881_s1 + $0xc0] sm:$0xff] }
 0x1d3   :  { %7231 = vmatprep.mubr.msk.f32.mxu0 %vm902_vm12, %v874_v24 }
 0x292   :  { %v7221_v31 = vpop.f32.mrf.mxu0 }
 0x293   :  { %v768_v20 = vmul.f32 0.25, %v7221_v31  ;;  %v1021_v31 = vld [vmem:[%s9883_s2 + $0x38] sm:$0xff] }
 0x294   :  { %v758_v16 = vpop.f32.mrf.mxu0 }
 0x295   :  { %v772_v23 = vadd.f32 %v770_v39, %v768_v20  ;;  %v767_v26 = vmul.f32 0.25, %v758_v16  ;;  %v1044_v39 = vld [vmem:[%s9881_s1 + $0xc8] sm:$0xff]  ;;  %v1020_v20 = vld [vmem:[%s9883_s2 + $0x30] sm:$0xff] }
 0x296   :  { %v1045_v16 = vld [vmem:[%s9881_s1 + $0xd0] sm:$0xff] }
 0x297   :  { %v771_v29 = vadd.f32 %v769_v21, %v767_v26  ;;  %v775_v44 = vsel %vm773_vm11, %v772_v23, -inf  ;;  %v1019_v21 = vld [vmem:[%s9883_s2 + $0x28] sm:$0xff]  ;;  %v1018_v26 = vld [vmem:[%s9883_s2 + $0x20] sm:$0xff] }
 0x299   :  { %v774_v27 = vsel %vm773_vm11, %v771_v29, -inf }
 0x29a   :  { %v776_v30 = vmax.f32 %v774_v27, %v775_v44  ;;  %v1048_v44 = vld [vmem:[%s9881_s1 + $0xe8] sm:$0xff]  ;;  %v1049_v27 = vld [vmem:[%s9881_s1 + $0xf0] sm:$0xff] }
 0x29c   :  { %v777_v46 = vrot.slane %v776_v30, 4 }
 0x29e   :  { %v778_v12 = vmax.f32 %v776_v30, %v777_v46  ;;  %v1050_v30 = vld [vmem:[%s9881_s1 + $0xf8] sm:$0xff]  ;;  %v1051_v46 = vld [vmem:[%s9881_s1 + $0x100] sm:$0xff] }
 0x2a0   :  { %v779_v32 = vrot.slane %v778_v12, 2 }
 0x2a2   :  { %v780_v36 = vmax.f32 %v778_v12, %v779_v32  ;;  %v1017_v12 = vld [vmem:[%s9883_s2 + $0x18] sm:$0xff]  ;;  %v1028_v32 = vld [vmem:[%s9883_s2 + $0x70] sm:$0xff] }
 0x2a4   :  { %v781_v43 = vrot.slane %v780_v36, 1 }
 0x2a6   :  { %v782_v45 = vmax.f32 %v780_v36, %v781_v43  ;;  %v1016_v36 = vld [vmem:[%s9883_s2 + $0x10] sm:$0xff]  ;;  %v1027_v43 = vld [vmem:[%s9883_s2 + $0x68] sm:$0xff] }
 0x2a8   :  { %v783_v62 = vsub.f32 %v771_v29, %v782_v45  ;;  %v784_v47 = vsub.f32 %v772_v23, %v782_v45  ;;  %v1046_v23 = vld [vmem:[%s9881_s1 + $0xd8] sm:$0xff]  ;;  %v1047_v29 = vld [vmem:[%s9881_s1 + $0xe0] sm:$0xff] }
 0x2a9   :  { %v1026_v45 = vld [vmem:[%s9883_s2 + $0x60] sm:$0xff] }
 0x2aa   :  { %v785_v34 = vmul.f32 1.442695, %v783_v62  ;;  %v787_v0 = vmul.f32 1.442695, %v784_v47  ;;  %v1025_v62 = vld [vmem:[%s9883_s2 + $0x58] sm:$0xff]  ;;  %v1024_v47 = vld [vmem:[%s9883_s2 + $0x50] sm:$0xff] }
 0x2ac   :  { %8005 = vpow2.f32 %v785_v34  ;;  %v1039_v34 = vld [vmem:[%s9883_s2 + $0xc8] sm:$0xff] }
 0x2ad   :  { %8007 = vpow2.f32 %v787_v0 }
 0x2b9   :  { %v8006_v48 = vpop.eup %8005 }
 0x2ba   :  { %v8008_v17 = vpop.eup %8007  ;;  %v789_v8 = vsel %vm773_vm11, %v8006_v48, 0.0 }
 0x2bb   :  { %v790_v49 = vsel %vm773_vm11, %v8008_v17, 0.0 }
 0x2bc   :  { %v791_v18 = vadd.f32 %v790_v49, %v789_v8 }
 0x2be   :  { %v792_v54 = vrot.slane %v791_v18, 4 }
 0x2c0   :  { %v793_v2 = vadd.f32 %v792_v54, %v791_v18  ;;  %v1038_v54 = vld [vmem:[%s9883_s2 + $0xc0] sm:$0xff] }
 0x2c2   :  { %v794_v25 = vrot.slane %v793_v2, 2 }
 0x2c4   :  { %v795_v19 = vadd.f32 %v794_v25, %v793_v2  ;;  %v1037_v25 = vld [vmem:[%s9883_s2 + $0xb8] sm:$0xff] }
 0x2c6   :  { %v796_v28 = vrot.slane %v795_v19, 1 }
 0x2c8   :  { %v797_v51 = vadd.f32 %v796_v28, %v795_v19  ;;  %v1036_v28 = vld [vmem:[%s9883_s2 + $0xb0] sm:$0xff] }
 0x2ca   :  { %8009 = vrcp.f32 %v797_v51 }
 0x2d7   :  { %v8010_v15 = vpop.eup %8009 }
 0x2d8   :  { %v800_v55 = vmul.f32 %v8010_v15, %v8008_v17  ;;  %v799_v56 = vmul.f32 %v8010_v15, %v8006_v48  ;;  %v1035_v15 = vld [vmem:[%s9883_s2 + $0xa8] sm:$0xff] }
 0x2da   :  { %7223 = vmatpush3.msra.mxu1 %v800_v55 }
 0x2db   :  { %7224 = vmatprep.subr.mxu1 %v8082_v14 }
 0x2dc   :  { %7225 = vmatpush3.msra.mxu1 %v799_v56  ;;  %v1034_v56 = vld [vmem:[%s9883_s2 + $0xa0] sm:$0xff] }
 0x2dd   :  { %7227 = vmatmul.mubr.msk.f32.vlgmr.msra.gmra.mxu1 %vm281_vm0, %v17_v52  ;;  %vm1052_vm0 = vcmask 261120   ;;  %v1033_v52 = vld [vmem:[%s9883_s2 + $0x98] sm:$0xff] }
 0x2de   :  { %7245 = vmatprep.mubr.msk.f32.mxu1 %vm1052_vm0, %v1040_v7 }
 0x39d   :  { %v870_v57 = vpop.f32.mrf.mxu1 }
 0x39e   :  { %7229 = vmatprep.subr.msk.mxu0 %vm915_vm13, %v870_v57 }
 0x39f   :  { %v7228_v50 = vpop.f32.mrf.mxu1  ;;  %7230 = vmatpush3.msk.msra.mxu0 %vm915_vm13, %v870_v57  ;;  %v1032_v57 = vld [vmem:[%s9883_s2 + $0x90] sm:$0xff] }
 0x3a0   :  { %7232 = vmatmul.mubr.msk.f32.vlgmr.msra.gmra.mxu0 %vm902_vm12, %v875_v58  ;;  %7263 = vmatprep.subr.mxu0 %v1031_v42 }
 0x3a1   :  { %7234 = vmatprep.mubr.msk.f32.mxu0 %vm902_vm12, %v876_v59  ;;  %7264 = vmatpush3.msra.mxu0 %v1031_v42 }
 0x3a2   :  { %7265 = vmatprep.subr.mxu0 %v1030_v22 }
 0x3a3   :  { %7266 = vmatpush3.msra.mxu0 %v1030_v22 }
 0x3a4   :  { %7235 = vmatmul.mubr.msk.f32.gmra.mxu0 %vm902_vm12, %v877_v5  ;;  %7267 = vmatprep.subr.mxu0 %v1029_v38 }
 0x3a5   :  { %7268 = vmatpush3.msra.mxu0 %v1029_v38 }
 0x3a6   :  { %7269 = vmatprep.subr.mxu0 %v1028_v32 }
 0x3a7   :  { %7270 = vmatpush3.msra.mxu0 %v1028_v32 }
 0x3a8   :  { %7271 = vmatprep.subr.mxu0 %v1027_v43 }
 0x3a9   :  { %7272 = vmatpush3.msra.mxu0 %v1027_v43 }
 0x3aa   :  { %7273 = vmatprep.subr.mxu0 %v1026_v45 }
 0x3ab   :  { %7274 = vmatpush3.msra.mxu0 %v1026_v45 }
 0x3ac   :  { %7275 = vmatprep.subr.mxu0 %v1025_v62 }
 0x3ad   :  { %7276 = vmatpush3.msra.mxu0 %v1025_v62 }
 0x3ae   :  { %7277 = vmatprep.subr.mxu0 %v1024_v47 }
 0x3af   :  { %7278 = vmatpush3.msra.mxu0 %v1024_v47 }
 0x3b0   :  { %7307 = vmatprep.subr.mxu0 %v1039_v34 }
 0x460   :  { %v7233_v9 = vpop.f32.mrf.mxu0 }
 0x461   :  { %v991_v1 = vadd.f32 %v7233_v9, %v890_v60 }
 0x462   :  { %v985_v33 = vpop.f32.mrf.mxu0 }
 0x463   :  { %v986_v37 = vadd.f32 %v985_v33, %v885_v4  ;;  %v1521_v33 = vpop.permute.xlu1 %1520 }
 0x464   :  { %v7236_v53 = vpop.f32.mrf.mxu0 }
 0x465   :  { %v1001_v61 = vadd.f32 %v7236_v53, %v900_v6 }
 0x466   :  { %v995_v35 = vpop.f32.mrf.mxu0 }
 0x467   :  { %v996_v10 = vadd.f32 %v995_v35, %v895_v63  ;;  %7237 = vmatprep.subr.mxu1 %v1001_v61 }
 0x468   :  { %7238 = vmatpush3.msra.mxu1 %v1001_v61  ;;  %v1516_v61 = vpop.permute.xlu0 %1515 }
 0x469   :  { %7239 = vmatprep.subr.mxu1 %v996_v10 }
 0x46a   :  { %7240 = vmatpush3.msra.mxu1 %v996_v10 }
 0x46b   :  { %7241 = vmatprep.subr.mxu1 %v991_v1 }
 0x46c   :  { %7242 = vmatpush3.msra.mxu1 %v991_v1 }
 0x46d   :  { %7243 = vmatprep.subr.mxu1 %v986_v37 }
 0x46e   :  { %7244 = vmatpush3.msra.mxu1 %v986_v37 }
 0x46f   :  { %7246 = vmatmul.mubr.msk.f32.vlgmr.msra.gmra.mxu1 %vm1052_vm0, %v1041_v11  ;;  %7285 = vmatprep.subr.mxu1 %v1023_v13 }
 0x470   :  { %7248 = vmatprep.mubr.msk.f32.mxu1 %vm1052_vm0, %v1042_v3  ;;  %7286 = vmatpush3.msra.mxu1 %v1023_v13 }
 0x471   :  { %7287 = vmatprep.subr.mxu1 %v1022_v40 }
 0x472   :  { %7288 = vmatpush3.msra.mxu1 %v1022_v40 }
 0x473   :  { %7249 = vmatmul.mubr.msk.f32.gmra.mxu1 %vm1052_vm0, %v1043_v41  ;;  %7289 = vmatprep.subr.mxu1 %v1021_v31 }
 0x474   :  { %7251 = vmatprep.mubr.msk.f32.mxu1 %vm1052_vm0, %v1044_v39  ;;  %7290 = vmatpush3.msra.mxu1 %v1021_v31 }
 0x475   :  { %7291 = vmatprep.subr.mxu1 %v1020_v20 }
 0x476   :  { %7292 = vmatpush3.msra.mxu1 %v1020_v20  ;;  %v1526_v20 = vpop.permute.xlu0 %1525 }
 0x477   :  { %7252 = vmatmul.mubr.msk.f32.gmra.mxu1 %vm1052_vm0, %v1045_v16  ;;  %7293 = vmatprep.subr.mxu1 %v1019_v21 }
 0x478   :  { %7254 = vmatprep.mubr.msk.f32.mxu1 %vm1052_vm0, %v1046_v23  ;;  %7294 = vmatpush3.msra.mxu1 %v1019_v21  ;;  %v1531_v21 = vpop.permute.xlu1 %1530 }
 0x479   :  { %7295 = vmatprep.subr.mxu1 %v1018_v26 }
 0x47a   :  { %7296 = vmatpush3.msra.mxu1 %v1018_v26 }
 0x47b   :  { %7255 = vmatmul.mubr.msk.f32.gmra.mxu1 %vm1052_vm0, %v1047_v29  ;;  %7297 = vmatprep.subr.mxu1 %v1017_v12 }
 0x47c   :  { %7257 = vmatprep.mubr.msk.f32.mxu1 %vm1052_vm0, %v1048_v44  ;;  %7298 = vmatpush3.msra.mxu1 %v1017_v12 }
 0x47d   :  { %7299 = vmatprep.subr.mxu1 %v1016_v36 }
 0x47e   :  { %7300 = vmatpush3.msra.mxu1 %v1016_v36 }
 0x47f   :  { %7258 = vmatmul.mubr.msk.f32.gmra.mxu1 %vm1052_vm0, %v1049_v27 }
 0x480   :  { %7260 = vmatprep.mubr.msk.f32.mxu1 %vm1052_vm0, %v1050_v30 }
 0x483   :  { %7261 = vmatmul.mubr.msk.f32.gmra.mxu1 %vm1052_vm0, %v1051_v46 }
 0x52f   :  { %v7247_v0 = vpop.f32.mrf.mxu1 }
 0x531   :  { %v1155_v48 = vpop.f32.mrf.mxu1 }
 0x532   :  { %7301 = vmatprep.mubr.msk.f32.mxu1 %vm773_vm11, %v1155_v48 }
 0x533   :  { %v7250_v17 = vpop.f32.mrf.mxu1  ;;  %7302 = vmatmul.mubr.msk.f32.vlgmr.msra.gmra.mxu1 %vm773_vm11, %v7247_v0 }
 0x535   :  { %v1165_v8 = vpop.f32.mrf.mxu1 }
 0x536   :  { %7304 = vmatprep.mubr.msk.f32.mxu1 %vm773_vm11, %v1165_v8 }
 0x537   :  { %v7253_v49 = vpop.f32.mrf.mxu1  ;;  %7305 = vmatmul.mubr.msk.f32.gmra.mxu1 %vm773_vm11, %v7250_v17 }
 0x539   :  { %v1175_v18 = vpop.f32.mrf.mxu1 }
 0x53a   :  { %7279 = vmatprep.mubr.msk.f32.mxu0 %vm773_vm11, %v1175_v18 }
 0x53b   :  { %v7256_v2 = vpop.f32.mrf.mxu1  ;;  %7280 = vmatmul.mubr.msk.f32.vlgmr.msra.gmra.mxu0 %vm773_vm11, %v7253_v49 }
 0x53c   :  { %7308 = vmatpush3.msra.mxu0 %v1039_v34 }
 0x53d   :  { %7309 = vmatprep.subr.mxu0 %v1038_v54  ;;  %v1185_v19 = vpop.f32.mrf.mxu1 }
 0x53e   :  { %7310 = vmatpush3.msra.mxu0 %v1038_v54  ;;  %7282 = vmatprep.mubr.msk.f32.mxu0 %vm773_vm11, %v1185_v19  ;;  %v2283_v19 = vld [vmem:[%s9881_s1 + $0x190] sm:$0xff] }
 0x53f   :  { %7311 = vmatprep.subr.mxu0 %v1037_v25  ;;  %7283 = vmatmul.mubr.msk.f32.gmra.mxu0 %vm773_vm11, %v7256_v2  ;;  %v7259_v51 = vpop.f32.mrf.mxu1 }
 0x540   :  { %7312 = vmatpush3.msra.mxu0 %v1037_v25  ;;  %v2285_v25 = vld [vmem:[%s9881_s1 + $0x1a0] sm:$0xff] }
 0x541   :  { %7313 = vmatprep.subr.mxu0 %v1036_v28  ;;  %v1195_v55 = vpop.f32.mrf.mxu1 }
 0x542   :  { %7314 = vmatpush3.msra.mxu0 %v1036_v28  ;;  %7323 = vmatprep.mubr.msk.f32.mxu0 %vm773_vm11, %v1195_v55  ;;  %v2282_v28 = vld [vmem:[%s9881_s1 + $0x188] sm:$0xff] }
 0x543   :  { %7315 = vmatprep.subr.mxu0 %v1035_v15  ;;  %v7262_v24 = vpop.f32.mrf.mxu1  ;;  %v1610_v55 = vld [vmem:[%s9883_s2 + $0x148] sm:$0xf] }
 0x544   :  { %7316 = vmatpush3.msra.mxu0 %v1035_v15  ;;  %v1602_v15 = vld [vmem:[%s9883_s2 + $0x108] sm:$0xf] }
 0x545   :  { %7317 = vmatprep.subr.mxu0 %v1034_v56  ;;  %v1205_v58 = vpop.f32.mrf.mxu1  ;;  %7329 = vmatprep.subr.msk.mxu1 %vm915_vm13, %v1602_v15 }
 0x546   :  { %7318 = vmatpush3.msra.mxu0 %v1034_v56  ;;  %v1601_v56 = vld [vmem:[%s9883_s2 + $0x100] sm:$0xff]  ;;  %7330 = vmatpush3.msk.msra.mxu1 %vm915_vm13, %v1602_v15 }
 0x547   :  { %7319 = vmatprep.subr.mxu0 %v1033_v52  ;;  %7331 = vmatprep.subr.mxu1 %v1601_v56  ;;  %v1814_v15 = vld [vmem:[%s9881_s1 + $0x180] sm:$0xff] }
 0x548   :  { %7320 = vmatpush3.msra.mxu0 %v1033_v52  ;;  %v1609_v52 = vld [vmem:[%s9883_s2 + $0x140] sm:$0xff]  ;;  %7332 = vmatpush3.msra.mxu1 %v1601_v56 }
 0x549   :  { %7321 = vmatprep.subr.mxu0 %v1032_v57  ;;  %v8811_v56 = vld [vmem:[%s9883_s2 + $0x180] sm:$0xff] }
 0x54a   :  { %7322 = vmatpush3.msra.mxu0 %v1032_v57  ;;  %v1608_v57 = vld [vmem:[%s9883_s2 + $0x138] sm:$0xff] }
 0x54b   :  { %7324 = vmatmul.mubr.msk.f32.vlgmr.msra.gmra.mxu0 %vm773_vm11, %v7259_v51  ;;  %v2284_v51 = vld [vmem:[%s9881_s1 + $0x198] sm:$0xff]  ;;  %7351 = vmatprep.subr.msk.mxu0 %vm915_vm13, %v1610_v55 }
 0x54c   :  { %7326 = vmatprep.mubr.msk.f32.mxu0 %vm773_vm11, %v1205_v58  ;;  %7352 = vmatpush3.msk.msra.mxu0 %vm915_vm13, %v1610_v55  ;;  %v1599_v58 = vld [vmem:[%s9883_s2 + $0xf0] sm:$0xff]  ;;  %v8802_v55 = vld [vmem:[%s9883_s2 + $0x188] sm:$0x3f] }
 0x54d   :  { %7353 = vmatprep.subr.mxu0 %v1609_v52 }
 0x54e   :  { %7354 = vmatpush3.msra.mxu0 %v1609_v52  ;;  %v8818_v52 = vld [vmem:[%s9883_s2 + $0x178] sm:$0xff] }
 0x54f   :  { %7327 = vmatmul.mubr.msk.f32.gmra.mxu0 %vm773_vm11, %v7262_v24  ;;  %v1600_v24 = vld [vmem:[%s9883_s2 + $0xf8] sm:$0xff]  ;;  %7355 = vmatprep.subr.mxu0 %v1608_v57 }
 0x550   :  { %7333 = vmatprep.subr.mxu1 %v1600_v24  ;;  %7356 = vmatpush3.msra.mxu0 %v1608_v57  ;;  %v8832_v57 = vld [vmem:[%s9883_s2 + $0x168] sm:$0x3f] }
 0x551   :  { %7334 = vmatpush3.msra.mxu1 %v1600_v24  ;;  %v8825_v24 = vld [vmem:[%s9883_s2 + $0x170] sm:$0xff] }
 0x552   :  { %7335 = vmatprep.subr.mxu1 %v1599_v58 }
 0x553   :  { %7336 = vmatpush3.msra.mxu1 %v1599_v58 }
 0x5f3   :  { %v7303_v5 = vpop.f32.mrf.mxu1 }
 0x5f5   :  { %v1389_v42 = vpop.f32.mrf.mxu1 }
 0x5f7   :  { %v7306_v9 = vpop.f32.mrf.mxu1 }
 0x5f9   :  { %v1399_v1 = vpop.f32.mrf.mxu1 }
 0x5fb   :  { %v7281_v59 = vpop.f32.mrf.mxu0 }
 0x5fc   :  { %v1395_v38 = vadd.f32 %v7303_v5, %v7281_v59  ;;  %v1607_v59 = vld [vmem:[%s9883_s2 + $0x130] sm:$0xff]  ;;  %v1606_v5 = vld [vmem:[%s9883_s2 + $0x128] sm:$0xff] }
 0x5fd   :  { %v1292_v50 = vpop.f32.mrf.mxu0  ;;  %7357 = vmatprep.subr.mxu0 %v1607_v59 }
 0x5fe   :  { %v1390_v63 = vadd.f32 %v1389_v42, %v1292_v50  ;;  %v1598_v50 = vld [vmem:[%s9883_s2 + $0xe8] sm:$0xff]  ;;  %7358 = vmatpush3.msra.mxu0 %v1607_v59  ;;  %v1605_v42 = vld [vmem:[%s9883_s2 + $0x120] sm:$0xff] }
 0x5ff   :  { %v7284_v7 = vpop.f32.mrf.mxu0  ;;  %7337 = vmatprep.subr.mxu1 %v1598_v50  ;;  %7359 = vmatprep.subr.mxu0 %v1606_v5 }
 0x600   :  { %v1405_v37 = vadd.f32 %v7306_v9, %v7284_v7  ;;  %v1597_v7 = vld [vmem:[%s9883_s2 + $0xe0] sm:$0xff]  ;;  %7338 = vmatpush3.msra.mxu1 %v1598_v50  ;;  %7360 = vmatpush3.msra.mxu0 %v1606_v5  ;;  %v1595_v9 = vld [vmem:[%s9883_s2 + $0xd0] sm:$0xff] }
 0x601   :  { %v1302_v22 = vpop.f32.mrf.mxu0  ;;  %7339 = vmatprep.subr.mxu1 %v1597_v7  ;;  %7361 = vmatprep.subr.mxu0 %v1605_v42 }
 0x602   :  { %v1400_v11 = vadd.f32 %v1399_v1, %v1302_v22  ;;  %v1596_v22 = vld [vmem:[%s9883_s2 + $0xd8] sm:$0xff]  ;;  %7340 = vmatpush3.msra.mxu1 %v1597_v7  ;;  %7362 = vmatpush3.msra.mxu0 %v1605_v42 }
 0x603   :  { %7341 = vmatprep.subr.mxu1 %v1596_v22 }
 0x604   :  { %7342 = vmatpush3.msra.mxu1 %v1596_v22  ;;  %v8840_v22 = vld [vmem:[%s9883_s2 + $0x160] sm:$0xff] }
 0x605   :  { %7343 = vmatprep.subr.mxu1 %v1595_v9 }
 0x606   :  { %7344 = vmatpush3.msra.mxu1 %v1595_v9  ;;  %v8848_v9 = vld [vmem:[%s9883_s2 + $0x158] sm:$0xff] }
 0x60b   :  { %v7325_v6 = vpop.f32.mrf.mxu0 }
 0x60c   :  { %v1506_v53 = vadd.f32 %v7325_v6, %v1395_v38  ;;  %v1604_v38 = vld [vmem:[%s9883_s2 + $0x118] sm:$0xff]  ;;  %v1603_v6 = vld [vmem:[%s9883_s2 + $0x110] sm:$0xff] }
 0x60d   :  { %v1486_v35 = vpop.f32.mrf.mxu0  ;;  %7363 = vmatprep.subr.mxu0 %v1604_v38 }
 0x60e   :  { %v1505_v10 = vadd.f32 %v1486_v35, %v1390_v63  ;;  %v1534_v60 = vadd.f32 %v1521_v33, %v1506_v53  ;;  %7364 = vmatpush3.msra.mxu0 %v1604_v38 }
 0x60f   :  { %v7328_v4 = vpop.f32.mrf.mxu0  ;;  %7365 = vmatprep.subr.mxu0 %v1603_v6 }
 0x610   :  { %v1541_v13 = vsel %vm1537_vm14, %v1534_v60, 0.0  ;;  %v1533_v3 = vadd.f32 %v1516_v61, %v1505_v10  ;;  %v1508_v41 = vadd.f32 %v7328_v4, %v1405_v37  ;;  %7366 = vmatpush3.msra.mxu0 %v1603_v6 }
 0x611   :  { %v1496_v40 = vpop.f32.mrf.mxu0  ;;  %1542 = vadd.xlane.f32.xlu1 %v1541_v13  ;;  %7399 = vmatprep.subr.msk.mxu0 %vm1989_vm15, %v8802_v55 }
 0x612   :  { %v1507_v31 = vadd.f32 %v1496_v40, %v1400_v11  ;;  %v1538_v39 = vsel %vm1537_vm14, %v1533_v3, 0.0  ;;  %v1536_v26 = vadd.f32 %v1531_v21, %v1508_v41 }
 0x613   :  { %1539 = vadd.xlane.f32.xlu0 %v1538_v39 }
 0x614   :  { %v1535_v16 = vadd.f32 %v1526_v20, %v1507_v31  ;;  %v1547_v29 = vsel %vm1537_vm14, %v1536_v26, 0.0 }
 0x616   :  { %v1544_v23 = vsel %vm1537_vm14, %v1535_v16, 0.0 }
 0x617   :  { %1545 = vadd.xlane.f32.xlu0 %v1544_v23 }
 0x61b   :  { %1548 = vadd.xlane.f32.xlu0 %v1547_v29 }
 0x69a   :  { %v1543_v44 = vpop.xlane.xlu1 %1542 }
 0x69b   :  { %v1552_v27 = vmul.f32 0.016666668, %v1543_v44 }
 0x69c   :  { %v1540_v30 = vpop.xlane.xlu0 %1539 }
 0x69d   :  { %v8639_v46 = vsub.f32 %v1534_v60, %v1552_v27  ;;  %v1551_v12 = vmul.f32 0.016666668, %v1540_v30  ;;  %v1803_v27 = vld [vmem:[%s9881_s1 + $0x128] sm:$0xff] }
 0x69f   :  { %v8641_v32 = vsub.f32 %v1533_v3, %v1551_v12  ;;  %v1560_v36 = vmul.f32 %v8639_v46, %v8639_v46 }
 0x6a0   :  { %v1546_v43 = vpop.xlane.xlu0 %1545 }
 0x6a1   :  { %v1553_v45 = vmul.f32 0.016666668, %v1546_v43  ;;  %v1566_v62 = vsel %vm1537_vm14, %v1560_v36, 0.0  ;;  %v1559_v47 = vmul.f32 %v8641_v32, %v8641_v32 }
 0x6a2   :  { %1567 = vadd.xlane.f32.xlu0 %v1566_v62 }
 0x6a3   :  { %v8648_v34 = vsub.f32 %v1535_v16, %v1553_v45  ;;  %v1563_v0 = vsel %vm1537_vm14, %v1559_v47, 0.0 }
 0x6a4   :  { %1564 = vadd.xlane.f32.xlu1 %v1563_v0  ;;  %v1549_v48 = vpop.xlane.xlu0 %1548 }
 0x6a5   :  { %v1554_v17 = vmul.f32 0.016666668, %v1549_v48  ;;  %v1561_v8 = vmul.f32 %v8648_v34, %v8648_v34 }
 0x6a7   :  { %v8653_v49 = vsub.f32 %v1536_v26, %v1554_v17  ;;  %v1569_v18 = vsel %vm1537_vm14, %v1561_v8, 0.0  ;;  %v1804_v17 = vld [vmem:[%s9881_s1 + $0x130] sm:$0xff]  ;;  %v1805_v8 = vld [vmem:[%s9881_s1 + $0x138] sm:$0xff] }
 0x6a8   :  { %1570 = vadd.xlane.f32.xlu1 %v1569_v18  ;;  %v1807_v18 = vld [vmem:[%s9881_s1 + $0x148] sm:$0xff] }
 0x6a9   :  { %v1562_v54 = vmul.f32 %v8653_v49, %v8653_v49 }
 0x6ab   :  { %v1572_v2 = vsel %vm1537_vm14, %v1562_v54, 0.0  ;;  %v1808_v54 = vld [vmem:[%s9881_s1 + $0x150] sm:$0xff] }
 0x6ac   :  { %1573 = vadd.xlane.f32.xlu0 %v1572_v2  ;;  %v1809_v2 = vld [vmem:[%s9881_s1 + $0x158] sm:$0xff] }
 0x6b9   :  { %2303 = vperm.xlu1 %7988, %v2285_v25   ;;  %v1810_v25 = vld [vmem:[%s9881_s1 + $0x160] sm:$0xff] }
 0x6bd   :  { %2293 = vperm.xlu1 %7988, %v2283_v19   ;;  %v1811_v19 = vld [vmem:[%s9881_s1 + $0x168] sm:$0xff] }
 0x6c1   :  { %2288 = vperm.xlu1 %7988, %v2282_v28   ;;  %v1812_v28 = vld [vmem:[%s9881_s1 + $0x170] sm:$0xff] }
 0x6c2   :  { %2298 = vperm.xlu0 %7987, %v2284_v51   ;;  %v1813_v51 = vld [vmem:[%s9881_s1 + $0x178] sm:$0xff] }
 0x72b   :  { %v1568_v33 = vpop.xlane.xlu0 %1567 }
 0x72c   :  { %v1576_v63 = vmul.f32 0.016666668, %v1568_v33  ;;  %v8856_v33 = vld [vmem:[%s9883_s2 + $0x150] sm:$0xff] }
 0x72d   :  { %v1565_v53 = vpop.xlane.xlu1 %1564 }
 0x72e   :  { %v1580_v61 = vadd.f32 1e-05, %v1576_v63  ;;  %v1575_v35 = vmul.f32 0.016666668, %v1565_v53  ;;  %v8865_v53 = vld [vmem:[%s9883_s2 + $0x1a8] sm:$0x3f] }
 0x730   :  { %8011 = vrsqrt.f32 %v1580_v61  ;;  %v1579_v10 = vadd.f32 1e-05, %v1575_v35  ;;  %v8872_v35 = vld [vmem:[%s9883_s2 + $0x1a0] sm:$0xff] }
 0x731   :  { %v1571_v60 = vpop.xlane.xlu1 %1570 }
 0x732   :  { %8013 = vrsqrt.f32 %v1579_v10  ;;  %v1577_v1 = vmul.f32 0.016666668, %v1571_v60  ;;  %v8883_v10 = vld [vmem:[%s9883_s2 + $0x198] sm:$0xff] }
 0x734   :  { %v1581_v4 = vadd.f32 1e-05, %v1577_v1  ;;  %v8890_v1 = vld [vmem:[%s9883_s2 + $0x190] sm:$0xff] }
 0x735   :  { %v1574_v37 = vpop.xlane.xlu0 %1573 }
 0x736   :  { %8015 = vrsqrt.f32 %v1581_v4  ;;  %v1578_v11 = vmul.f32 0.016666668, %v1574_v37 }
 0x738   :  { %v1582_v13 = vadd.f32 1e-05, %v1578_v11 }
 0x73a   :  { %8017 = vrsqrt.f32 %v1582_v13 }
 0x73d   :  { %v8012_v3 = vpop.eup %8011 }
 0x73e   :  { %v1588_v41 = vmul.f32 %v8012_v3, %v8639_v46 }
 0x73f   :  { %v8014_v40 = vpop.eup %8013 }
 0x740   :  { %v1587_v31 = vmul.f32 %v8014_v40, %v8641_v32  ;;  %v1592_v16 = vmax.f32 %v1588_v41, 0.0 }
 0x742   :  { %v1591_v39 = vmax.f32 %v1587_v31, 0.0 }
 0x743   :  { %v8016_v20 = vpop.eup %8015 }
 0x744   :  { %7345 = vmatprep.mubr.msk.f32.mxu1 %vm1537_vm14, %v1591_v39  ;;  %7367 = vmatprep.mubr.msk.f32.mxu0 %vm1537_vm14, %v1591_v39  ;;  %v1589_v21 = vmul.f32 %v8016_v20, %v8648_v34  ;;  %v2304_v20 = vpop.permute.xlu1 %2303 }
 0x745   :  { %7346 = vmatmul.mubr.msk.f32.vlgmr.msra.gmra.mxu1 %vm1537_vm14, %v1592_v16  ;;  %7368 = vmatmul.mubr.msk.f32.vlgmr.msra.gmra.mxu0 %vm1537_vm14, %v1592_v16 }
 0x746   :  { %v1593_v23 = vmax.f32 %v1589_v21, 0.0  ;;  %7400 = vmatpush3.msk.msra.mxu0 %vm1989_vm15, %v8802_v55 }
 0x747   :  { %v8018_v26 = vpop.eup %8017  ;;  %7401 = vmatprep.subr.mxu0 %v8811_v56 }
 0x748   :  { %7348 = vmatprep.mubr.msk.f32.mxu1 %vm1537_vm14, %v1593_v23  ;;  %7370 = vmatprep.mubr.msk.f32.mxu0 %vm1537_vm14, %v1593_v23  ;;  %v1590_v29 = vmul.f32 %v8018_v26, %v8653_v49  ;;  %v1806_v49 = vld [vmem:[%s9881_s1 + $0x140] sm:$0xff] }
 0x749   :  { %7402 = vmatpush3.msra.mxu0 %v8811_v56 }
 0x74a   :  { %v1594_v44 = vmax.f32 %v1590_v29, 0.0  ;;  %7403 = vmatprep.subr.mxu0 %v8818_v52 }
 0x74b   :  { %7404 = vmatpush3.msra.mxu0 %v8818_v52 }
 0x74c   :  { %7349 = vmatmul.mubr.msk.f32.gmra.mxu1 %vm1537_vm14, %v1594_v44  ;;  %7371 = vmatmul.mubr.msk.f32.gmra.mxu0 %vm1537_vm14, %v1594_v44 }
 0x74d   :  { %7381 = vmatprep.mubr.msk.f32.mxu1 %vm1052_vm0, %v1803_v27  ;;  %7405 = vmatprep.subr.mxu0 %v8825_v24 }
 0x74e   :  { %7406 = vmatpush3.msra.mxu0 %v8825_v24 }
 0x74f   :  { %7413 = vmatprep.subr.msk.mxu0 %vm1989_vm15, %v8832_v57 }
 0x805   :  { %v7347_v30 = vpop.f32.mrf.mxu1  ;;  %v7369_v46 = vpop.f32.mrf.mxu0 }
 0x806   :  { %v8745_v0 = vmax.f32 %v7347_v30, %v7369_v46  ;;  %v2294_v46 = vpop.permute.xlu1 %2293 }
 0x807   :  { %v1692_v12 = vpop.f32.mrf.mxu1  ;;  %v1780_v32 = vpop.f32.mrf.mxu0 }
 0x808   :  { %v8749_v48 = vmax.f32 %v1692_v12, %v1780_v32 }
 0x80c   :  { %v7350_v36 = vpop.f32.mrf.mxu1  ;;  %v7372_v43 = vpop.f32.mrf.mxu0 }
 0x80d   :  { %v8739_v45 = vmax.f32 %v7350_v36, %v7372_v43 }
 0x80e   :  { %v1702_v62 = vpop.f32.mrf.mxu1  ;;  %v1790_v47 = vpop.f32.mrf.mxu0 }
 0x80f   :  { %v8741_v34 = vmax.f32 %v1702_v62, %v1790_v47  ;;  %7373 = vmatprep.subr.mxu1 %v8739_v45  ;;  %v2299_v62 = vpop.permute.xlu0 %2298 }
 0x810   :  { %7374 = vmatpush3.msra.mxu1 %v8739_v45 }
 0x811   :  { %7375 = vmatprep.subr.mxu1 %v8741_v34 }
 0x812   :  { %7376 = vmatpush3.msra.mxu1 %v8741_v34 }
 0x813   :  { %7377 = vmatprep.subr.mxu1 %v8745_v0 }
 0x814   :  { %7378 = vmatpush3.msra.mxu1 %v8745_v0 }
 0x815   :  { %7379 = vmatprep.subr.mxu1 %v8749_v48 }
 0x816   :  { %7380 = vmatpush3.msra.mxu1 %v8749_v48 }
 0x817   :  { %7382 = vmatmul.mubr.msk.f32.vlgmr.msra.gmra.mxu1 %vm1052_vm0, %v1804_v17 }
 0x818   :  { %7384 = vmatprep.mubr.msk.f32.mxu1 %vm1052_vm0, %v1805_v8 }
 0x81b   :  { %7385 = vmatmul.mubr.msk.f32.gmra.mxu1 %vm1052_vm0, %v1806_v49 }
 0x81c   :  { %7387 = vmatprep.mubr.msk.f32.mxu1 %vm1052_vm0, %v1807_v18 }
 0x81f   :  { %7388 = vmatmul.mubr.msk.f32.gmra.mxu1 %vm1052_vm0, %v1808_v54  ;;  %v2289_v54 = vpop.permute.xlu1 %2288 }
 0x820   :  { %7390 = vmatprep.mubr.msk.f32.mxu1 %vm1052_vm0, %v1809_v2 }
 0x823   :  { %7391 = vmatmul.mubr.msk.f32.gmra.mxu1 %vm1052_vm0, %v1810_v25 }
 0x824   :  { %7393 = vmatprep.mubr.msk.f32.mxu1 %vm1052_vm0, %v1811_v19 }
 0x827   :  { %7394 = vmatmul.mubr.msk.f32.gmra.mxu1 %vm1052_vm0, %v1812_v28 }
 0x828   :  { %7396 = vmatprep.mubr.msk.f32.mxu1 %vm1052_vm0, %v1813_v51 }
 0x82b   :  { %7397 = vmatmul.mubr.msk.f32.gmra.mxu1 %vm1052_vm0, %v1814_v15 }
 0x8d7   :  { %v7383_v58 = vpop.f32.mrf.mxu1 }
 0x8d9   :  { %v1917_v59 = vpop.f32.mrf.mxu1 }
 0x8db   :  { %v7386_v50 = vpop.f32.mrf.mxu1 }
 0x8dd   :  { %v1927_v5 = vpop.f32.mrf.mxu1 }
 0x8df   :  { %v7389_v7 = vpop.f32.mrf.mxu1 }
 0x8e1   :  { %v1937_v42 = vpop.f32.mrf.mxu1 }
 0x8e2   :  { %7407 = vmatprep.mubr.msk.f32.mxu0 %vm1976_vm1, %v1937_v42 }
 0x8e3   :  { %v7392_v38 = vpop.f32.mrf.mxu1  ;;  %7408 = vmatmul.mubr.msk.f32.vlgmr.msra.gmra.mxu0 %vm1976_vm1, %v7389_v7 }
 0x8e4   :  { %7414 = vmatpush3.msk.msra.mxu0 %vm1989_vm15, %v8832_v57 }
 0x8e5   :  { %v1947_v6 = vpop.f32.mrf.mxu1  ;;  %7415 = vmatprep.subr.mxu0 %v8840_v22 }
 0x8e6   :  { %7410 = vmatprep.mubr.msk.f32.mxu0 %vm1976_vm1, %v1947_v6  ;;  %7416 = vmatpush3.msra.mxu0 %v8840_v22 }
 0x8e7   :  { %7411 = vmatmul.mubr.msk.f32.gmra.mxu0 %vm1976_vm1, %v7392_v38  ;;  %7417 = vmatprep.subr.mxu0 %v8848_v9  ;;  %v7395_v63 = vpop.f32.mrf.mxu1 }
 0x8e8   :  { %7418 = vmatpush3.msra.mxu0 %v8848_v9  ;;  %7421 = vmatprep.mubr.msk.f32.mxu0 %vm1976_vm1, %v1917_v59 }
 0x8e9   :  { %7419 = vmatprep.subr.mxu0 %v8856_v33  ;;  %v1957_v61 = vpop.f32.mrf.mxu1 }
 0x8ea   :  { %7420 = vmatpush3.msra.mxu0 %v8856_v33 }
 0x8eb   :  { %7422 = vmatmul.mubr.msk.f32.vlgmr.msra.gmra.mxu0 %vm1976_vm1, %v7383_v58  ;;  %7427 = vmatprep.subr.msk.mxu0 %vm1989_vm15, %v8865_v53  ;;  %v7398_v60 = vpop.f32.mrf.mxu1 }
 0x8ec   :  { %7424 = vmatprep.mubr.msk.f32.mxu0 %vm1976_vm1, %v1927_v5  ;;  %7428 = vmatpush3.msk.msra.mxu0 %vm1989_vm15, %v8865_v53 }
 0x8ed   :  { %7429 = vmatprep.subr.mxu0 %v8872_v35  ;;  %v1967_v4 = vpop.f32.mrf.mxu1 }
 0x8ee   :  { %7430 = vmatpush3.msra.mxu0 %v8872_v35 }
 0x8ef   :  { %7425 = vmatmul.mubr.msk.f32.gmra.mxu0 %vm1976_vm1, %v7386_v50  ;;  %7431 = vmatprep.subr.mxu0 %v8883_v10 }
 0x8f0   :  { %7432 = vmatpush3.msra.mxu0 %v8883_v10  ;;  %7435 = vmatprep.mubr.msk.f32.mxu0 %vm1976_vm1, %v1957_v61 }
 0x8f1   :  { %7433 = vmatprep.subr.mxu0 %v8890_v1 }
 0x8f2   :  { %7434 = vmatpush3.msra.mxu0 %v8890_v1 }
 0x8f3   :  { %7436 = vmatmul.mubr.msk.f32.vlgmr.msra.gmra.mxu0 %vm1976_vm1, %v7395_v63  ;;  %7467 = vmatprep.subr.msk.mxu0 %vm1989_vm15, %v8802_v55 }
 0x8f4   :  { %7438 = vmatprep.mubr.msk.f32.mxu0 %vm1976_vm1, %v1967_v4  ;;  %7468 = vmatpush3.msk.msra.mxu0 %vm1989_vm15, %v8802_v55 }
 0x8f5   :  { %7469 = vmatprep.subr.mxu0 %v8811_v56 }
 0x8f6   :  { %7470 = vmatpush3.msra.mxu0 %v8811_v56 }
 0x8f7   :  { %7439 = vmatmul.mubr.msk.f32.gmra.mxu0 %vm1976_vm1, %v7398_v60  ;;  %7471 = vmatprep.subr.mxu0 %v8818_v52 }
 0x8f8   :  { %7472 = vmatpush3.msra.mxu0 %v8818_v52 }
 0x8f9   :  { %7473 = vmatprep.subr.mxu0 %v8825_v24 }
 0x8fa   :  { %7474 = vmatpush3.msra.mxu0 %v8825_v24 }
 0x8fb   :  { %7481 = vmatprep.subr.msk.mxu0 %vm1989_vm15, %v8832_v57 }
 0x9a3   :  { %v7409_v37 = vpop.f32.mrf.mxu0 }
 0x9a5   :  { %v2059_v11 = vpop.f32.mrf.mxu0 }
 0x9a7   :  { %v7412_v13 = vpop.f32.mrf.mxu0 }
 0x9a9   :  { %v2069_v3 = vpop.f32.mrf.mxu0 }
 0x9ab   :  { %v7423_v40 = vpop.f32.mrf.mxu0 }
 0x9ac   :  { %v2165_v23 = vadd.f32 %v7423_v40, %v7409_v37 }
 0x9ad   :  { %v2159_v41 = vpop.f32.mrf.mxu0 }
 0x9ae   :  { %v2160_v32 = vadd.f32 %v2159_v41, %v2059_v11  ;;  %v2846_v41 = vld [vmem:[%s9881_s1 + $0x220] sm:$0xff] }
 0x9af   :  { %v7426_v31 = vpop.f32.mrf.mxu0 }
 0x9b0   :  { %v2175_v26 = vadd.f32 %v7426_v31, %v7412_v13  ;;  %v2844_v31 = vld [vmem:[%s9881_s1 + $0x210] sm:$0xff] }
 0x9b1   :  { %v2169_v39 = vpop.f32.mrf.mxu0 }
 0x9b2   :  { %v2170_v44 = vadd.f32 %v2169_v39, %v2069_v3  ;;  %v2843_v39 = vld [vmem:[%s9881_s1 + $0x208] sm:$0xff] }
 0x9b3   :  { %v7437_v16 = vpop.f32.mrf.mxu0 }
 0x9b4   :  { %v2279_v27 = vadd.f32 %v7437_v16, %v2165_v23  ;;  %v2375_v16 = vld [vmem:[%s9881_s1 + $0x1a8] sm:$0xff] }
 0x9b5   :  { %v2259_v21 = vpop.f32.mrf.mxu0  ;;  %7449 = vmatprep.mubr.msk.f32.mxu1 %vm1052_vm0, %v2375_v16 }
 0x9b6   :  { %v2278_v47 = vadd.f32 %v2259_v21, %v2160_v32  ;;  %v2307_v49 = vadd.f32 %v2294_v46, %v2279_v27 }
 0x9b7   :  { %v7440_v29 = vpop.f32.mrf.mxu0 }
 0x9b8   :  { %v2281_v30 = vadd.f32 %v7440_v29, %v2175_v26  ;;  %v2313_v2 = vsel %vm1976_vm1, %v2307_v49, 0.0  ;;  %v2306_v25 = vadd.f32 %v2289_v54, %v2278_v47 }
 0x9b9   :  { %v2269_v12 = vpop.f32.mrf.mxu0 }
 0x9ba   :  { %v2280_v36 = vadd.f32 %v2269_v12, %v2170_v44  ;;  %v2309_v43 = vadd.f32 %v2304_v20, %v2281_v30  ;;  %v2310_v19 = vsel %vm1976_vm1, %v2306_v25, 0.0  ;;  %v2845_v20 = vld [vmem:[%s9881_s1 + $0x218] sm:$0xff] }
 0x9bc   :  { %v2319_v17 = vsel %vm1976_vm1, %v2309_v43, 0.0  ;;  %v2308_v8 = vadd.f32 %v2299_v62, %v2280_v36 }
 0x9bd   :  { %2320 = vadd.xlane.f32.xlu0 %v2319_v17 }
 0x9be   :  { %v2316_v18 = vsel %vm1976_vm1, %v2308_v8, 0.0 }
 0x9bf   :  { %2317 = vadd.xlane.f32.xlu1 %v2316_v18 }
 0x9c1   :  { %2314 = vadd.xlane.f32.xlu0 %v2313_v2 }
 0x9c5   :  { %2311 = vadd.xlane.f32.xlu0 %v2310_v19 }
 0xa46   :  { %v2321_v28 = vpop.xlane.xlu0 %2320 }
 0xa47   :  { %v2326_v51 = vmul.f32 0.033333335, %v2321_v28 }
 0xa48   :  { %v2318_v15 = vpop.xlane.xlu1 %2317 }
 0xa49   :  { %v2330_v58 = vsub.f32 %v2309_v43, %v2326_v51  ;;  %v2325_v59 = vmul.f32 0.033333335, %v2318_v15 }
 0xa4a   :  { %v2315_v50 = vpop.xlane.xlu0 %2314 }
 0xa4b   :  { %v2329_v5 = vsub.f32 %v2308_v8, %v2325_v59  ;;  %v2324_v7 = vmul.f32 0.033333335, %v2315_v50  ;;  %v2334_v42 = vmul.f32 %v2330_v58, %v2330_v58 }
 0xa4d   :  { %v2328_v38 = vsub.f32 %v2307_v49, %v2324_v7  ;;  %v2344_v6 = vsel %vm1976_vm1, %v2334_v42, 0.0  ;;  %v2333_v63 = vmul.f32 %v2329_v5, %v2329_v5  ;;  %v2377_v7 = vld [vmem:[%s9881_s1 + $0x1b8] sm:$0xff]  ;;  %v2378_v42 = vld [vmem:[%s9881_s1 + $0x1c0] sm:$0xff] }
 0xa4e   :  { %2345 = vadd.xlane.f32.xlu1 %v2344_v6  ;;  %v2312_v61 = vpop.xlane.xlu0 %2311  ;;  %v2380_v6 = vld [vmem:[%s9881_s1 + $0x1d0] sm:$0xff] }
 0xa4f   :  { %v2323_v60 = vmul.f32 0.033333335, %v2312_v61  ;;  %v2341_v4 = vsel %vm1976_vm1, %v2333_v63, 0.0  ;;  %v2332_v37 = vmul.f32 %v2328_v38, %v2328_v38  ;;  %v2381_v63 = vld [vmem:[%s9881_s1 + $0x1d8] sm:$0xff]  ;;  %v2382_v61 = vld [vmem:[%s9881_s1 + $0x1e0] sm:$0xff] }
 0xa50   :  { %2342 = vadd.xlane.f32.xlu0 %v2341_v4  ;;  %v2384_v4 = vld [vmem:[%s9881_s1 + $0x1f0] sm:$0xff] }
 0xa51   :  { %v2327_v11 = vsub.f32 %v2306_v25, %v2323_v60  ;;  %v2338_v13 = vsel %vm1976_vm1, %v2332_v37, 0.0  ;;  %v2383_v60 = vld [vmem:[%s9881_s1 + $0x1e8] sm:$0xff]  ;;  %v2385_v37 = vld [vmem:[%s9881_s1 + $0x1f8] sm:$0xff] }
 0xa52   :  { %2339 = vadd.xlane.f32.xlu1 %v2338_v13 }
 0xa53   :  { %v2331_v3 = vmul.f32 %v2327_v11, %v2327_v11 }
 0xa55   :  { %v2335_v40 = vsel %vm1976_vm1, %v2331_v3, 0.0 }
 0xa56   :  { %2336 = vadd.xlane.f32.xlu0 %v2335_v40 }
 0xa63   :  { %2864 = vperm.xlu1 %7988, %v2846_v41  }
 0xa67   :  { %2854 = vperm.xlu1 %7988, %v2844_v31  }
 0xa6b   :  { %2849 = vperm.xlu1 %7988, %v2843_v39  }
 0xa6c   :  { %2859 = vperm.xlu0 %7987, %v2845_v20  }
 0xad7   :  { %v2346_v21 = vpop.xlane.xlu1 %2345 }
 0xad8   :  { %v2350_v23 = vmul.f32 0.033333335, %v2346_v21 }
 0xad9   :  { %v2343_v26 = vpop.xlane.xlu0 %2342 }
 0xada   :  { %v2354_v29 = vadd.f32 1e-05, %v2350_v23  ;;  %v2349_v44 = vmul.f32 0.033333335, %v2343_v26 }
 0xadb   :  { %v2340_v27 = vpop.xlane.xlu1 %2339 }
 0xadc   :  { %8019 = vrsqrt.f32 %v2354_v29  ;;  %v2353_v30 = vadd.f32 1e-05, %v2349_v44  ;;  %v2348_v46 = vmul.f32 0.033333335, %v2340_v27 }
 0xade   :  { %8021 = vrsqrt.f32 %v2353_v30  ;;  %v2352_v12 = vadd.f32 1e-05, %v2348_v46 }
 0xadf   :  { %v2337_v32 = vpop.xlane.xlu0 %2336 }
 0xae0   :  { %8023 = vrsqrt.f32 %v2352_v12  ;;  %v2347_v36 = vmul.f32 0.033333335, %v2337_v32 }
 0xae2   :  { %v2351_v43 = vadd.f32 1e-05, %v2347_v36 }
 0xae4   :  { %8025 = vrsqrt.f32 %v2351_v43 }
 0xae9   :  { %v8020_v62 = vpop.eup %8019 }
 0xaea   :  { %v2362_v47 = vmul.f32 %v8020_v62, %v2330_v58  ;;  %v2865_v62 = vpop.permute.xlu1 %2864 }
 0xaeb   :  { %v8022_v17 = vpop.eup %8021 }
 0xaec   :  { %vm2366_vm2 = vcmp.gt.f32.partialorder %v2362_v47, 0.0  ;;  %v2370_v8 = vmul.f32 0.01, %v2362_v47  ;;  %v2361_v49 = vmul.f32 %v8022_v17, %v2329_v5  ;;  %v2376_v5 = vld [vmem:[%s9881_s1 + $0x1b0] sm:$0xff] }
 0xaed   :  { %v8024_v18 = vpop.eup %8023 }
 0xaee   :  { %v2374_v54 = vsel %vm2366_vm2, %v2362_v47, %v2370_v8  ;;  %vm2365_vm3 = vcmp.gt.f32.partialorder %v2361_v49, 0.0  ;;  %v2369_v2 = vmul.f32 0.01, %v2361_v49  ;;  %v2360_v25 = vmul.f32 %v8024_v18, %v2328_v38  ;;  %v2379_v38 = vld [vmem:[%s9881_s1 + $0x1c8] sm:$0xff] }
 0xaef   :  { %7441 = vmatprep.subr.mxu1 %v2374_v54 }
 0xaf0   :  { %7442 = vmatpush3.msra.mxu1 %v2374_v54  ;;  %v2373_v19 = vsel %vm2365_vm3, %v2361_v49, %v2369_v2  ;;  %vm2364_vm4 = vcmp.gt.f32.partialorder %v2360_v25, 0.0  ;;  %v2368_v28 = vmul.f32 0.01, %v2360_v25 }
 0xaf1   :  { %v8026_v51 = vpop.eup %8025  ;;  %7443 = vmatprep.subr.mxu1 %v2373_v19 }
 0xaf2   :  { %7444 = vmatpush3.msra.mxu1 %v2373_v19  ;;  %v2372_v15 = vsel %vm2364_vm4, %v2360_v25, %v2368_v28  ;;  %v2359_v59 = vmul.f32 %v8026_v51, %v2327_v11  ;;  %v2386_v11 = vld [vmem:[%s9881_s1 + $0x200] sm:$0xff]  ;;  %v2855_v19 = vpop.permute.xlu1 %2854 }
 0xaf3   :  { %7445 = vmatprep.subr.mxu1 %v2372_v15 }
 0xaf4   :  { %7446 = vmatpush3.msra.mxu1 %v2372_v15  ;;  %vm2363_vm5 = vcmp.gt.f32.partialorder %v2359_v59, 0.0  ;;  %v2367_v58 = vmul.f32 0.01, %v2359_v59 }
 0xaf6   :  { %v2371_v50 = vsel %vm2363_vm5, %v2359_v59, %v2367_v58  ;;  %v2860_v58 = vpop.permute.xlu0 %2859 }
 0xaf7   :  { %7447 = vmatprep.subr.mxu1 %v2371_v50 }
 0xaf8   :  { %7448 = vmatpush3.msra.mxu1 %v2371_v50 }
 0xaf9   :  { %7450 = vmatmul.mubr.msk.f32.vlgmr.msra.gmra.mxu1 %vm1052_vm0, %v2376_v5 }
 0xafa   :  { %7452 = vmatprep.mubr.msk.f32.mxu1 %vm1052_vm0, %v2377_v7 }
 0xafd   :  { %7453 = vmatmul.mubr.msk.f32.gmra.mxu1 %vm1052_vm0, %v2378_v42 }
 0xafe   :  { %7455 = vmatprep.mubr.msk.f32.mxu1 %vm1052_vm0, %v2379_v38 }
 0xb01   :  { %7456 = vmatmul.mubr.msk.f32.gmra.mxu1 %vm1052_vm0, %v2380_v6  ;;  %v2850_v6 = vpop.permute.xlu1 %2849 }
 0xb02   :  { %7458 = vmatprep.mubr.msk.f32.mxu1 %vm1052_vm0, %v2381_v63 }
 0xb05   :  { %7459 = vmatmul.mubr.msk.f32.gmra.mxu1 %vm1052_vm0, %v2382_v61 }
 0xb06   :  { %7461 = vmatprep.mubr.msk.f32.mxu1 %vm1052_vm0, %v2383_v60 }
 0xb09   :  { %7462 = vmatmul.mubr.msk.f32.gmra.mxu1 %vm1052_vm0, %v2384_v4 }
 0xb0a   :  { %7464 = vmatprep.mubr.msk.f32.mxu1 %vm1052_vm0, %v2385_v37 }
 0xb0d   :  { %7465 = vmatmul.mubr.msk.f32.gmra.mxu1 %vm1052_vm0, %v2386_v11 }
 0xbb9   :  { %v7451_v13 = vpop.f32.mrf.mxu1 }
 0xbbb   :  { %v2489_v3 = vpop.f32.mrf.mxu1 }
 0xbbd   :  { %v7454_v40 = vpop.f32.mrf.mxu1 }
 0xbbf   :  { %v2499_v41 = vpop.f32.mrf.mxu1 }
 0xbc1   :  { %v7457_v31 = vpop.f32.mrf.mxu1 }
 0xbc3   :  { %v2509_v39 = vpop.f32.mrf.mxu1 }
 0xbc4   :  { %7475 = vmatprep.mubr.msk.f32.mxu0 %vm1976_vm1, %v2509_v39 }
 0xbc5   :  { %v7460_v20 = vpop.f32.mrf.mxu1  ;;  %7476 = vmatmul.mubr.msk.f32.vlgmr.msra.gmra.mxu0 %vm1976_vm1, %v7457_v31 }
 0xbc6   :  { %7482 = vmatpush3.msk.msra.mxu0 %vm1989_vm15, %v8832_v57 }
 0xbc7   :  { %v2519_v16 = vpop.f32.mrf.mxu1  ;;  %7483 = vmatprep.subr.mxu0 %v8840_v22 }
 0xbc8   :  { %7478 = vmatprep.mubr.msk.f32.mxu0 %vm1976_vm1, %v2519_v16  ;;  %7484 = vmatpush3.msra.mxu0 %v8840_v22 }
 0xbc9   :  { %7479 = vmatmul.mubr.msk.f32.gmra.mxu0 %vm1976_vm1, %v7460_v20  ;;  %7485 = vmatprep.subr.mxu0 %v8848_v9  ;;  %v7463_v21 = vpop.f32.mrf.mxu1 }
 0xbca   :  { %7486 = vmatpush3.msra.mxu0 %v8848_v9  ;;  %7489 = vmatprep.mubr.msk.f32.mxu0 %vm1976_vm1, %v2489_v3 }
 0xbcb   :  { %7487 = vmatprep.subr.mxu0 %v8856_v33  ;;  %v2529_v23 = vpop.f32.mrf.mxu1 }
 0xbcc   :  { %7488 = vmatpush3.msra.mxu0 %v8856_v33 }
 0xbcd   :  { %7490 = vmatmul.mubr.msk.f32.vlgmr.msra.gmra.mxu0 %vm1976_vm1, %v7451_v13  ;;  %7495 = vmatprep.subr.msk.mxu0 %vm1989_vm15, %v8865_v53  ;;  %v7466_v26 = vpop.f32.mrf.mxu1 }
 0xbce   :  { %7492 = vmatprep.mubr.msk.f32.mxu0 %vm1976_vm1, %v2499_v41  ;;  %7496 = vmatpush3.msk.msra.mxu0 %vm1989_vm15, %v8865_v53 }
 0xbcf   :  { %7497 = vmatprep.subr.mxu0 %v8872_v35  ;;  %v2539_v29 = vpop.f32.mrf.mxu1 }
 0xbd0   :  { %7498 = vmatpush3.msra.mxu0 %v8872_v35 }
 0xbd1   :  { %7493 = vmatmul.mubr.msk.f32.gmra.mxu0 %vm1976_vm1, %v7454_v40  ;;  %7499 = vmatprep.subr.mxu0 %v8883_v10 }
 0xbd2   :  { %7500 = vmatpush3.msra.mxu0 %v8883_v10  ;;  %7503 = vmatprep.mubr.msk.f32.mxu0 %vm1976_vm1, %v2529_v23 }
 0xbd3   :  { %7501 = vmatprep.subr.mxu0 %v8890_v1 }
 0xbd4   :  { %7502 = vmatpush3.msra.mxu0 %v8890_v1 }
 0xbd5   :  { %7504 = vmatmul.mubr.msk.f32.vlgmr.msra.gmra.mxu0 %vm1976_vm1, %v7463_v21  ;;  %7535 = vmatprep.subr.msk.mxu0 %vm1989_vm15, %v8802_v55 }
 0xbd6   :  { %7506 = vmatprep.mubr.msk.f32.mxu0 %vm1976_vm1, %v2539_v29  ;;  %7536 = vmatpush3.msk.msra.mxu0 %vm1989_vm15, %v8802_v55 }
 0xbd7   :  { %7537 = vmatprep.subr.mxu0 %v8811_v56 }
 0xbd8   :  { %7538 = vmatpush3.msra.mxu0 %v8811_v56 }
 0xbd9   :  { %7507 = vmatmul.mubr.msk.f32.gmra.mxu0 %vm1976_vm1, %v7466_v26  ;;  %7539 = vmatprep.subr.mxu0 %v8818_v52 }
 0xbda   :  { %7540 = vmatpush3.msra.mxu0 %v8818_v52 }
 0xbdb   :  { %7541 = vmatprep.subr.mxu0 %v8825_v24 }
 0xbdc   :  { %7542 = vmatpush3.msra.mxu0 %v8825_v24 }
 0xbdd   :  { %7549 = vmatprep.subr.msk.mxu0 %vm1989_vm15, %v8832_v57 }
 0xc85   :  { %v7477_v44 = vpop.f32.mrf.mxu0 }
 0xc87   :  { %v2626_v27 = vpop.f32.mrf.mxu0 }
 0xc89   :  { %v7480_v30 = vpop.f32.mrf.mxu0 }
 0xc8b   :  { %v2636_v46 = vpop.f32.mrf.mxu0 }
 0xc8d   :  { %v7491_v12 = vpop.f32.mrf.mxu0 }
 0xc8e   :  { %v2729_v8 = vadd.f32 %v7491_v12, %v7477_v44 }
 0xc8f   :  { %v2723_v32 = vpop.f32.mrf.mxu0 }
 0xc90   :  { %v2724_v51 = vadd.f32 %v2723_v32, %v2626_v27  ;;  %v3422_v32 = vld [vmem:[%s9881_s1 + $0x2a0] sm:$0xff] }
 0xc91   :  { %v7494_v36 = vpop.f32.mrf.mxu0 }
 0xc92   :  { %v2739_v49 = vadd.f32 %v7494_v36, %v7480_v30  ;;  %v3420_v36 = vld [vmem:[%s9881_s1 + $0x290] sm:$0xff] }
 0xc93   :  { %v2733_v43 = vpop.f32.mrf.mxu0 }
 0xc94   :  { %v2734_v54 = vadd.f32 %v2733_v43, %v2636_v46  ;;  %v3419_v43 = vld [vmem:[%s9881_s1 + $0x288] sm:$0xff] }
 0xc95   :  { %v7505_v47 = vpop.f32.mrf.mxu0 }
 0xc96   :  { %v2840_v2 = vadd.f32 %v7505_v47, %v2729_v8  ;;  %v2951_v47 = vld [vmem:[%s9881_s1 + $0x228] sm:$0xff] }
 0xc97   :  { %v2820_v17 = vpop.f32.mrf.mxu0  ;;  %7517 = vmatprep.mubr.msk.f32.mxu1 %vm1052_vm0, %v2951_v47  ;;  %v2962_v47 = vld [vmem:[%s9881_s1 + $0x280] sm:$0xff] }
 0xc98   :  { %v2839_v50 = vadd.f32 %v2820_v17, %v2724_v51  ;;  %v2868_v42 = vadd.f32 %v2855_v19, %v2840_v2 }
 0xc99   :  { %v7508_v18 = vpop.f32.mrf.mxu0 }
 0xc9a   :  { %v2842_v25 = vadd.f32 %v7508_v18, %v2739_v49  ;;  %v2874_v63 = vsel %vm1976_vm1, %v2868_v42, 0.0  ;;  %v2867_v61 = vadd.f32 %v2850_v6, %v2839_v50 }
 0xc9b   :  { %v2830_v28 = vpop.f32.mrf.mxu0 }
 0xc9c   :  { %v2841_v15 = vadd.f32 %v2830_v28, %v2734_v54  ;;  %v2870_v59 = vadd.f32 %v2865_v62, %v2842_v25  ;;  %v2871_v60 = vsel %vm1976_vm1, %v2867_v61, 0.0  ;;  %v3421_v62 = vld [vmem:[%s9881_s1 + $0x298] sm:$0xff] }
 0xc9e   :  { %v2880_v5 = vsel %vm1976_vm1, %v2870_v59, 0.0  ;;  %v2869_v7 = vadd.f32 %v2860_v58, %v2841_v15 }
 0xc9f   :  { %2881 = vadd.xlane.f32.xlu0 %v2880_v5 }
 0xca0   :  { %v2877_v38 = vsel %vm1976_vm1, %v2869_v7, 0.0 }
 0xca1   :  { %2878 = vadd.xlane.f32.xlu1 %v2877_v38 }
 0xca3   :  { %2875 = vadd.xlane.f32.xlu0 %v2874_v63 }
 0xca7   :  { %2872 = vadd.xlane.f32.xlu0 %v2871_v60 }
 0xd28   :  { %v2882_v4 = vpop.xlane.xlu0 %2881 }
 0xd29   :  { %v2886_v37 = vmul.f32 0.033333335, %v2882_v4 }
 0xd2a   :  { %v2879_v11 = vpop.xlane.xlu1 %2878 }
 0xd2b   :  { %v2890_v13 = vsub.f32 %v2870_v59, %v2886_v37  ;;  %v2885_v3 = vmul.f32 0.033333335, %v2879_v11 }
 0xd2c   :  { %v2876_v40 = vpop.xlane.xlu0 %2875 }
 0xd2d   :  { %v2889_v41 = vsub.f32 %v2869_v7, %v2885_v3  ;;  %v2884_v31 = vmul.f32 0.033333335, %v2876_v40  ;;  %v2894_v39 = vmul.f32 %v2890_v13, %v2890_v13 }
 0xd2f   :  { %v2888_v20 = vsub.f32 %v2868_v42, %v2884_v31  ;;  %v2904_v16 = vsel %vm1976_vm1, %v2894_v39, 0.0  ;;  %v2893_v21 = vmul.f32 %v2889_v41, %v2889_v41 }
 0xd30   :  { %2905 = vadd.xlane.f32.xlu1 %v2904_v16  ;;  %v2873_v23 = vpop.xlane.xlu0 %2872 }
 0xd31   :  { %v2883_v26 = vmul.f32 0.033333335, %v2873_v23  ;;  %v2901_v29 = vsel %vm1976_vm1, %v2893_v21, 0.0  ;;  %v2892_v44 = vmul.f32 %v2888_v20, %v2888_v20 }
 0xd32   :  { %2902 = vadd.xlane.f32.xlu0 %v2901_v29 }
 0xd33   :  { %v2887_v27 = vsub.f32 %v2867_v61, %v2883_v26  ;;  %v2898_v30 = vsel %vm1976_vm1, %v2892_v44, 0.0  ;;  %v2952_v44 = vld [vmem:[%s9881_s1 + $0x230] sm:$0xff] }
 0xd34   :  { %2899 = vadd.xlane.f32.xlu1 %v2898_v30  ;;  %v2955_v30 = vld [vmem:[%s9881_s1 + $0x248] sm:$0xff] }
 0xd35   :  { %v2891_v46 = vmul.f32 %v2887_v27, %v2887_v27 }
 0xd37   :  { %v2895_v12 = vsel %vm1976_vm1, %v2891_v46, 0.0  ;;  %v2956_v46 = vld [vmem:[%s9881_s1 + $0x250] sm:$0xff] }
 0xd38   :  { %2896 = vadd.xlane.f32.xlu0 %v2895_v12  ;;  %v2957_v12 = vld [vmem:[%s9881_s1 + $0x258] sm:$0xff] }
 0xd45   :  { %3440 = vperm.xlu1 %7988, %v3422_v32   ;;  %v2958_v32 = vld [vmem:[%s9881_s1 + $0x260] sm:$0xff] }
 0xd49   :  { %3430 = vperm.xlu1 %7988, %v3420_v36   ;;  %v2959_v36 = vld [vmem:[%s9881_s1 + $0x268] sm:$0xff] }
 0xd4d   :  { %3425 = vperm.xlu1 %7988, %v3419_v43   ;;  %v2960_v43 = vld [vmem:[%s9881_s1 + $0x270] sm:$0xff] }
 0xd4e   :  { %3435 = vperm.xlu0 %7987, %v3421_v62   ;;  %v2961_v62 = vld [vmem:[%s9881_s1 + $0x278] sm:$0xff] }
 0xdb9   :  { %v2906_v17 = vpop.xlane.xlu1 %2905 }
 0xdba   :  { %v2910_v8 = vmul.f32 0.033333335, %v2906_v17 }
 0xdbb   :  { %v2903_v49 = vpop.xlane.xlu0 %2902 }
 0xdbc   :  { %v2914_v18 = vadd.f32 1e-05, %v2910_v8  ;;  %v2909_v54 = vmul.f32 0.033333335, %v2903_v49 }
 0xdbd   :  { %v2900_v2 = vpop.xlane.xlu1 %2899 }
 0xdbe   :  { %8027 = vrsqrt.f32 %v2914_v18  ;;  %v2913_v25 = vadd.f32 1e-05, %v2909_v54  ;;  %v2908_v19 = vmul.f32 0.033333335, %v2900_v2 }
 0xdc0   :  { %8029 = vrsqrt.f32 %v2913_v25  ;;  %v2912_v28 = vadd.f32 1e-05, %v2908_v19 }
 0xdc1   :  { %v2897_v51 = vpop.xlane.xlu0 %2896 }
 0xdc2   :  { %8031 = vrsqrt.f32 %v2912_v28  ;;  %v2907_v15 = vmul.f32 0.033333335, %v2897_v51 }
 0xdc4   :  { %v2911_v59 = vadd.f32 1e-05, %v2907_v15 }
 0xdc6   :  { %8033 = vrsqrt.f32 %v2911_v59  ;;  %v3441_v59 = vpop.permute.xlu1 %3440 }
 0xdcb   :  { %v8028_v58 = vpop.eup %8027 }
 0xdcc   :  { %v2922_v50 = vmul.f32 %v8028_v58, %v2890_v13 }
 0xdcd   :  { %v8030_v5 = vpop.eup %8029 }
 0xdce   :  { %vm2926_vm6 = vcmp.gt.f32.partialorder %v2922_v50, 0.0  ;;  %v2930_v7 = vmul.f32 0.01, %v2922_v50  ;;  %v2921_v42 = vmul.f32 %v8030_v5, %v2889_v41 }
 0xdcf   :  { %v8032_v38 = vpop.eup %8031 }
 0xdd0   :  { %v2934_v6 = vsel %vm2926_vm6, %v2922_v50, %v2930_v7  ;;  %vm2925_vm7 = vcmp.gt.f32.partialorder %v2921_v42, 0.0  ;;  %v2929_v63 = vmul.f32 0.01, %v2921_v42  ;;  %v2920_v61 = vmul.f32 %v8032_v38, %v2888_v20 }
 0xdd1   :  { %v2938_v60 = vadd.f32 %v2934_v6, %v8739_v45  ;;  %v3431_v6 = vpop.permute.xlu1 %3430 }
 0xdd2   :  { %v2933_v4 = vsel %vm2925_vm7, %v2921_v42, %v2929_v63  ;;  %vm2924_vm8 = vcmp.gt.f32.partialorder %v2920_v61, 0.0  ;;  %v2928_v37 = vmul.f32 0.01, %v2920_v61 }
 0xdd3   :  { %v8034_v11 = vpop.eup %8033  ;;  %vm2942_vm9 = vcmp.gt.f32.partialorder %v2938_v60, 0.0  ;;  %v2946_v3 = vmul.f32 0.01, %v2938_v60  ;;  %v2937_v40 = vadd.f32 %v2933_v4, %v8741_v34  ;;  %v3436_v4 = vpop.permute.xlu0 %3435 }
 0xdd4   :  { %v2932_v13 = vsel %vm2924_vm8, %v2920_v61, %v2928_v37  ;;  %v2919_v31 = vmul.f32 %v8034_v11, %v2887_v27  ;;  %v2953_v27 = vld [vmem:[%s9881_s1 + $0x238] sm:$0xff] }
 0xdd5   :  { %v9049_v39 = vsel %vm2942_vm9, %v2938_v60, %v2946_v3  ;;  %vm2941_vm14 = vcmp.gt.f32.partialorder %v2937_v40, 0.0  ;;  %v2945_v41 = vmul.f32 0.01, %v2937_v40  ;;  %v2936_v16 = vadd.f32 %v2932_v13, %v8745_v0 }
 0xdd6   :  { %7509 = vmatprep.subr.mxu1 %v9049_v39  ;;  %vm2923_vm2 = vcmp.gt.f32.partialorder %v2919_v31, 0.0  ;;  %v2927_v45 = vmul.f32 0.01, %v2919_v31 }
 0xdd7   :  { %7510 = vmatpush3.msra.mxu1 %v9049_v39  ;;  %v9054_v20 = vsel %vm2941_vm14, %v2937_v40, %v2945_v41  ;;  %vm2940_vm3 = vcmp.gt.f32.partialorder %v2936_v16, 0.0  ;;  %v2944_v21 = vmul.f32 0.01, %v2936_v16 }
 0xdd8   :  { %7511 = vmatprep.subr.mxu1 %v9054_v20  ;;  %v2931_v34 = vsel %vm2923_vm2, %v2919_v31, %v2927_v45  ;;  %v3426_v31 = vpop.permute.xlu1 %3425 }
 0xdd9   :  { %7512 = vmatpush3.msra.mxu1 %v9054_v20  ;;  %v9058_v23 = vsel %vm2940_vm3, %v2936_v16, %v2944_v21  ;;  %v2935_v26 = vadd.f32 %v2931_v34, %v8749_v48  ;;  %v2954_v48 = vld [vmem:[%s9881_s1 + $0x240] sm:$0xff] }
 0xdda   :  { %7513 = vmatprep.subr.mxu1 %v9058_v23 }
 0xddb   :  { %7514 = vmatpush3.msra.mxu1 %v9058_v23  ;;  %vm2939_vm4 = vcmp.gt.f32.partialorder %v2935_v26, 0.0  ;;  %v2943_v0 = vmul.f32 0.01, %v2935_v26 }
 0xddd   :  { %v9063_v29 = vsel %vm2939_vm4, %v2935_v26, %v2943_v0 }
 0xdde   :  { %7515 = vmatprep.subr.mxu1 %v9063_v29 }
 0xddf   :  { %7516 = vmatpush3.msra.mxu1 %v9063_v29 }
 0xde0   :  { %7518 = vmatmul.mubr.msk.f32.vlgmr.msra.gmra.mxu1 %vm1052_vm0, %v2952_v44 }
 0xde1   :  { %7520 = vmatprep.mubr.msk.f32.mxu1 %vm1052_vm0, %v2953_v27 }
 0xde4   :  { %7521 = vmatmul.mubr.msk.f32.gmra.mxu1 %vm1052_vm0, %v2954_v48 }
 0xde5   :  { %7523 = vmatprep.mubr.msk.f32.mxu1 %vm1052_vm0, %v2955_v30 }
 0xde8   :  { %7524 = vmatmul.mubr.msk.f32.gmra.mxu1 %vm1052_vm0, %v2956_v46 }
 0xde9   :  { %7526 = vmatprep.mubr.msk.f32.mxu1 %vm1052_vm0, %v2957_v12 }
 0xdec   :  { %7527 = vmatmul.mubr.msk.f32.gmra.mxu1 %vm1052_vm0, %v2958_v32 }
 0xded   :  { %7529 = vmatprep.mubr.msk.f32.mxu1 %vm1052_vm0, %v2959_v36 }
 0xdf0   :  { %7530 = vmatmul.mubr.msk.f32.gmra.mxu1 %vm1052_vm0, %v2960_v43 }
 0xdf1   :  { %7532 = vmatprep.mubr.msk.f32.mxu1 %vm1052_vm0, %v2961_v62 }
 0xdf4   :  { %7533 = vmatmul.mubr.msk.f32.gmra.mxu1 %vm1052_vm0, %v2962_v47 }
 0xea0   :  { %v7519_v17 = vpop.f32.mrf.mxu1 }
 0xea2   :  { %v3065_v8 = vpop.f32.mrf.mxu1 }
 0xea4   :  { %v7522_v49 = vpop.f32.mrf.mxu1 }
 0xea6   :  { %v3075_v18 = vpop.f32.mrf.mxu1 }
 0xea8   :  { %v7525_v54 = vpop.f32.mrf.mxu1 }
 0xeaa   :  { %v3085_v2 = vpop.f32.mrf.mxu1 }
 0xeab   :  { %7543 = vmatprep.mubr.msk.f32.mxu0 %vm1976_vm1, %v3085_v2  ;;  %v3979_v2 = vld [vmem:[%s9881_s1 + $0x308] sm:$0xff] }
 0xeac   :  { %v7528_v25 = vpop.f32.mrf.mxu1  ;;  %7544 = vmatmul.mubr.msk.f32.vlgmr.msra.gmra.mxu0 %vm1976_vm1, %v7525_v54 }
 0xead   :  { %7550 = vmatpush3.msk.msra.mxu0 %vm1989_vm15, %v8832_v57 }
 0xeae   :  { %v3095_v19 = vpop.f32.mrf.mxu1  ;;  %7551 = vmatprep.subr.mxu0 %v8840_v22 }
 0xeaf   :  { %7546 = vmatprep.mubr.msk.f32.mxu0 %vm1976_vm1, %v3095_v19  ;;  %7552 = vmatpush3.msra.mxu0 %v8840_v22  ;;  %v3982_v19 = vld [vmem:[%s9881_s1 + $0x320] sm:$0xff] }
 0xeb0   :  { %7547 = vmatmul.mubr.msk.f32.gmra.mxu0 %vm1976_vm1, %v7528_v25  ;;  %7553 = vmatprep.subr.mxu0 %v8848_v9  ;;  %v7531_v28 = vpop.f32.mrf.mxu1  ;;  %v3981_v25 = vld [vmem:[%s9881_s1 + $0x318] sm:$0xff] }
 0xeb1   :  { %7554 = vmatpush3.msra.mxu0 %v8848_v9  ;;  %7557 = vmatprep.mubr.msk.f32.mxu0 %vm1976_vm1, %v3065_v8 }
 0xeb2   :  { %7555 = vmatprep.subr.mxu0 %v8856_v33  ;;  %v3105_v51 = vpop.f32.mrf.mxu1 }
 0xeb3   :  { %7556 = vmatpush3.msra.mxu0 %v8856_v33 }
 0xeb4   :  { %7558 = vmatmul.mubr.msk.f32.vlgmr.msra.gmra.mxu0 %vm1976_vm1, %v7519_v17  ;;  %7563 = vmatprep.subr.msk.mxu0 %vm1989_vm15, %v8865_v53  ;;  %v7534_v22 = vpop.f32.mrf.mxu1 }
 0xeb5   :  { %7560 = vmatprep.mubr.msk.f32.mxu0 %vm1976_vm1, %v3075_v18  ;;  %7564 = vmatpush3.msk.msra.mxu0 %vm1989_vm15, %v8865_v53 }
 0xeb6   :  { %7565 = vmatprep.subr.mxu0 %v8872_v35  ;;  %v3115_v9 = vpop.f32.mrf.mxu1 }
 0xeb7   :  { %7566 = vmatpush3.msra.mxu0 %v8872_v35 }
 0xeb8   :  { %7561 = vmatmul.mubr.msk.f32.gmra.mxu0 %vm1976_vm1, %v7522_v49  ;;  %7567 = vmatprep.subr.mxu0 %v8883_v10 }
 0xeb9   :  { %7568 = vmatpush3.msra.mxu0 %v8883_v10  ;;  %7571 = vmatprep.mubr.msk.f32.mxu0 %vm1976_vm1, %v3105_v51  ;;  %v3511_v51 = vld [vmem:[%s9881_s1 + $0x2a8] sm:$0xff] }
 0xeba   :  { %7569 = vmatprep.subr.mxu0 %v8890_v1  ;;  %7585 = vmatprep.mubr.msk.f32.mxu1 %vm1052_vm0, %v3511_v51 }
 0xebb   :  { %7570 = vmatpush3.msra.mxu0 %v8890_v1 }
 0xebc   :  { %7572 = vmatmul.mubr.msk.f32.vlgmr.msra.gmra.mxu0 %vm1976_vm1, %v7531_v28  ;;  %7603 = vmatprep.subr.msk.mxu0 %vm1989_vm15, %v8802_v55  ;;  %v3980_v28 = vld [vmem:[%s9881_s1 + $0x310] sm:$0xff] }
 0xebd   :  { %7574 = vmatprep.mubr.msk.f32.mxu0 %vm1976_vm1, %v3115_v9  ;;  %7604 = vmatpush3.msk.msra.mxu0 %vm1989_vm15, %v8802_v55 }
 0xebe   :  { %7605 = vmatprep.subr.mxu0 %v8811_v56 }
 0xebf   :  { %7606 = vmatpush3.msra.mxu0 %v8811_v56 }
 0xec0   :  { %7575 = vmatmul.mubr.msk.f32.gmra.mxu0 %vm1976_vm1, %v7534_v22  ;;  %7607 = vmatprep.subr.mxu0 %v8818_v52 }
 0xec1   :  { %7608 = vmatpush3.msra.mxu0 %v8818_v52 }
 0xec2   :  { %7609 = vmatprep.subr.mxu0 %v8825_v24 }
 0xec3   :  { %7610 = vmatpush3.msra.mxu0 %v8825_v24 }
 0xec4   :  { %7617 = vmatprep.subr.msk.mxu0 %vm1989_vm15, %v8832_v57 }
 0xf6c   :  { %v7545_v33 = vpop.f32.mrf.mxu0 }
 0xf6e   :  { %v3202_v53 = vpop.f32.mrf.mxu0 }
 0xf70   :  { %v7548_v55 = vpop.f32.mrf.mxu0 }
 0xf72   :  { %v3212_v35 = vpop.f32.mrf.mxu0 }
 0xf74   :  { %v7559_v10 = vpop.f32.mrf.mxu0 }
 0xf75   :  { %v3305_v5 = vadd.f32 %v7559_v10, %v7545_v33 }
 0xf76   :  { %v3299_v1 = vpop.f32.mrf.mxu0 }
 0xf77   :  { %v3300_v57 = vadd.f32 %v3299_v1, %v3202_v53 }
 0xf78   :  { %v7562_v56 = vpop.f32.mrf.mxu0 }
 0xf79   :  { %v3315_v52 = vadd.f32 %v7562_v56, %v7548_v55 }
 0xf7a   :  { %v3309_v15 = vpop.f32.mrf.mxu0 }
 0xf7b   :  { %v3310_v42 = vadd.f32 %v3309_v15, %v3212_v35 }
 0xf7c   :  { %v7573_v58 = vpop.f32.mrf.mxu0 }
 0xf7d   :  { %v3416_v38 = vadd.f32 %v7573_v58, %v3305_v5 }
 0xf7e   :  { %v3396_v50 = vpop.f32.mrf.mxu0 }
 0xf7f   :  { %v3415_v37 = vadd.f32 %v3396_v50, %v3300_v57  ;;  %v3444_v40 = vadd.f32 %v3431_v6, %v3416_v38 }
 0xf80   :  { %v7576_v7 = vpop.f32.mrf.mxu0 }
 0xf81   :  { %v3418_v24 = vadd.f32 %v7576_v7, %v3315_v52  ;;  %v3450_v41 = vsel %vm1976_vm1, %v3444_v40, 0.0  ;;  %v3443_v16 = vadd.f32 %v3426_v31, %v3415_v37  ;;  %v3514_v31 = vld [vmem:[%s9881_s1 + $0x2c0] sm:$0xff] }
 0xf82   :  { %v3406_v63 = vpop.f32.mrf.mxu0 }
 0xf83   :  { %v3417_v61 = vadd.f32 %v3406_v63, %v3310_v42  ;;  %v3446_v60 = vadd.f32 %v3441_v59, %v3418_v24  ;;  %v3447_v45 = vsel %vm1976_vm1, %v3443_v16, 0.0 }
 0xf85   :  { %v3456_v11 = vsel %vm1976_vm1, %v3446_v60, 0.0  ;;  %v3445_v3 = vadd.f32 %v3436_v4, %v3417_v61 }
 0xf86   :  { %3457 = vadd.xlane.f32.xlu0 %v3456_v11 }
 0xf87   :  { %v3453_v13 = vsel %vm1976_vm1, %v3445_v3, 0.0 }
 0xf88   :  { %3454 = vadd.xlane.f32.xlu1 %v3453_v13  ;;  %v3513_v13 = vld [vmem:[%s9881_s1 + $0x2b8] sm:$0xff] }
 0xf8a   :  { %3451 = vadd.xlane.f32.xlu0 %v3450_v41  ;;  %v3515_v41 = vld [vmem:[%s9881_s1 + $0x2c8] sm:$0xff] }
 0xf8e   :  { %3448 = vadd.xlane.f32.xlu0 %v3447_v45  ;;  %v3517_v45 = vld [vmem:[%s9881_s1 + $0x2d8] sm:$0xff] }
0x100f   :  { %v3458_v21 = vpop.xlane.xlu0 %3457 }
0x1010   :  { %v3462_v34 = vmul.f32 0.033333335, %v3458_v21  ;;  %v3518_v21 = vld [vmem:[%s9881_s1 + $0x2e0] sm:$0xff] }
0x1011   :  { %v3455_v26 = vpop.xlane.xlu1 %3454 }
0x1012   :  { %v3466_v0 = vsub.f32 %v3446_v60, %v3462_v34  ;;  %v3461_v44 = vmul.f32 0.033333335, %v3455_v26  ;;  %v3519_v34 = vld [vmem:[%s9881_s1 + $0x2e8] sm:$0xff]  ;;  %v3520_v26 = vld [vmem:[%s9881_s1 + $0x2f0] sm:$0xff] }
0x1013   :  { %v3452_v27 = vpop.xlane.xlu0 %3451 }
0x1014   :  { %v3465_v48 = vsub.f32 %v3445_v3, %v3461_v44  ;;  %v3460_v30 = vmul.f32 0.033333335, %v3452_v27  ;;  %v3470_v46 = vmul.f32 %v3466_v0, %v3466_v0  ;;  %v3522_v44 = vld [vmem:[%s9881_s1 + $0x300] sm:$0xff] }
0x1016   :  { %v3464_v12 = vsub.f32 %v3444_v40, %v3460_v30  ;;  %v3480_v32 = vsel %vm1976_vm1, %v3470_v46, 0.0  ;;  %v3469_v36 = vmul.f32 %v3465_v48, %v3465_v48  ;;  %v3512_v40 = vld [vmem:[%s9881_s1 + $0x2b0] sm:$0xff] }
0x1017   :  { %3481 = vadd.xlane.f32.xlu1 %v3480_v32  ;;  %v3449_v43 = vpop.xlane.xlu0 %3448 }
0x1018   :  { %v3459_v62 = vmul.f32 0.033333335, %v3449_v43  ;;  %v3477_v47 = vsel %vm1976_vm1, %v3469_v36, 0.0  ;;  %v3468_v17 = vmul.f32 %v3464_v12, %v3464_v12  ;;  %v8067_v43 = vld [vmem:[%s9883_s2 + $0x168] sm:$0x3f] }
0x1019   :  { %3478 = vadd.xlane.f32.xlu0 %v3477_v47  ;;  %v8068_v47 = vld [vmem:[%s9883_s2 + $0x160] sm:$0xff] }
0x101a   :  { %v3463_v8 = vsub.f32 %v3443_v16, %v3459_v62  ;;  %v3474_v49 = vsel %vm1976_vm1, %v3468_v17, 0.0  ;;  %v3516_v16 = vld [vmem:[%s9881_s1 + $0x2d0] sm:$0xff]  ;;  %v8069_v17 = vld [vmem:[%s9883_s2 + $0x158] sm:$0xff] }
0x101b   :  { %3475 = vadd.xlane.f32.xlu1 %v3474_v49  ;;  %v8070_v49 = vld [vmem:[%s9883_s2 + $0x150] sm:$0xff] }
0x101c   :  { %v3467_v18 = vmul.f32 %v3463_v8, %v3463_v8 }
0x101e   :  { %v3471_v54 = vsel %vm1976_vm1, %v3467_v18, 0.0 }
0x101f   :  { %3472 = vadd.xlane.f32.xlu0 %v3471_v54  ;;  %v8071_v54 = vld [vmem:[%s9883_s2 + $0x1a8] sm:$0x3f] }
0x102c   :  { %3985 = vperm.xlu1 %7988, %v3979_v2   ;;  %v8072_v2 = vld [vmem:[%s9883_s2 + $0x1a0] sm:$0xff] }
0x1030   :  { %3995 = vperm.xlu1 %7988, %v3981_v25  }
0x1034   :  { %4000 = vperm.xlu1 %7988, %v3982_v19   ;;  %v8073_v19 = vld [vmem:[%s9883_s2 + $0x198] sm:$0xff] }
0x1035   :  { %3990 = vperm.xlu0 %7987, %v3980_v28   ;;  %v8074_v28 = vld [vmem:[%s9883_s2 + $0x190] sm:$0xff] }
0x10a0   :  { %v3482_v22 = vpop.xlane.xlu1 %3481 }
0x10a1   :  { %v3486_v9 = vmul.f32 0.033333335, %v3482_v22 }
0x10a2   :  { %v3479_v33 = vpop.xlane.xlu0 %3478 }
0x10a3   :  { %v3490_v53 = vadd.f32 1e-05, %v3486_v9  ;;  %v3485_v55 = vmul.f32 0.033333335, %v3479_v33 }
0x10a4   :  { %v3476_v35 = vpop.xlane.xlu1 %3475 }
0x10a5   :  { %8035 = vrsqrt.f32 %v3490_v53  ;;  %v3489_v10 = vadd.f32 1e-05, %v3485_v55  ;;  %v3484_v1 = vmul.f32 0.033333335, %v3476_v35 }
0x10a7   :  { %8037 = vrsqrt.f32 %v3489_v10  ;;  %v3488_v56 = vadd.f32 1e-05, %v3484_v1 }
0x10a8   :  { %v3473_v15 = vpop.xlane.xlu0 %3472  ;;  %v3986_v1 = vpop.permute.xlu1 %3985 }
0x10a9   :  { %8039 = vrsqrt.f32 %v3488_v56  ;;  %v3483_v59 = vmul.f32 0.033333335, %v3473_v15 }
0x10ab   :  { %v3487_v58 = vadd.f32 1e-05, %v3483_v59 }
0x10ad   :  { %8041 = vrsqrt.f32 %v3487_v58 }
0x10b2   :  { %v8036_v50 = vpop.eup %8035 }
0x10b3   :  { %v3498_v5 = vmul.f32 %v8036_v50, %v3466_v0  ;;  %v3521_v0 = vld [vmem:[%s9881_s1 + $0x2f8] sm:$0xff] }
0x10b4   :  { %v8038_v52 = vpop.eup %8037 }
0x10b5   :  { %vm3502_vm5 = vcmp.gt.f32.partialorder %v3498_v5, 0.0  ;;  %v3506_v7 = vmul.f32 0.01, %v3498_v5  ;;  %v3497_v42 = vmul.f32 %v8038_v52, %v3465_v48 }
0x10b6   :  { %v8040_v38 = vpop.eup %8039 }
0x10b7   :  { %v3510_v24 = vsel %vm3502_vm5, %v3498_v5, %v3506_v7  ;;  %vm3501_vm6 = vcmp.gt.f32.partialorder %v3497_v42, 0.0  ;;  %v3505_v6 = vmul.f32 0.01, %v3497_v42  ;;  %v3496_v63 = vmul.f32 %v8040_v38, %v3464_v12  ;;  %v3991_v5 = vpop.permute.xlu0 %3990  ;;  %v3996_v38 = vpop.permute.xlu1 %3995 }
0x10b8   :  { %7577 = vmatprep.subr.mxu1 %v3510_v24 }
0x10b9   :  { %7578 = vmatpush3.msra.mxu1 %v3510_v24  ;;  %v3509_v57 = vsel %vm3501_vm6, %v3497_v42, %v3505_v6  ;;  %vm3500_vm7 = vcmp.gt.f32.partialorder %v3496_v63, 0.0  ;;  %v3504_v61 = vmul.f32 0.01, %v3496_v63 }
0x10ba   :  { %v8042_v60 = vpop.eup %8041  ;;  %7579 = vmatprep.subr.mxu1 %v3509_v57 }
0x10bb   :  { %7580 = vmatpush3.msra.mxu1 %v3509_v57  ;;  %v3508_v4 = vsel %vm3500_vm7, %v3496_v63, %v3504_v61  ;;  %v3495_v37 = vmul.f32 %v8042_v60, %v3463_v8 }
0x10bc   :  { %7581 = vmatprep.subr.mxu1 %v3508_v4 }
0x10bd   :  { %7582 = vmatpush3.msra.mxu1 %v3508_v4  ;;  %vm3499_vm8 = vcmp.gt.f32.partialorder %v3495_v37, 0.0  ;;  %v3503_v11 = vmul.f32 0.01, %v3495_v37 }
0x10bf   :  { %v3507_v3 = vsel %vm3499_vm8, %v3495_v37, %v3503_v11 }
0x10c0   :  { %7583 = vmatprep.subr.mxu1 %v3507_v3 }
0x10c1   :  { %7584 = vmatpush3.msra.mxu1 %v3507_v3 }
0x10c2   :  { %7586 = vmatmul.mubr.msk.f32.vlgmr.msra.gmra.mxu1 %vm1052_vm0, %v3512_v40  ;;  %v4001_v40 = vpop.permute.xlu1 %4000 }
0x10c3   :  { %7588 = vmatprep.mubr.msk.f32.mxu1 %vm1052_vm0, %v3513_v13 }
0x10c6   :  { %7589 = vmatmul.mubr.msk.f32.gmra.mxu1 %vm1052_vm0, %v3514_v31 }
0x10c7   :  { %7591 = vmatprep.mubr.msk.f32.mxu1 %vm1052_vm0, %v3515_v41 }
0x10ca   :  { %7592 = vmatmul.mubr.msk.f32.gmra.mxu1 %vm1052_vm0, %v3516_v16 }
0x10cb   :  { %7594 = vmatprep.mubr.msk.f32.mxu1 %vm1052_vm0, %v3517_v45 }
0x10ce   :  { %7595 = vmatmul.mubr.msk.f32.gmra.mxu1 %vm1052_vm0, %v3518_v21 }
0x10cf   :  { %7597 = vmatprep.mubr.msk.f32.mxu1 %vm1052_vm0, %v3519_v34 }
0x10d2   :  { %7598 = vmatmul.mubr.msk.f32.gmra.mxu1 %vm1052_vm0, %v3520_v26 }
0x10d3   :  { %7600 = vmatprep.mubr.msk.f32.mxu1 %vm1052_vm0, %v3521_v0 }
0x10d6   :  { %7601 = vmatmul.mubr.msk.f32.gmra.mxu1 %vm1052_vm0, %v3522_v44 }
0x1182   :  { %v7587_v27 = vpop.f32.mrf.mxu1 }
0x1184   :  { %v3625_v48 = vpop.f32.mrf.mxu1 }
0x1186   :  { %v7590_v30 = vpop.f32.mrf.mxu1 }
0x1188   :  { %v3635_v46 = vpop.f32.mrf.mxu1 }
0x118a   :  { %v7593_v12 = vpop.f32.mrf.mxu1 }
0x118c   :  { %v3645_v32 = vpop.f32.mrf.mxu1 }
0x118d   :  { %7611 = vmatprep.mubr.msk.f32.mxu0 %vm1976_vm1, %v3645_v32 }
0x118e   :  { %v7596_v36 = vpop.f32.mrf.mxu1  ;;  %7612 = vmatmul.mubr.msk.f32.vlgmr.msra.gmra.mxu0 %vm1976_vm1, %v7593_v12 }
0x118f   :  { %7618 = vmatpush3.msk.msra.mxu0 %vm1989_vm15, %v8067_v43 }
0x1190   :  { %v3655_v62 = vpop.f32.mrf.mxu1  ;;  %7619 = vmatprep.subr.mxu0 %v8068_v47 }
0x1191   :  { %7614 = vmatprep.mubr.msk.f32.mxu0 %vm1976_vm1, %v3655_v62  ;;  %7620 = vmatpush3.msra.mxu0 %v8068_v47 }
0x1192   :  { %7615 = vmatmul.mubr.msk.f32.gmra.mxu0 %vm1976_vm1, %v7596_v36  ;;  %7621 = vmatprep.subr.mxu0 %v8069_v17  ;;  %v7599_v8 = vpop.f32.mrf.mxu1 }
0x1193   :  { %7622 = vmatpush3.msra.mxu0 %v8069_v17  ;;  %7625 = vmatprep.mubr.msk.f32.mxu0 %vm1976_vm1, %v3625_v48 }
0x1194   :  { %7623 = vmatprep.subr.mxu0 %v8070_v49  ;;  %v3665_v18 = vpop.f32.mrf.mxu1 }
0x1195   :  { %7624 = vmatpush3.msra.mxu0 %v8070_v49 }
0x1196   :  { %7626 = vmatmul.mubr.msk.f32.vlgmr.msra.gmra.mxu0 %vm1976_vm1, %v7587_v27  ;;  %7631 = vmatprep.subr.msk.mxu0 %vm1989_vm15, %v8071_v54  ;;  %v7602_v25 = vpop.f32.mrf.mxu1 }
0x1197   :  { %7628 = vmatprep.mubr.msk.f32.mxu0 %vm1976_vm1, %v3635_v46  ;;  %7632 = vmatpush3.msk.msra.mxu0 %vm1989_vm15, %v8071_v54  ;;  %v4885_v54 = vld [vmem:[%s9881_s1 + $0x3f8] sm:$0xff] }
0x1198   :  { %7633 = vmatprep.subr.mxu0 %v8072_v2  ;;  %v3675_v51 = vpop.f32.mrf.mxu1 }
0x1199   :  { %7634 = vmatpush3.msra.mxu0 %v8072_v2  ;;  %v4886_v2 = vld [vmem:[%s9881_s1 + $0x400] sm:$0xff] }
0x119a   :  { %7629 = vmatmul.mubr.msk.f32.gmra.mxu0 %vm1976_vm1, %v7590_v30  ;;  %7635 = vmatprep.subr.mxu0 %v8073_v19 }
0x119b   :  { %7636 = vmatpush3.msra.mxu0 %v8073_v19  ;;  %7639 = vmatprep.mubr.msk.f32.mxu0 %vm1976_vm1, %v3665_v18  ;;  %v4883_v18 = vld [vmem:[%s9881_s1 + $0x3e8] sm:$0xff] }
0x119c   :  { %7637 = vmatprep.subr.mxu0 %v8074_v28  ;;  %v4090_v19 = vld [vmem:[%s9883_s2 + $0x1c8] sm:$0x3f] }
0x119d   :  { %7638 = vmatpush3.msra.mxu0 %v8074_v28  ;;  %v4089_v28 = vld [vmem:[%s9883_s2 + $0x1c0] sm:$0xff]  ;;  %7645 = vmatprep.subr.msk.mxu1 %vm1989_vm15, %v4090_v19 }
0x119e   :  { %7640 = vmatmul.mubr.msk.f32.vlgmr.msra.gmra.mxu0 %vm1976_vm1, %v7599_v8  ;;  %7646 = vmatpush3.msk.msra.mxu1 %vm1989_vm15, %v4090_v19  ;;  %v4208_v19 = vld [vmem:[%s9881_s1 + $0x380] sm:$0xff] }
0x119f   :  { %7642 = vmatprep.mubr.msk.f32.mxu0 %vm1976_vm1, %v3675_v51  ;;  %v4888_v51 = vld [vmem:[%s9881_s1 + $0x410] sm:$0xff]  ;;  %7647 = vmatprep.subr.mxu1 %v4089_v28 }
0x11a0   :  { %7648 = vmatpush3.msra.mxu1 %v4089_v28  ;;  %v4209_v28 = vld [vmem:[%s9881_s1 + $0x388] sm:$0xff] }
0x11a2   :  { %7643 = vmatmul.mubr.msk.f32.gmra.mxu0 %vm1976_vm1, %v7602_v25  ;;  %v4884_v25 = vld [vmem:[%s9881_s1 + $0x3f0] sm:$0xff] }
0x124e   :  { %v7613_v22 = vpop.f32.mrf.mxu0 }
0x1250   :  { %v3762_v9 = vpop.f32.mrf.mxu0 }
0x1252   :  { %v7616_v33 = vpop.f32.mrf.mxu0 }
0x1254   :  { %v3772_v53 = vpop.f32.mrf.mxu0 }
0x1256   :  { %v7627_v55 = vpop.f32.mrf.mxu0 }
0x1257   :  { %v3865_v15 = vadd.f32 %v7627_v55, %v7613_v22  ;;  %v4887_v22 = vld [vmem:[%s9881_s1 + $0x408] sm:$0xff]  ;;  %v4889_v55 = vld [vmem:[%s9881_s1 + $0x418] sm:$0xff] }
0x1258   :  { %v3859_v35 = vpop.f32.mrf.mxu0 }
0x1259   :  { %v3860_v58 = vadd.f32 %v3859_v35, %v3762_v9  ;;  %v4088_v9 = vld [vmem:[%s9883_s2 + $0x1b8] sm:$0xff] }
0x125a   :  { %v7630_v10 = vpop.f32.mrf.mxu0  ;;  %7649 = vmatprep.subr.mxu1 %v4088_v9 }
0x125b   :  { %v3875_v6 = vadd.f32 %v7630_v10, %v7616_v33  ;;  %v4087_v33 = vld [vmem:[%s9883_s2 + $0x1b0] sm:$0xff]  ;;  %7650 = vmatpush3.msra.mxu1 %v4088_v9  ;;  %v4212_v9 = vld [vmem:[%s9881_s1 + $0x3a0] sm:$0xff] }
0x125c   :  { %v3869_v56 = vpop.f32.mrf.mxu0  ;;  %7651 = vmatprep.subr.mxu1 %v4087_v33 }
0x125d   :  { %v3870_v63 = vadd.f32 %v3869_v56, %v3772_v53  ;;  %v4890_v53 = vld [vmem:[%s9881_s1 + $0x420] sm:$0xff]  ;;  %7652 = vmatpush3.msra.mxu1 %v4087_v33  ;;  %v4213_v33 = vld [vmem:[%s9881_s1 + $0x3a8] sm:$0xff] }
0x125e   :  { %v7641_v59 = vpop.f32.mrf.mxu0 }
0x125f   :  { %v3976_v50 = vadd.f32 %v7641_v59, %v3865_v15 }
0x1260   :  { %v3956_v52 = vpop.f32.mrf.mxu0 }
0x1261   :  { %v3975_v7 = vadd.f32 %v3956_v52, %v3860_v58  ;;  %v4004_v42 = vadd.f32 %v3991_v5, %v3976_v50 }
0x1262   :  { %v7644_v24 = vpop.f32.mrf.mxu0 }
0x1263   :  { %v4010_v57 = vsel %vm1976_vm1, %v4004_v42, 0.0  ;;  %v4003_v61 = vadd.f32 %v3986_v1, %v3975_v7  ;;  %v3978_v4 = vadd.f32 %v7644_v24, %v3875_v6 }
0x1264   :  { %v3966_v60 = vpop.f32.mrf.mxu0  ;;  %4011 = vadd.xlane.f32.xlu1 %v4010_v57 }
0x1265   :  { %v3977_v37 = vadd.f32 %v3966_v60, %v3870_v63  ;;  %v4007_v11 = vsel %vm1976_vm1, %v4003_v61, 0.0  ;;  %v4006_v31 = vadd.f32 %v4001_v40, %v3978_v4 }
0x1266   :  { %4008 = vadd.xlane.f32.xlu0 %v4007_v11 }
0x1267   :  { %v4005_v3 = vadd.f32 %v3996_v38, %v3977_v37  ;;  %v4016_v41 = vsel %vm1976_vm1, %v4006_v31, 0.0 }
0x1269   :  { %v4013_v13 = vsel %vm1976_vm1, %v4005_v3, 0.0 }
0x126a   :  { %4014 = vadd.xlane.f32.xlu0 %v4013_v13 }
0x126e   :  { %4017 = vadd.xlane.f32.xlu0 %v4016_v41 }
0x12ed   :  { %v4012_v16 = vpop.xlane.xlu1 %4011 }
0x12ee   :  { %v4020_v45 = vmul.f32 0.033333335, %v4012_v16 }
0x12ef   :  { %v4009_v21 = vpop.xlane.xlu0 %4008 }
0x12f0   :  { %v9264_v34 = vsub.f32 %v4004_v42, %v4020_v45  ;;  %v4019_v26 = vmul.f32 0.033333335, %v4009_v21 }
0x12f2   :  { %v9266_v0 = vsub.f32 %v4003_v61, %v4019_v26  ;;  %v4028_v44 = vmul.f32 %v9264_v34, %v9264_v34 }
0x12f3   :  { %v4015_v27 = vpop.xlane.xlu0 %4014 }
0x12f4   :  { %v4021_v48 = vmul.f32 0.033333335, %v4015_v27  ;;  %v4034_v30 = vsel %vm1976_vm1, %v4028_v44, 0.0  ;;  %v4027_v46 = vmul.f32 %v9266_v0, %v9266_v0 }
0x12f5   :  { %4035 = vadd.xlane.f32.xlu0 %v4034_v30 }
0x12f6   :  { %v9273_v12 = vsub.f32 %v4005_v3, %v4021_v48  ;;  %v4031_v32 = vsel %vm1976_vm1, %v4027_v46, 0.0 }
0x12f7   :  { %4032 = vadd.xlane.f32.xlu1 %v4031_v32  ;;  %v4018_v36 = vpop.xlane.xlu0 %4017 }
0x12f8   :  { %v4022_v43 = vmul.f32 0.033333335, %v4018_v36  ;;  %v4029_v62 = vmul.f32 %v9273_v12, %v9273_v12 }
0x12fa   :  { %v9278_v47 = vsub.f32 %v4006_v31, %v4022_v43  ;;  %v4037_v17 = vsel %vm1976_vm1, %v4029_v62, 0.0  ;;  %v4199_v62 = vld [vmem:[%s9881_s1 + $0x338] sm:$0xff] }
0x12fb   :  { %4038 = vadd.xlane.f32.xlu1 %v4037_v17  ;;  %v4201_v17 = vld [vmem:[%s9881_s1 + $0x348] sm:$0xff] }
0x12fc   :  { %v4030_v8 = vmul.f32 %v9278_v47, %v9278_v47 }
0x12fe   :  { %v4040_v49 = vsel %vm1976_vm1, %v4030_v8, 0.0  ;;  %v4202_v8 = vld [vmem:[%s9881_s1 + $0x350] sm:$0xff] }
0x12ff   :  { %4041 = vadd.xlane.f32.xlu0 %v4040_v49  ;;  %v4203_v49 = vld [vmem:[%s9881_s1 + $0x358] sm:$0xff] }
0x130c   :  { %4893 = vperm.xlu1 %7988, %v4883_v18   ;;  %v4204_v18 = vld [vmem:[%s9881_s1 + $0x360] sm:$0xff] }
0x1310   :  { %4903 = vperm.xlu1 %7988, %v4885_v54   ;;  %v4205_v54 = vld [vmem:[%s9881_s1 + $0x368] sm:$0xff] }
0x1314   :  { %4908 = vperm.xlu1 %7988, %v4886_v2   ;;  %v4206_v2 = vld [vmem:[%s9881_s1 + $0x370] sm:$0xff] }
0x1315   :  { %4898 = vperm.xlu0 %7987, %v4884_v25   ;;  %v4207_v25 = vld [vmem:[%s9881_s1 + $0x378] sm:$0xff] }
0x1318   :  { %4918 = vperm.xlu1 %7988, %v4888_v51   ;;  %v4210_v51 = vld [vmem:[%s9881_s1 + $0x390] sm:$0xff] }
0x1319   :  { %4913 = vperm.xlu0 %7987, %v4887_v22   ;;  %v4211_v22 = vld [vmem:[%s9881_s1 + $0x398] sm:$0xff] }
0x131c   :  { %4928 = vperm.xlu1 %7988, %v4890_v53   ;;  %v4214_v53 = vld [vmem:[%s9881_s1 + $0x3b0] sm:$0xff] }
0x131d   :  { %4923 = vperm.xlu0 %7987, %v4889_v55   ;;  %v4215_v55 = vld [vmem:[%s9881_s1 + $0x3b8] sm:$0xff] }
0x137e   :  { %v4036_v35 = vpop.xlane.xlu0 %4035 }
0x137f   :  { %v4044_v10 = vmul.f32 0.033333335, %v4036_v35  ;;  %v4216_v35 = vld [vmem:[%s9881_s1 + $0x3c0] sm:$0xff] }
0x1380   :  { %v4033_v1 = vpop.xlane.xlu1 %4032 }
0x1381   :  { %v4048_v56 = vadd.f32 1e-05, %v4044_v10  ;;  %v4043_v15 = vmul.f32 0.033333335, %v4033_v1  ;;  %v4217_v10 = vld [vmem:[%s9881_s1 + $0x3c8] sm:$0xff]  ;;  %v4218_v1 = vld [vmem:[%s9881_s1 + $0x3d0] sm:$0xff] }
0x1383   :  { %8043 = vrsqrt.f32 %v4048_v56  ;;  %v4047_v59 = vadd.f32 1e-05, %v4043_v15  ;;  %v4219_v56 = vld [vmem:[%s9881_s1 + $0x3d8] sm:$0xff]  ;;  %v4220_v15 = vld [vmem:[%s9881_s1 + $0x3e0] sm:$0xff] }
0x1384   :  { %v4039_v58 = vpop.xlane.xlu1 %4038 }
0x1385   :  { %8045 = vrsqrt.f32 %v4047_v59  ;;  %v4045_v50 = vmul.f32 0.033333335, %v4039_v58  ;;  %v4194_v59 = vld [vmem:[%s9883_s2 + $0x1e8] sm:$0x3f]  ;;  %v4193_v58 = vld [vmem:[%s9883_s2 + $0x1e0] sm:$0xff] }
0x1386   :  { %7703 = vmatprep.subr.msk.mxu1 %vm1989_vm15, %v4194_v59 }
0x1387   :  { %v4049_v5 = vadd.f32 1e-05, %v4045_v50  ;;  %v4192_v50 = vld [vmem:[%s9883_s2 + $0x1d8] sm:$0x3f] }
0x1388   :  { %v4042_v52 = vpop.xlane.xlu0 %4041 }
0x1389   :  { %8047 = vrsqrt.f32 %v4049_v5  ;;  %v4046_v7 = vmul.f32 0.033333335, %v4042_v52 }
0x138b   :  { %v4050_v42 = vadd.f32 1e-05, %v4046_v7 }
0x138d   :  { %8049 = vrsqrt.f32 %v4050_v42 }
0x1390   :  { %v8044_v38 = vpop.eup %8043 }
0x1391   :  { %v4056_v24 = vmul.f32 %v8044_v38, %v9264_v34 }
0x1392   :  { %v8046_v6 = vpop.eup %8045 }
0x1393   :  { %v4055_v63 = vmul.f32 %v8046_v6, %v9266_v0  ;;  %vm4060_vm9 = vcmp.gt.f32.partialorder %v4056_v24, 0.0  ;;  %v4064_v57 = vmul.f32 0.01, %v4056_v24 }
0x1395   :  { %vm4059_vm14 = vcmp.gt.f32.partialorder %v4055_v63, 0.0  ;;  %v4063_v61 = vmul.f32 0.01, %v4055_v63  ;;  %v4068_v60 = vsel %vm4060_vm9, %v4056_v24, %v4064_v57 }
0x1396   :  { %v8048_v4 = vpop.eup %8047  ;;  %v4072_v37 = vadd.f32 %v4068_v60, %v9058_v23  ;;  %v4191_v60 = vld [vmem:[%s9883_s2 + $0x1d0] sm:$0xff] }
0x1397   :  { %v4067_v11 = vsel %vm4059_vm14, %v4055_v63, %v4063_v61  ;;  %v4057_v3 = vmul.f32 %v8048_v4, %v9273_v12 }
0x1398   :  { %v4071_v40 = vadd.f32 %v4067_v11, %v9063_v29  ;;  %v4080_v13 = vmul.f32 0.01, %v4072_v37  ;;  %vm4076_vm4 = vcmp.gt.f32.partialorder %v4072_v37, 0.0 }
0x1399   :  { %vm4061_vm2 = vcmp.gt.f32.partialorder %v4057_v3, 0.0  ;;  %v4065_v31 = vmul.f32 0.01, %v4057_v3 }
0x139a   :  { %v8050_v41 = vpop.eup %8049  ;;  %vm4075_vm3 = vcmp.gt.f32.partialorder %v4071_v40, 0.0  ;;  %v4079_v16 = vmul.f32 0.01, %v4071_v40  ;;  %v4084_v23 = vsel %vm4076_vm4, %v4072_v37, %v4080_v13  ;;  %v4196_v37 = vld [vmem:[%s9883_s2 + $0x1f8] sm:$0x3f] }
0x139b   :  { %v4069_v45 = vsel %vm4061_vm2, %v4057_v3, %v4065_v31  ;;  %v4058_v21 = vmul.f32 %v8050_v41, %v9278_v47  ;;  %v4200_v47 = vld [vmem:[%s9881_s1 + $0x340] sm:$0xff] }
0x139c   :  { %v4083_v34 = vsel %vm4075_vm3, %v4071_v40, %v4079_v16  ;;  %v4073_v26 = vadd.f32 %v4069_v45, %v9054_v20  ;;  %v4197_v20 = vld [vmem:[%s9881_s1 + $0x328] sm:$0xff]  ;;  %v4195_v16 = vld [vmem:[%s9883_s2 + $0x1f0] sm:$0xff] }
0x139d   :  { %7653 = vmatprep.mubr.msk.f32.mxu1 %vm1976_vm1, %v4083_v34  ;;  %vm4062_vm5 = vcmp.gt.f32.partialorder %v4058_v21, 0.0  ;;  %v4066_v0 = vmul.f32 0.01, %v4058_v21  ;;  %7667 = vmatprep.mubr.msk.f32.mxu0 %vm1052_vm0, %v4197_v20 }
0x139e   :  { %7654 = vmatmul.mubr.msk.f32.vlgmr.msra.gmra.mxu1 %vm1976_vm1, %v4084_v23  ;;  %vm4077_vm6 = vcmp.gt.f32.partialorder %v4073_v26, 0.0  ;;  %v4081_v29 = vmul.f32 0.01, %v4073_v26 }
0x139f   :  { %v4070_v44 = vsel %vm4062_vm5, %v4058_v21, %v4066_v0  ;;  %7704 = vmatpush3.msk.msra.mxu1 %vm1989_vm15, %v4194_v59 }
0x13a0   :  { %v4085_v27 = vsel %vm4077_vm6, %v4073_v26, %v4081_v29  ;;  %v4074_v48 = vadd.f32 %v4070_v44, %v9049_v39  ;;  %v4198_v39 = vld [vmem:[%s9881_s1 + $0x330] sm:$0xff]  ;;  %7705 = vmatprep.subr.mxu1 %v4193_v58 }
0x13a1   :  { %7656 = vmatprep.mubr.msk.f32.mxu1 %vm1976_vm1, %v4085_v27  ;;  %7706 = vmatpush3.msra.mxu1 %v4193_v58 }
0x13a2   :  { %vm4078_vm7 = vcmp.gt.f32.partialorder %v4074_v48, 0.0  ;;  %v4082_v30 = vmul.f32 0.01, %v4074_v48  ;;  %7719 = vmatprep.subr.msk.mxu1 %vm1989_vm15, %v4192_v50 }
0x13a4   :  { %v4086_v46 = vsel %vm4078_vm7, %v4074_v48, %v4082_v30 }
0x13a5   :  { %7657 = vmatmul.mubr.msk.f32.gmra.mxu1 %vm1976_vm1, %v4086_v46  ;;  %vm5081_vm1 = vcmask 1041408  }
0x145e   :  { %v7655_v12 = vpop.f32.mrf.mxu1 }
0x1460   :  { %v4172_v32 = vpop.f32.mrf.mxu1 }
0x1465   :  { %v7658_v36 = vpop.f32.mrf.mxu1 }
0x1466   :  { %7659 = vmatprep.subr.mxu0 %v7658_v36 }
0x1467   :  { %v4182_v43 = vpop.f32.mrf.mxu1  ;;  %7660 = vmatpush3.msra.mxu0 %v7658_v36 }
0x1468   :  { %7661 = vmatprep.subr.mxu0 %v4182_v43 }
0x1469   :  { %7662 = vmatpush3.msra.mxu0 %v4182_v43 }
0x146a   :  { %7663 = vmatprep.subr.mxu0 %v7655_v12 }
0x146b   :  { %7664 = vmatpush3.msra.mxu0 %v7655_v12 }
0x146c   :  { %7665 = vmatprep.subr.mxu0 %v4172_v32 }
0x146d   :  { %7666 = vmatpush3.msra.mxu0 %v4172_v32 }
0x146e   :  { %7668 = vmatmul.mubr.msk.f32.vlgmr.msra.gmra.mxu0 %vm1052_vm0, %v4198_v39 }
0x146f   :  { %7670 = vmatprep.mubr.msk.f32.mxu0 %vm1052_vm0, %v4199_v62 }
0x1472   :  { %7671 = vmatmul.mubr.msk.f32.gmra.mxu0 %vm1052_vm0, %v4200_v47 }
0x1473   :  { %7673 = vmatprep.mubr.msk.f32.mxu0 %vm1052_vm0, %v4201_v17  ;;  %v4894_v17 = vpop.permute.xlu1 %4893 }
0x1476   :  { %7674 = vmatmul.mubr.msk.f32.gmra.mxu0 %vm1052_vm0, %v4202_v8 }
0x1477   :  { %7676 = vmatprep.mubr.msk.f32.mxu0 %vm1052_vm0, %v4203_v49 }
0x147a   :  { %7677 = vmatmul.mubr.msk.f32.gmra.mxu0 %vm1052_vm0, %v4204_v18 }
0x147b   :  { %7679 = vmatprep.mubr.msk.f32.mxu0 %vm1052_vm0, %v4205_v54 }
0x147e   :  { %7680 = vmatmul.mubr.msk.f32.gmra.mxu0 %vm1052_vm0, %v4206_v2  ;;  %v4904_v2 = vpop.permute.xlu1 %4903 }
0x147f   :  { %7682 = vmatprep.mubr.msk.f32.mxu0 %vm1052_vm0, %v4207_v25 }
0x1482   :  { %7683 = vmatmul.mubr.msk.f32.gmra.mxu0 %vm1052_vm0, %v4208_v19 }
0x1483   :  { %7685 = vmatprep.mubr.msk.f32.mxu0 %vm1052_vm0, %v4209_v28 }
0x1486   :  { %7686 = vmatmul.mubr.msk.f32.gmra.mxu0 %vm1052_vm0, %v4210_v51  ;;  %v4899_v51 = vpop.permute.xlu0 %4898 }
0x1487   :  { %7688 = vmatprep.mubr.msk.f32.mxu0 %vm1052_vm0, %v4211_v22 }
0x148a   :  { %7689 = vmatmul.mubr.msk.f32.gmra.mxu0 %vm1052_vm0, %v4212_v9 }
0x148b   :  { %7691 = vmatprep.mubr.msk.f32.mxu0 %vm1052_vm0, %v4213_v33 }
0x148e   :  { %7692 = vmatmul.mubr.msk.f32.gmra.mxu0 %vm1052_vm0, %v4214_v53 }
0x148f   :  { %7694 = vmatprep.mubr.msk.f32.mxu0 %vm1052_vm0, %v4215_v55 }
0x1492   :  { %7695 = vmatmul.mubr.msk.f32.gmra.mxu0 %vm1052_vm0, %v4216_v35 }
0x1493   :  { %7697 = vmatprep.mubr.msk.f32.mxu0 %vm1052_vm0, %v4217_v10 }
0x1496   :  { %7698 = vmatmul.mubr.msk.f32.gmra.mxu0 %vm1052_vm0, %v4218_v1 }
0x1497   :  { %7700 = vmatprep.mubr.msk.f32.mxu0 %vm1052_vm0, %v4219_v56  ;;  %v4909_v56 = vpop.permute.xlu1 %4908 }
0x149a   :  { %7701 = vmatmul.mubr.msk.f32.gmra.mxu0 %vm1052_vm0, %v4220_v15  ;;  %vm4478_vm0 = vcmask 113664  }
0x152e   :  { %v7669_v5 = vpop.f32.mrf.mxu0 }
0x1530   :  { %v4359_v52 = vpop.f32.mrf.mxu0 }
0x1532   :  { %v7672_v7 = vpop.f32.mrf.mxu0 }
0x1534   :  { %v4369_v42 = vpop.f32.mrf.mxu0 }
0x1536   :  { %v7675_v38 = vpop.f32.mrf.mxu0 }
0x1538   :  { %v4379_v24 = vpop.f32.mrf.mxu0 }
0x153a   :  { %v7678_v6 = vpop.f32.mrf.mxu0 }
0x153c   :  { %v4389_v63 = vpop.f32.mrf.mxu0 }
0x153e   :  { %v7681_v57 = vpop.f32.mrf.mxu0 }
0x1540   :  { %v4399_v61 = vpop.f32.mrf.mxu0 }
0x1541   :  { %7707 = vmatprep.mubr.msk.f32.mxu1 %vm4478_vm0, %v4399_v61 }
0x1542   :  { %v7684_v4 = vpop.f32.mrf.mxu0  ;;  %7708 = vmatmul.mubr.msk.f32.vlgmr.msra.gmra.mxu1 %vm4478_vm0, %v7681_v57 }
0x1543   :  { %7720 = vmatpush3.msk.msra.mxu1 %vm1989_vm15, %v4192_v50 }
0x1544   :  { %v4409_v11 = vpop.f32.mrf.mxu0  ;;  %7721 = vmatprep.subr.mxu1 %v4191_v60 }
0x1545   :  { %7710 = vmatprep.mubr.msk.f32.mxu1 %vm4478_vm0, %v4409_v11  ;;  %7722 = vmatpush3.msra.mxu1 %v4191_v60  ;;  %v4919_v60 = vpop.permute.xlu1 %4918 }
0x1546   :  { %v7687_v3 = vpop.f32.mrf.mxu0  ;;  %7711 = vmatmul.mubr.msk.f32.gmra.mxu1 %vm4478_vm0, %v7684_v4  ;;  %7735 = vmatprep.subr.msk.mxu1 %vm1989_vm15, %v4196_v37 }
0x1548   :  { %v4419_v40 = vpop.f32.mrf.mxu0 }
0x1549   :  { %7713 = vmatprep.mubr.msk.f32.mxu1 %vm4478_vm0, %v4419_v40 }
0x154a   :  { %v7690_v13 = vpop.f32.mrf.mxu0  ;;  %7714 = vmatmul.mubr.msk.f32.gmra.mxu1 %vm4478_vm0, %v7687_v3 }
0x154c   :  { %v4429_v31 = vpop.f32.mrf.mxu0 }
0x154d   :  { %7716 = vmatprep.mubr.msk.f32.mxu1 %vm4478_vm0, %v4429_v31 }
0x154e   :  { %7717 = vmatmul.mubr.msk.f32.gmra.mxu1 %vm4478_vm0, %v7690_v13  ;;  %v7693_v41 = vpop.f32.mrf.mxu0 }
0x154f   :  { %7723 = vmatprep.mubr.msk.f32.mxu1 %vm4478_vm0, %v4359_v52 }
0x1550   :  { %v4439_v45 = vpop.f32.mrf.mxu0 }
0x1552   :  { %7724 = vmatmul.mubr.msk.f32.vlgmr.msra.gmra.mxu1 %vm4478_vm0, %v7669_v5  ;;  %v7696_v21 = vpop.f32.mrf.mxu0 }
0x1553   :  { %7726 = vmatprep.mubr.msk.f32.mxu1 %vm4478_vm0, %v4369_v42  ;;  %7736 = vmatpush3.msk.msra.mxu1 %vm1989_vm15, %v4196_v37  ;;  %vm4939_vm15 = vcmask 80896  }
0x1554   :  { %7737 = vmatprep.subr.mxu1 %v4195_v16  ;;  %v4449_v34 = vpop.f32.mrf.mxu0 }
0x1555   :  { %7738 = vmatpush3.msra.mxu1 %v4195_v16 }
0x1556   :  { %7727 = vmatmul.mubr.msk.f32.gmra.mxu1 %vm4478_vm0, %v7672_v7  ;;  %v7699_v26 = vpop.f32.mrf.mxu0 }
0x1557   :  { %7729 = vmatprep.mubr.msk.f32.mxu1 %vm4478_vm0, %v4379_v24 }
0x1558   :  { %v4459_v23 = vpop.f32.mrf.mxu0 }
0x155a   :  { %7730 = vmatmul.mubr.msk.f32.gmra.mxu1 %vm4478_vm0, %v7675_v38  ;;  %v7702_v0 = vpop.f32.mrf.mxu0  ;;  %v4914_v38 = vpop.permute.xlu0 %4913 }
0x155b   :  { %7732 = vmatprep.mubr.msk.f32.mxu1 %vm4478_vm0, %v4389_v63 }
0x155c   :  { %v4469_v29 = vpop.f32.mrf.mxu0 }
0x155e   :  { %7733 = vmatmul.mubr.msk.f32.gmra.mxu1 %vm4478_vm0, %v7678_v6 }
0x155f   :  { %7739 = vmatprep.mubr.msk.f32.mxu1 %vm4478_vm0, %v4439_v45 }
0x1562   :  { %7740 = vmatmul.mubr.msk.f32.vlgmr.msra.gmra.mxu1 %vm4478_vm0, %v7693_v41 }
0x1563   :  { %7742 = vmatprep.mubr.msk.f32.mxu1 %vm4478_vm0, %v4449_v34 }
0x1566   :  { %7743 = vmatmul.mubr.msk.f32.gmra.mxu1 %vm4478_vm0, %v7696_v21  ;;  %v4924_v21 = vpop.permute.xlu0 %4923 }
0x1567   :  { %7745 = vmatprep.mubr.msk.f32.mxu1 %vm4478_vm0, %v4459_v23 }
0x156a   :  { %7746 = vmatmul.mubr.msk.f32.gmra.mxu1 %vm4478_vm0, %v7699_v26  ;;  %v4929_v26 = vpop.permute.xlu1 %4928 }
0x156b   :  { %7748 = vmatprep.mubr.msk.f32.mxu1 %vm4478_vm0, %v4469_v29 }
0x156e   :  { %7749 = vmatmul.mubr.msk.f32.gmra.mxu1 %vm4478_vm0, %v7702_v0 }
0x1602   :  { %v7709_v44 = vpop.f32.mrf.mxu1 }
0x1604   :  { %v4572_v27 = vpop.f32.mrf.mxu1 }
0x1606   :  { %v7712_v48 = vpop.f32.mrf.mxu1 }
0x1608   :  { %v4582_v30 = vpop.f32.mrf.mxu1 }
0x160a   :  { %v7715_v46 = vpop.f32.mrf.mxu1 }
0x160c   :  { %v4592_v20 = vpop.f32.mrf.mxu1 }
0x160e   :  { %v7718_v12 = vpop.f32.mrf.mxu1 }
0x1610   :  { %v4602_v32 = vpop.f32.mrf.mxu1 }
0x1612   :  { %v7725_v36 = vpop.f32.mrf.mxu1 }
0x1613   :  { %v4710_v54 = vadd.f32 %v7725_v36, %v7709_v44 }
0x1614   :  { %v4704_v43 = vpop.f32.mrf.mxu1 }
0x1615   :  { %v4705_v19 = vadd.f32 %v4704_v43, %v4572_v27 }
0x1616   :  { %v7728_v39 = vpop.f32.mrf.mxu1 }
0x1617   :  { %v4720_v53 = vadd.f32 %v7728_v39, %v7712_v48 }
0x1618   :  { %v4714_v62 = vpop.f32.mrf.mxu1 }
0x1619   :  { %v4715_v35 = vadd.f32 %v4714_v62, %v4582_v30 }
0x161a   :  { %v7731_v47 = vpop.f32.mrf.mxu1 }
0x161b   :  { %v4730_v52 = vadd.f32 %v7731_v47, %v7715_v46 }
0x161c   :  { %v4724_v8 = vpop.f32.mrf.mxu1 }
0x161d   :  { %v4725_v7 = vadd.f32 %v4724_v8, %v4592_v20 }
0x161e   :  { %v7734_v49 = vpop.f32.mrf.mxu1 }
0x161f   :  { %v4740_v37 = vadd.f32 %v7734_v49, %v7718_v12 }
0x1620   :  { %v4734_v18 = vpop.f32.mrf.mxu1 }
0x1621   :  { %v4735_v11 = vadd.f32 %v4734_v18, %v4602_v32 }
0x1622   :  { %v7741_v25 = vpop.f32.mrf.mxu1 }
0x1623   :  { %v4876_v28 = vadd.f32 %v7741_v25, %v4710_v54 }
0x1624   :  { %v4836_v22 = vpop.f32.mrf.mxu1 }
0x1625   :  { %v4875_v9 = vadd.f32 %v4836_v22, %v4705_v19  ;;  %v4932_v33 = vadd.f32 %v4899_v51, %v4876_v28 }
0x1626   :  { %v7744_v55 = vpop.f32.mrf.mxu1 }
0x1627   :  { %v4943_v10 = vsel %vm4939_vm15, %v4932_v33, 0.0  ;;  %v4931_v1 = vadd.f32 %v4894_v17, %v4875_v9  ;;  %v4878_v15 = vadd.f32 %v7744_v55, %v4720_v53 }
0x1628   :  { %v4846_v59 = vpop.f32.mrf.mxu1  ;;  %4944 = vadd.xlane.f32.xlu1 %v4943_v10 }
0x1629   :  { %v4877_v58 = vadd.f32 %v4846_v59, %v4715_v35  ;;  %v4940_v50 = vsel %vm4939_vm15, %v4931_v1, 0.0  ;;  %v4934_v6 = vadd.f32 %v4909_v56, %v4878_v15 }
0x162a   :  { %4941 = vadd.xlane.f32.xlu0 %v4940_v50  ;;  %v7747_v5 = vpop.f32.mrf.mxu1 }
0x162b   :  { %v4933_v42 = vadd.f32 %v4904_v2, %v4877_v58  ;;  %v4880_v63 = vadd.f32 %v7747_v5, %v4730_v52  ;;  %v4949_v13 = vsel %vm4939_vm15, %v4934_v6, 0.0 }
0x162c   :  { %v4856_v24 = vpop.f32.mrf.mxu1 }
0x162d   :  { %v4879_v57 = vadd.f32 %v4856_v24, %v4725_v7  ;;  %v4946_v61 = vsel %vm4939_vm15, %v4933_v42, 0.0  ;;  %v4936_v45 = vadd.f32 %v4919_v60, %v4880_v63  ;;  %v6068_v24 = vld [vmem:[%s9881_s1 + $0x5a0] sm:$0xff]  ;;  %v6066_v63 = vld [vmem:[%s9881_s1 + $0x590] sm:$0xff] }
0x162e   :  { %4947 = vadd.xlane.f32.xlu0 %v4946_v61  ;;  %v7750_v4 = vpop.f32.mrf.mxu1  ;;  %v5053_v61 = vld [vmem:[%s9883_s2 + $0x200] sm:$0xff]  ;;  %v5055_v60 = vld [vmem:[%s9883_s2 + $0x210] sm:$0xff] }
0x162f   :  { %v4935_v3 = vadd.f32 %v4914_v38, %v4879_v57  ;;  %v4882_v31 = vadd.f32 %v7750_v4, %v4740_v37  ;;  %v4955_v23 = vsel %vm4939_vm15, %v4936_v45, 0.0  ;;  %v5056_v57 = vld [vmem:[%s9883_s2 + $0x218] sm:$0x3]  ;;  %v6065_v4 = vld [vmem:[%s9881_s1 + $0x588] sm:$0xff] }
0x1630   :  { %v4866_v40 = vpop.f32.mrf.mxu1  ;;  %7767 = vmatprep.subr.msk.mxu1 %vm5081_vm1, %v5056_v57  ;;  %v6067_v37 = vld [vmem:[%s9881_s1 + $0x598] sm:$0xff] }
0x1631   :  { %v4881_v41 = vadd.f32 %v4866_v40, %v4735_v11  ;;  %v4952_v16 = vsel %vm4939_vm15, %v4935_v3, 0.0  ;;  %v4938_v29 = vadd.f32 %v4929_v26, %v4882_v31  ;;  %7768 = vmatpush3.msk.msra.mxu1 %vm5081_vm1, %v5056_v57  ;;  %v6063_v11 = vld [vmem:[%s9881_s1 + $0x578] sm:$0xff]  ;;  %v6061_v40 = vld [vmem:[%s9881_s1 + $0x568] sm:$0xff] }
0x1632   :  { %4950 = vadd.xlane.f32.xlu0 %v4949_v13  ;;  %4953 = vadd.xlane.f32.xlu1 %v4952_v16  ;;  %v6062_v13 = vld [vmem:[%s9881_s1 + $0x570] sm:$0xff]  ;;  %v6059_v31 = vld [vmem:[%s9881_s1 + $0x558] sm:$0xff]  ;;  %v6057_v16 = vld [vmem:[%s9881_s1 + $0x548] sm:$0xff] }
0x1633   :  { %v4937_v34 = vadd.f32 %v4924_v21, %v4881_v41  ;;  %v4961_v44 = vsel %vm4939_vm15, %v4938_v29, 0.0  ;;  %7769 = vmatprep.subr.mxu1 %v5055_v60  ;;  %v6060_v41 = vld [vmem:[%s9881_s1 + $0x560] sm:$0xff]  ;;  %v6055_v21 = vld [vmem:[%s9881_s1 + $0x538] sm:$0xff]  ;;  %v6053_v26 = vld [vmem:[%s9881_s1 + $0x528] sm:$0xff] }
0x1634   :  { %7770 = vmatpush3.msra.mxu1 %v5055_v60 }
0x1635   :  { %v4958_v0 = vsel %vm4939_vm15, %v4937_v34, 0.0 }
0x1636   :  { %4956 = vadd.xlane.f32.xlu0 %v4955_v23  ;;  %4959 = vadd.xlane.f32.xlu1 %v4958_v0  ;;  %v6054_v23 = vld [vmem:[%s9881_s1 + $0x530] sm:$0xff]  ;;  %v6195_v0 = vld [vmem:[%s9881_s1 + $0x618] sm:$0xff] }
0x163a   :  { %4962 = vadd.xlane.f32.xlu0 %v4961_v44  ;;  %v6193_v44 = vld [vmem:[%s9881_s1 + $0x608] sm:$0xff] }
0x16b1   :  { %v4945_v27 = vpop.xlane.xlu1 %4944 }
0x16b2   :  { %v4966_v48 = vmul.f32 0.1, %v4945_v27  ;;  %v6194_v27 = vld [vmem:[%s9881_s1 + $0x610] sm:$0xff] }
0x16b3   :  { %v4942_v30 = vpop.xlane.xlu0 %4941 }
0x16b4   :  { %v9486_v46 = vsub.f32 %v4932_v33, %v4966_v48  ;;  %v4965_v20 = vmul.f32 0.1, %v4942_v30  ;;  %v6191_v48 = vld [vmem:[%s9881_s1 + $0x5f8] sm:$0xff]  ;;  %v6192_v30 = vld [vmem:[%s9881_s1 + $0x600] sm:$0xff] }
0x16b6   :  { %v9488_v12 = vsub.f32 %v4931_v1, %v4965_v20  ;;  %v4982_v32 = vmul.f32 %v9486_v46, %v9486_v46  ;;  %v6189_v20 = vld [vmem:[%s9881_s1 + $0x5e8] sm:$0xff] }
0x16b7   :  { %v4948_v36 = vpop.xlane.xlu0 %4947 }
0x16b8   :  { %v4967_v43 = vmul.f32 0.1, %v4948_v36  ;;  %v4992_v39 = vsel %vm4939_vm15, %v4982_v32, 0.0  ;;  %v4981_v62 = vmul.f32 %v9488_v12, %v9488_v12  ;;  %v6190_v32 = vld [vmem:[%s9881_s1 + $0x5f0] sm:$0xff] }
0x16b9   :  { %4993 = vadd.xlane.f32.xlu0 %v4992_v39  ;;  %v6351_v36 = vld [vmem:[%s9881_s1 + $0x630] sm:$0x3f] }
0x16ba   :  { %v9495_v47 = vsub.f32 %v4933_v42, %v4967_v43  ;;  %v4989_v17 = vsel %vm4939_vm15, %v4981_v62, 0.0 }
0x16bb   :  { %v4954_v8 = vpop.xlane.xlu1 %4953  ;;  %4990 = vadd.xlane.f32.xlu1 %v4989_v17  ;;  %v4951_v49 = vpop.xlane.xlu0 %4950 }
0x16bc   :  { %v4969_v18 = vmul.f32 0.1, %v4954_v8  ;;  %v4968_v54 = vmul.f32 0.1, %v4951_v49  ;;  %v4983_v2 = vmul.f32 %v9495_v47, %v9495_v47 }
0x16be   :  { %v9500_v25 = vsub.f32 %v4935_v3, %v4969_v18  ;;  %v9502_v19 = vsub.f32 %v4934_v6, %v4968_v54  ;;  %v4995_v28 = vsel %vm4939_vm15, %v4983_v2, 0.0  ;;  %v5054_v6 = vld [vmem:[%s9883_s2 + $0x208] sm:$0x3]  ;;  %v6064_v3 = vld [vmem:[%s9881_s1 + $0x580] sm:$0xff] }
0x16bf   :  { %v4960_v51 = vpop.xlane.xlu1 %4959  ;;  %4996 = vadd.xlane.f32.xlu1 %v4995_v28  ;;  %v4957_v22 = vpop.xlane.xlu0 %4956  ;;  %7751 = vmatprep.subr.msk.mxu0 %vm5081_vm1, %v5054_v6 }
0x16c0   :  { %v4971_v9 = vmul.f32 0.1, %v4960_v51  ;;  %v4970_v33 = vmul.f32 0.1, %v4957_v22  ;;  %v4985_v53 = vmul.f32 %v9500_v25, %v9500_v25  ;;  %v4984_v55 = vmul.f32 %v9502_v19, %v9502_v19  ;;  %7752 = vmatpush3.msk.msra.mxu0 %vm5081_vm1, %v5054_v6 }
0x16c1   :  { %7753 = vmatprep.subr.mxu0 %v5053_v61 }
0x16c2   :  { %v9509_v35 = vsub.f32 %v4937_v34, %v4971_v9  ;;  %v9511_v10 = vsub.f32 %v4936_v45, %v4970_v33  ;;  %v5001_v1 = vsel %vm4939_vm15, %v4985_v53, 0.0  ;;  %v4998_v56 = vsel %vm4939_vm15, %v4984_v55, 0.0  ;;  %7754 = vmatpush3.msra.mxu0 %v5053_v61  ;;  %v6058_v45 = vld [vmem:[%s9881_s1 + $0x550] sm:$0xff]  ;;  %v6056_v34 = vld [vmem:[%s9881_s1 + $0x540] sm:$0xff] }
0x16c3   :  { %5002 = vadd.xlane.f32.xlu1 %v5001_v1  ;;  %4999 = vadd.xlane.f32.xlu0 %v4998_v56  ;;  %v4963_v15 = vpop.xlane.xlu0 %4962 }
0x16c4   :  { %v4972_v59 = vmul.f32 0.1, %v4963_v15  ;;  %v4987_v58 = vmul.f32 %v9509_v35, %v9509_v35  ;;  %v4986_v50 = vmul.f32 %v9511_v10, %v9511_v10 }
0x16c6   :  { %v9519_v5 = vsub.f32 %v4938_v29, %v4972_v59  ;;  %v5007_v52 = vsel %vm4939_vm15, %v4987_v58, 0.0  ;;  %v5004_v7 = vsel %vm4939_vm15, %v4986_v50, 0.0  ;;  %v6196_v29 = vld [vmem:[%s9881_s1 + $0x620] sm:$0xff] }
0x16c7   :  { %5008 = vadd.xlane.f32.xlu1 %v5007_v52  ;;  %5005 = vadd.xlane.f32.xlu0 %v5004_v7 }
0x16c8   :  { %v4988_v42 = vmul.f32 %v9519_v5, %v9519_v5 }
0x16ca   :  { %v5010_v38 = vsel %vm4939_vm15, %v4988_v42, 0.0 }
0x16cb   :  { %5011 = vadd.xlane.f32.xlu0 %v5010_v38 }
0x16d8   :  { %6146 = vperm.xlu1 %7988, %v6068_v24  }
0x16dc   :  { %6136 = vperm.xlu1 %7988, %v6066_v63  }
0x16e0   :  { %6131 = vperm.xlu1 %7988, %v6065_v4  }
0x16e1   :  { %6141 = vperm.xlu0 %7987, %v6067_v37  }
0x16e4   :  { %6121 = vperm.xlu1 %7988, %v6063_v11  }
0x16e5   :  { %6126 = vperm.xlu0 %7987, %v6064_v3  }
0x16e8   :  { %6111 = vperm.xlu1 %7988, %v6061_v40  }
0x16e9   :  { %6116 = vperm.xlu0 %7987, %v6062_v13  }
0x16ec   :  { %6101 = vperm.xlu1 %7988, %v6059_v31  }
0x16ed   :  { %6106 = vperm.xlu0 %7987, %v6060_v41  }
0x16f0   :  { %6091 = vperm.xlu1 %7988, %v6057_v16  }
0x16f1   :  { %6096 = vperm.xlu0 %7987, %v6058_v45  }
0x16f4   :  { %6081 = vperm.xlu1 %7988, %v6055_v21  }
0x16f5   :  { %6086 = vperm.xlu0 %7987, %v6056_v34  }
0x16f8   :  { %6071 = vperm.xlu1 %7988, %v6053_v26  }
0x16f9   :  { %6076 = vperm.xlu0 %7987, %v6054_v23  }
0x16fc   :  { %6229 = vperm.xlu1 %7988, %v6195_v0  }
0x16fd   :  { %6234 = vperm.xlu0 %7987, %v6196_v29  }
0x1700   :  { %6219 = vperm.xlu1 %7988, %v6193_v44  }
0x1701   :  { %6224 = vperm.xlu0 %7987, %v6194_v27  }
0x1704   :  { %6209 = vperm.xlu1 %7988, %v6191_v48  }
0x1705   :  { %6214 = vperm.xlu0 %7987, %v6192_v30  }
0x1708   :  { %6199 = vperm.xlu1 %7988, %v6189_v20  }
0x1709   :  { %6204 = vperm.xlu0 %7987, %v6190_v32  }
0x170d   :  { %6354 = vperm.xlu0 %7987, %v6351_v36  }
0x1742   :  { %v4994_v43 = vpop.xlane.xlu0 %4993 }
0x1743   :  { %v5014_v39 = vmul.f32 0.1, %v4994_v43 }
0x1744   :  { %v4991_v62 = vpop.xlane.xlu1 %4990 }
0x1745   :  { %v5022_v17 = vadd.f32 1e-05, %v5014_v39  ;;  %v5013_v8 = vmul.f32 0.1, %v4991_v62 }
0x1747   :  { %8051 = vrsqrt.f32 %v5022_v17  ;;  %v5021_v49 = vadd.f32 1e-05, %v5013_v8 }
0x1748   :  { %v4997_v18 = vpop.xlane.xlu1 %4996 }
0x1749   :  { %8053 = vrsqrt.f32 %v5021_v49  ;;  %v5015_v54 = vmul.f32 0.1, %v4997_v18 }
0x174b   :  { %v5023_v2 = vadd.f32 1e-05, %v5015_v54 }
0x174c   :  { %v5003_v28 = vpop.xlane.xlu1 %5002  ;;  %v5000_v51 = vpop.xlane.xlu0 %4999 }
0x174d   :  { %8055 = vrsqrt.f32 %v5023_v2  ;;  %v5017_v22 = vmul.f32 0.1, %v5003_v28  ;;  %v5016_v9 = vmul.f32 0.1, %v5000_v51  ;;  %v5307_v51 = vld [vmem:[%s9881_s1 + $0x430] sm:$0xff] }
0x174f   :  { %v5025_v33 = vadd.f32 1e-05, %v5017_v22  ;;  %v5024_v53 = vadd.f32 1e-05, %v5016_v9  ;;  %v5308_v22 = vld [vmem:[%s9881_s1 + $0x438] sm:$0xff]  ;;  %v5309_v9 = vld [vmem:[%s9881_s1 + $0x440] sm:$0xff] }
0x1750   :  { %v5009_v55 = vpop.xlane.xlu1 %5008  ;;  %v5006_v1 = vpop.xlane.xlu0 %5005 }
0x1751   :  { %8057 = vrsqrt.f32 %v5025_v33  ;;  %v5019_v56 = vmul.f32 0.1, %v5009_v55  ;;  %v5018_v15 = vmul.f32 0.1, %v5006_v1  ;;  %v5310_v33 = vld [vmem:[%s9881_s1 + $0x448] sm:$0xff]  ;;  %v5312_v55 = vld [vmem:[%s9881_s1 + $0x458] sm:$0xff] }
0x1752   :  { %8059 = vrsqrt.f32 %v5024_v53  ;;  %v5311_v53 = vld [vmem:[%s9881_s1 + $0x450] sm:$0xff]  ;;  %v5313_v1 = vld [vmem:[%s9881_s1 + $0x460] sm:$0xff] }
0x1753   :  { %v5027_v59 = vadd.f32 1e-05, %v5019_v56  ;;  %v5026_v58 = vadd.f32 1e-05, %v5018_v15  ;;  %v5314_v56 = vld [vmem:[%s9881_s1 + $0x468] sm:$0xff]  ;;  %v5315_v15 = vld [vmem:[%s9881_s1 + $0x470] sm:$0xff] }
0x1754   :  { %v8052_v50 = vpop.eup %8051  ;;  %v5012_v52 = vpop.xlane.xlu0 %5011 }
0x1755   :  { %8061 = vrsqrt.f32 %v5027_v59  ;;  %v5020_v7 = vmul.f32 0.1, %v5012_v52  ;;  %v5038_v38 = vmul.f32 %v8052_v50, %v9486_v46  ;;  %v5316_v59 = vld [vmem:[%s9881_s1 + $0x478] sm:$0xff]  ;;  %v5318_v50 = vld [vmem:[%s9881_s1 + $0x488] sm:$0xff]  ;;  %v5319_v52 = vld [vmem:[%s9881_s1 + $0x490] sm:$0xff] }
0x1756   :  { %v8054_v42 = vpop.eup %8053  ;;  %8063 = vrsqrt.f32 %v5026_v58  ;;  %v5317_v58 = vld [vmem:[%s9881_s1 + $0x480] sm:$0xff] }
0x1757   :  { %v5028_v24 = vadd.f32 1e-05, %v5020_v7  ;;  %v5037_v6 = vmul.f32 %v8054_v42, %v9488_v12  ;;  %v5046_v61 = vmax.f32 %v5038_v38, 0.0  ;;  %v5320_v7 = vld [vmem:[%s9881_s1 + $0x498] sm:$0xff]  ;;  %v5321_v42 = vld [vmem:[%s9881_s1 + $0x4a0] sm:$0xff]  ;;  %v5322_v38 = vld [vmem:[%s9881_s1 + $0x4a8] sm:$0xff] }
0x1759   :  { %8065 = vrsqrt.f32 %v5028_v24  ;;  %v5045_v63 = vmax.f32 %v5037_v6, 0.0  ;;  %v5323_v24 = vld [vmem:[%s9881_s1 + $0x4b0] sm:$0xff]  ;;  %v5324_v6 = vld [vmem:[%s9881_s1 + $0x4b8] sm:$0xff] }
0x175a   :  { %v8056_v57 = vpop.eup %8055 }
0x175b   :  { %7755 = vmatprep.mubr.msk.f32.mxu0 %vm4939_vm15, %v5045_v63  ;;  %7771 = vmatprep.mubr.msk.f32.mxu1 %vm4939_vm15, %v5045_v63  ;;  %v5039_v60 = vmul.f32 %v8056_v57, %v9495_v47  ;;  %v5325_v63 = vld [vmem:[%s9881_s1 + $0x4c0] sm:$0xff]  ;;  %v5326_v57 = vld [vmem:[%s9881_s1 + $0x4c8] sm:$0xff] }
0x175c   :  { %7756 = vmatmul.mubr.msk.f32.vlgmr.msra.gmra.mxu0 %vm4939_vm15, %v5046_v61  ;;  %7772 = vmatmul.mubr.msk.f32.vlgmr.msra.gmra.mxu1 %vm4939_vm15, %v5046_v61  ;;  %v5327_v61 = vld [vmem:[%s9881_s1 + $0x4d0] sm:$0xff] }
0x175d   :  { %v5047_v4 = vmax.f32 %v5039_v60, 0.0  ;;  %v5328_v60 = vld [vmem:[%s9881_s1 + $0x4d8] sm:$0xff] }
0x175e   :  { %v8058_v46 = vpop.eup %8057 }
0x175f   :  { %v8060_v37 = vpop.eup %8059  ;;  %7758 = vmatprep.mubr.msk.f32.mxu0 %vm4939_vm15, %v5047_v4  ;;  %7774 = vmatprep.mubr.msk.f32.mxu1 %vm4939_vm15, %v5047_v4  ;;  %v5041_v12 = vmul.f32 %v8058_v46, %v9500_v25  ;;  %v5329_v4 = vld [vmem:[%s9881_s1 + $0x4e0] sm:$0xff]  ;;  %v5330_v46 = vld [vmem:[%s9881_s1 + $0x4e8] sm:$0xff] }
0x1760   :  { %v5040_v11 = vmul.f32 %v8060_v37, %v9502_v19  ;;  %v5331_v37 = vld [vmem:[%s9881_s1 + $0x4f0] sm:$0xff] }
0x1761   :  { %v5049_v3 = vmax.f32 %v5041_v12, 0.0  ;;  %v5332_v12 = vld [vmem:[%s9881_s1 + $0x4f8] sm:$0xff] }
0x1762   :  { %v8062_v40 = vpop.eup %8061  ;;  %v5048_v13 = vmax.f32 %v5040_v11, 0.0  ;;  %v5333_v11 = vld [vmem:[%s9881_s1 + $0x500] sm:$0xff] }
0x1763   :  { %v8064_v31 = vpop.eup %8063  ;;  %v5043_v47 = vmul.f32 %v8062_v40, %v9509_v35  ;;  %v5335_v40 = vld [vmem:[%s9881_s1 + $0x510] sm:$0xff] }
0x1764   :  { %7759 = vmatmul.mubr.msk.f32.gmra.mxu0 %vm4939_vm15, %v5048_v13  ;;  %7775 = vmatmul.mubr.msk.f32.gmra.mxu1 %vm4939_vm15, %v5048_v13  ;;  %v5042_v41 = vmul.f32 %v8064_v31, %v9511_v10  ;;  %v5306_v10 = vld [vmem:[%s9881_s1 + $0x428] sm:$0xff]  ;;  %v5336_v13 = vld [vmem:[%s9881_s1 + $0x518] sm:$0xff]  ;;  %v5337_v31 = vld [vmem:[%s9881_s1 + $0x520] sm:$0xff] }
0x1765   :  { %7761 = vmatprep.mubr.msk.f32.mxu0 %vm4939_vm15, %v5049_v3  ;;  %7777 = vmatprep.mubr.msk.f32.mxu1 %vm4939_vm15, %v5049_v3  ;;  %v5051_v16 = vmax.f32 %v5043_v47, 0.0  ;;  %v5334_v3 = vld [vmem:[%s9881_s1 + $0x508] sm:$0xff] }
0x1766   :  { %v8066_v25 = vpop.eup %8065  ;;  %v5050_v45 = vmax.f32 %v5042_v41, 0.0  ;;  %v5660_v47 = vld [vmem:[%s9883_s2 + $0x228] sm:$0xf]  ;;  %v5659_v41 = vld [vmem:[%s9883_s2 + $0x220] sm:$0xf] }
0x1767   :  { %v5044_v19 = vmul.f32 %v8066_v25, %v9519_v5  ;;  %7847 = vmatprep.subr.msk.mxu1 %vm915_vm13, %v5660_v47 }
0x1768   :  { %7762 = vmatmul.mubr.msk.f32.gmra.mxu0 %vm4939_vm15, %v5050_v45  ;;  %7778 = vmatmul.mubr.msk.f32.gmra.mxu1 %vm4939_vm15, %v5050_v45 }
0x1769   :  { %7764 = vmatprep.mubr.msk.f32.mxu0 %vm4939_vm15, %v5051_v16  ;;  %7780 = vmatprep.mubr.msk.f32.mxu1 %vm4939_vm15, %v5051_v16  ;;  %v5052_v35 = vmax.f32 %v5044_v19, 0.0 }
0x176a   :  { %7848 = vmatpush3.msk.msra.mxu1 %vm915_vm13, %v5660_v47  ;;  %v6142_v47 = vpop.permute.xlu0 %6141 }
0x176b   :  { %7873 = vmatprep.subr.msk.mxu1 %vm915_vm13, %v5659_v41 }
0x176c   :  { %7765 = vmatmul.mubr.msk.f32.gmra.mxu0 %vm4939_vm15, %v5052_v35  ;;  %7781 = vmatmul.mubr.msk.f32.gmra.mxu1 %vm4939_vm15, %v5052_v35 }
0x176d   :  { %7799 = vmatprep.mubr.msk.f32.mxu0 %vm773_vm11, %v5306_v10 }
0x181c   :  { %v7757_v5 = vpop.f32.mrf.mxu0  ;;  %v7773_v21 = vpop.f32.mrf.mxu1 }
0x181d   :  { %v5299_v2 = vmax.f32 %v7757_v5, %v7773_v21 }
0x181e   :  { %v5151_v34 = vpop.f32.mrf.mxu0  ;;  %v5259_v26 = vpop.f32.mrf.mxu1 }
0x181f   :  { %v5298_v28 = vmax.f32 %v5151_v34, %v5259_v26 }
0x1824   :  { %v7760_v23 = vpop.f32.mrf.mxu0  ;;  %v7776_v0 = vpop.f32.mrf.mxu1 }
0x1825   :  { %v5301_v18 = vmax.f32 %v7760_v23, %v7776_v0 }
0x1826   :  { %v5161_v29 = vpop.f32.mrf.mxu0  ;;  %v5269_v44 = vpop.f32.mrf.mxu1 }
0x1827   :  { %v5300_v54 = vmax.f32 %v5161_v29, %v5269_v44 }
0x1828   :  { %v7763_v27 = vpop.f32.mrf.mxu0  ;;  %v7779_v48 = vpop.f32.mrf.mxu1 }
0x1829   :  { %v5303_v8 = vmax.f32 %v7763_v27, %v7779_v48 }
0x182a   :  { %v5171_v30 = vpop.f32.mrf.mxu0  ;;  %v5279_v20 = vpop.f32.mrf.mxu1 }
0x182b   :  { %v5302_v49 = vmax.f32 %v5171_v30, %v5279_v20 }
0x182c   :  { %v7766_v32 = vpop.f32.mrf.mxu0  ;;  %v7782_v36 = vpop.f32.mrf.mxu1 }
0x182d   :  { %v5305_v43 = vmax.f32 %v7766_v32, %v7782_v36 }
0x182e   :  { %v5181_v39 = vpop.f32.mrf.mxu0  ;;  %v5289_v62 = vpop.f32.mrf.mxu1 }
0x182f   :  { %v5304_v17 = vmax.f32 %v5181_v39, %v5289_v62  ;;  %7783 = vmatprep.subr.mxu0 %v5305_v43 }
0x1830   :  { %7784 = vmatpush3.msra.mxu0 %v5305_v43 }
0x1831   :  { %7785 = vmatprep.subr.mxu0 %v5304_v17 }
0x1832   :  { %7786 = vmatpush3.msra.mxu0 %v5304_v17 }
0x1833   :  { %7787 = vmatprep.subr.mxu0 %v5303_v8 }
0x1834   :  { %7788 = vmatpush3.msra.mxu0 %v5303_v8 }
0x1835   :  { %7789 = vmatprep.subr.mxu0 %v5302_v49 }
0x1836   :  { %7790 = vmatpush3.msra.mxu0 %v5302_v49 }
0x1837   :  { %7791 = vmatprep.subr.mxu0 %v5301_v18 }
0x1838   :  { %7792 = vmatpush3.msra.mxu0 %v5301_v18 }
0x1839   :  { %7793 = vmatprep.subr.mxu0 %v5300_v54 }
0x183a   :  { %7794 = vmatpush3.msra.mxu0 %v5300_v54 }
0x183b   :  { %7795 = vmatprep.subr.mxu0 %v5299_v2 }
0x183c   :  { %7796 = vmatpush3.msra.mxu0 %v5299_v2 }
0x183d   :  { %7797 = vmatprep.subr.mxu0 %v5298_v28 }
0x183e   :  { %7798 = vmatpush3.msra.mxu0 %v5298_v28 }
0x183f   :  { %7800 = vmatmul.mubr.msk.f32.vlgmr.msra.gmra.mxu0 %vm773_vm11, %v5307_v51 }
0x1840   :  { %7802 = vmatprep.mubr.msk.f32.mxu0 %vm773_vm11, %v5308_v22 }
0x1843   :  { %7803 = vmatmul.mubr.msk.f32.gmra.mxu0 %vm773_vm11, %v5309_v9  ;;  %v6181_v9 = vld [vmem:[%s9881_s1 + $0x5a8] sm:$0xff] }
0x1844   :  { %7805 = vmatprep.mubr.msk.f32.mxu0 %vm773_vm11, %v5310_v33 }
0x1847   :  { %7806 = vmatmul.mubr.msk.f32.gmra.mxu0 %vm773_vm11, %v5311_v53 }
0x1848   :  { %7808 = vmatprep.mubr.msk.f32.mxu0 %vm773_vm11, %v5312_v55 }
0x184b   :  { %7809 = vmatmul.mubr.msk.f32.gmra.mxu0 %vm773_vm11, %v5313_v1 }
0x184c   :  { %7811 = vmatprep.mubr.msk.f32.mxu0 %vm773_vm11, %v5314_v56 }
0x184f   :  { %7812 = vmatmul.mubr.msk.f32.gmra.mxu0 %vm773_vm11, %v5315_v15 }
0x1850   :  { %7814 = vmatprep.mubr.msk.f32.mxu0 %vm773_vm11, %v5316_v59 }
0x1853   :  { %7815 = vmatmul.mubr.msk.f32.gmra.mxu0 %vm773_vm11, %v5317_v58 }
0x1854   :  { %7817 = vmatprep.mubr.msk.f32.mxu0 %vm773_vm11, %v5318_v50 }
0x1857   :  { %7818 = vmatmul.mubr.msk.f32.gmra.mxu0 %vm773_vm11, %v5319_v52 }
0x1858   :  { %7820 = vmatprep.mubr.msk.f32.mxu0 %vm773_vm11, %v5320_v7 }
0x185b   :  { %7821 = vmatmul.mubr.msk.f32.gmra.mxu0 %vm773_vm11, %v5321_v42 }
0x185c   :  { %7823 = vmatprep.mubr.msk.f32.mxu0 %vm773_vm11, %v5322_v38 }
0x185f   :  { %7824 = vmatmul.mubr.msk.f32.gmra.mxu0 %vm773_vm11, %v5323_v24 }
0x1860   :  { %7826 = vmatprep.mubr.msk.f32.mxu0 %vm773_vm11, %v5324_v6 }
0x1863   :  { %7827 = vmatmul.mubr.msk.f32.gmra.mxu0 %vm773_vm11, %v5325_v63 }
0x1864   :  { %7829 = vmatprep.mubr.msk.f32.mxu0 %vm773_vm11, %v5326_v57 }
0x1867   :  { %7830 = vmatmul.mubr.msk.f32.gmra.mxu0 %vm773_vm11, %v5327_v61 }
0x1868   :  { %7832 = vmatprep.mubr.msk.f32.mxu0 %vm773_vm11, %v5328_v60 }
0x186b   :  { %7833 = vmatmul.mubr.msk.f32.gmra.mxu0 %vm773_vm11, %v5329_v4 }
0x186c   :  { %7835 = vmatprep.mubr.msk.f32.mxu0 %vm773_vm11, %v5330_v46 }
0x186f   :  { %7836 = vmatmul.mubr.msk.f32.gmra.mxu0 %vm773_vm11, %v5331_v37  ;;  %v6147_v37 = vpop.permute.xlu1 %6146 }
0x1870   :  { %7838 = vmatprep.mubr.msk.f32.mxu0 %vm773_vm11, %v5332_v12 }
0x1873   :  { %7839 = vmatmul.mubr.msk.f32.gmra.mxu0 %vm773_vm11, %v5333_v11 }
0x1874   :  { %7841 = vmatprep.mubr.msk.f32.mxu0 %vm773_vm11, %v5334_v3 }
0x1877   :  { %7842 = vmatmul.mubr.msk.f32.gmra.mxu0 %vm773_vm11, %v5335_v40  ;;  %v6137_v40 = vpop.permute.xlu1 %6136 }
0x1878   :  { %7844 = vmatprep.mubr.msk.f32.mxu0 %vm773_vm11, %v5336_v13 }
0x187b   :  { %7845 = vmatmul.mubr.msk.f32.gmra.mxu0 %vm773_vm11, %v5337_v31 }
0x187c   :  { %7931 = vmatprep.mubr.f32.mxu0 %v6181_v9 }
0x18ff   :  { %v7801_v16 = vpop.f32.mrf.mxu0 }
0x1901   :  { %v5500_v25 = vpop.f32.mrf.mxu0 }
0x1903   :  { %v7804_v45 = vpop.f32.mrf.mxu0 }
0x1905   :  { %v5510_v19 = vpop.f32.mrf.mxu0 }
0x1907   :  { %v7807_v35 = vpop.f32.mrf.mxu0 }
0x1909   :  { %v5520_v10 = vpop.f32.mrf.mxu0 }
0x190b   :  { %v7810_v5 = vpop.f32.mrf.mxu0 }
0x190d   :  { %v5530_v21 = vpop.f32.mrf.mxu0 }
0x190f   :  { %v7813_v34 = vpop.f32.mrf.mxu0 }
0x1911   :  { %v5540_v26 = vpop.f32.mrf.mxu0 }
0x1913   :  { %v7816_v23 = vpop.f32.mrf.mxu0 }
0x1915   :  { %v5550_v0 = vpop.f32.mrf.mxu0 }
0x1917   :  { %v7819_v29 = vpop.f32.mrf.mxu0 }
0x1919   :  { %v5560_v44 = vpop.f32.mrf.mxu0 }
0x191b   :  { %v7822_v27 = vpop.f32.mrf.mxu0 }
0x191d   :  { %v5570_v48 = vpop.f32.mrf.mxu0 }
0x191f   :  { %v7825_v30 = vpop.f32.mrf.mxu0 }
0x1921   :  { %v5580_v20 = vpop.f32.mrf.mxu0 }
0x1922   :  { %7849 = vmatprep.mubr.msk.f32.mxu1 %vm902_vm12, %v5580_v20 }
0x1923   :  { %v7828_v32 = vpop.f32.mrf.mxu0  ;;  %7850 = vmatmul.mubr.msk.f32.vlgmr.msra.gmra.mxu1 %vm902_vm12, %v7825_v30 }
0x1924   :  { %7874 = vmatpush3.msk.msra.mxu1 %vm915_vm13, %v5659_v41 }
0x1925   :  { %v5590_v36 = vpop.f32.mrf.mxu0  ;;  %7943 = vmatprep.subr.mxu1 %v8082_v14 }
0x1926   :  { %7852 = vmatprep.mubr.msk.f32.mxu1 %vm902_vm12, %v5590_v36 }
0x1927   :  { %v7831_v43 = vpop.f32.mrf.mxu0  ;;  %7853 = vmatmul.mubr.msk.f32.gmra.mxu1 %vm902_vm12, %v7828_v32 }
0x1929   :  { %v5600_v39 = vpop.f32.mrf.mxu0 }
0x192a   :  { %7855 = vmatprep.mubr.msk.f32.mxu1 %vm902_vm12, %v5600_v39 }
0x192b   :  { %v7834_v62 = vpop.f32.mrf.mxu0  ;;  %7856 = vmatmul.mubr.msk.f32.gmra.mxu1 %vm902_vm12, %v7831_v43 }
0x192d   :  { %v5610_v17 = vpop.f32.mrf.mxu0 }
0x192e   :  { %7858 = vmatprep.mubr.msk.f32.mxu1 %vm902_vm12, %v5610_v17 }
0x192f   :  { %v7837_v8 = vpop.f32.mrf.mxu0  ;;  %7859 = vmatmul.mubr.msk.f32.gmra.mxu1 %vm902_vm12, %v7834_v62 }
0x1931   :  { %v5620_v49 = vpop.f32.mrf.mxu0 }
0x1932   :  { %7861 = vmatprep.mubr.msk.f32.mxu1 %vm902_vm12, %v5620_v49 }
0x1933   :  { %v7840_v18 = vpop.f32.mrf.mxu0  ;;  %7862 = vmatmul.mubr.msk.f32.gmra.mxu1 %vm902_vm12, %v7837_v8 }
0x1935   :  { %v5630_v54 = vpop.f32.mrf.mxu0 }
0x1936   :  { %7864 = vmatprep.mubr.msk.f32.mxu1 %vm902_vm12, %v5630_v54 }
0x1937   :  { %v7843_v2 = vpop.f32.mrf.mxu0  ;;  %7865 = vmatmul.mubr.msk.f32.gmra.mxu1 %vm902_vm12, %v7840_v18 }
0x1939   :  { %v5640_v28 = vpop.f32.mrf.mxu0 }
0x193a   :  { %7867 = vmatprep.mubr.msk.f32.mxu1 %vm902_vm12, %v5640_v28 }
0x193b   :  { %v7846_v51 = vpop.f32.mrf.mxu0  ;;  %7868 = vmatmul.mubr.msk.f32.gmra.mxu1 %vm902_vm12, %v7843_v2 }
0x193d   :  { %v5650_v22 = vpop.f32.mrf.mxu0 }
0x193e   :  { %7870 = vmatprep.mubr.msk.f32.mxu1 %vm902_vm12, %v5650_v22 }
0x193f   :  { %7871 = vmatmul.mubr.msk.f32.gmra.mxu1 %vm902_vm12, %v7846_v51 }
0x1940   :  { %7875 = vmatprep.mubr.msk.f32.mxu1 %vm902_vm12, %v5500_v25 }
0x1943   :  { %7876 = vmatmul.mubr.msk.f32.vlgmr.msra.gmra.mxu1 %vm902_vm12, %v7801_v16  ;;  %v6132_v16 = vpop.permute.xlu1 %6131 }
0x1944   :  { %7878 = vmatprep.mubr.msk.f32.mxu1 %vm902_vm12, %v5510_v19  ;;  %v6127_v19 = vpop.permute.xlu0 %6126 }
0x1947   :  { %7879 = vmatmul.mubr.msk.f32.gmra.mxu1 %vm902_vm12, %v7804_v45 }
0x1948   :  { %7881 = vmatprep.mubr.msk.f32.mxu1 %vm902_vm12, %v5520_v10  ;;  %v6122_v10 = vpop.permute.xlu1 %6121 }
0x194b   :  { %7882 = vmatmul.mubr.msk.f32.gmra.mxu1 %vm902_vm12, %v7807_v35 }
0x194c   :  { %7884 = vmatprep.mubr.msk.f32.mxu1 %vm902_vm12, %v5530_v21  ;;  %v6112_v32 = vpop.permute.xlu1 %6111 }
0x194f   :  { %7885 = vmatmul.mubr.msk.f32.gmra.mxu1 %vm902_vm12, %v7810_v5 }
0x1950   :  { %7887 = vmatprep.mubr.msk.f32.mxu1 %vm902_vm12, %v5540_v26  ;;  %v6102_v28 = vpop.permute.xlu1 %6101 }
0x1953   :  { %7888 = vmatmul.mubr.msk.f32.gmra.mxu1 %vm902_vm12, %v7813_v34 }
0x1954   :  { %7890 = vmatprep.mubr.msk.f32.mxu1 %vm902_vm12, %v5550_v0 }
0x1957   :  { %7891 = vmatmul.mubr.msk.f32.gmra.mxu1 %vm902_vm12, %v7816_v23 }
0x1958   :  { %7893 = vmatprep.mubr.msk.f32.mxu1 %vm902_vm12, %v5560_v44  ;;  %v6117_v44 = vpop.permute.xlu0 %6116 }
0x195b   :  { %7894 = vmatmul.mubr.msk.f32.gmra.mxu1 %vm902_vm12, %v7819_v29 }
0x195c   :  { %7896 = vmatprep.mubr.msk.f32.mxu1 %vm902_vm12, %v5570_v48  ;;  %v6107_v49 = vpop.permute.xlu0 %6106 }
0x195f   :  { %7897 = vmatmul.mubr.msk.f32.gmra.mxu1 %vm902_vm12, %v7822_v27 }
0x1960   :  { %7959 = vmatprep.mubr.msk.f32.mxu1 %vm8083_vm10, %v8082_v14  ;;  %vm6431_vm10 = vcmask 13312  }
0x19e3   :  { %v9813_v33 = vpop.f32.mrf.mxu1 }
0x19e5   :  { %v9815_v53 = vpop.f32.mrf.mxu1 }
0x19e7   :  { %v9817_v55 = vpop.f32.mrf.mxu1 }
0x19e9   :  { %v9819_v1 = vpop.f32.mrf.mxu1 }
0x19eb   :  { %v9821_v56 = vpop.f32.mrf.mxu1 }
0x19ed   :  { %v9823_v15 = vpop.f32.mrf.mxu1 }
0x19ef   :  { %v7860_v59 = vpop.f32.mrf.mxu1 }
0x19f1   :  { %v9825_v58 = vpop.f32.mrf.mxu1 }
0x19f3   :  { %v7863_v50 = vpop.f32.mrf.mxu1 }
0x19f5   :  { %v5818_v52 = vpop.f32.mrf.mxu1 }
0x19f7   :  { %v7866_v7 = vpop.f32.mrf.mxu1 }
0x19f9   :  { %v5828_v42 = vpop.f32.mrf.mxu1 }
0x19fb   :  { %v7869_v38 = vpop.f32.mrf.mxu1 }
0x19fd   :  { %v5838_v24 = vpop.f32.mrf.mxu1 }
0x19ff   :  { %v7872_v6 = vpop.f32.mrf.mxu1 }
0x1a01   :  { %v5848_v63 = vpop.f32.mrf.mxu1 }
0x1a03   :  { %v9827_v57 = vpop.f32.mrf.mxu1 }
0x1a05   :  { %v9829_v61 = vpop.f32.mrf.mxu1 }
0x1a07   :  { %v9831_v60 = vpop.f32.mrf.mxu1 }
0x1a09   :  { %v9833_v4 = vpop.f32.mrf.mxu1 }
0x1a0b   :  { %v7883_v46 = vpop.f32.mrf.mxu1 }
0x1a0d   :  { %v5994_v12 = vpop.f32.mrf.mxu1 }
0x1a0f   :  { %v7886_v11 = vpop.f32.mrf.mxu1 }
0x1a10   :  { %v6010_v51 = vadd.f32 %v7886_v11, %v7860_v59  ;;  %v5995_v59 = vadd.f32 %v5994_v12, %v9823_v15  ;;  %v5980_v15 = vadd.f32 %v9827_v57, %v9813_v33 }
0x1a11   :  { %v6004_v3 = vpop.f32.mrf.mxu1 }
0x1a13   :  { %v7889_v13 = vpop.f32.mrf.mxu1 }
0x1a14   :  { %v6020_v62 = vadd.f32 %v7889_v13, %v7863_v50 }
0x1a15   :  { %v6014_v31 = vpop.f32.mrf.mxu1 }
0x1a16   :  { %v6015_v18 = vadd.f32 %v6014_v31, %v5818_v52  ;;  %v6158_v22 = vadd.f32 %v6117_v44, %v6020_v62  ;;  %v6156_v52 = vadd.f32 %v6107_v49, %v6010_v51 }
0x1a17   :  { %v7892_v41 = vpop.f32.mrf.mxu1 }
0x1a18   :  { %v6030_v27 = vadd.f32 %v7892_v41, %v7866_v7  ;;  %v6005_v7 = vadd.f32 %v6004_v3, %v9825_v58  ;;  %v5990_v58 = vadd.f32 %v9831_v60, %v9817_v55  ;;  %v5975_v55 = vadd.f32 %v9829_v61, %v9815_v53  ;;  %v6182_v53 = vld [vmem:[%s9881_s1 + $0x5b0] sm:$0xff]  ;;  %v6183_v61 = vld [vmem:[%s9881_s1 + $0x5b8] sm:$0xff] }
0x1a19   :  { %v6024_v25 = vpop.f32.mrf.mxu1 }
0x1a1a   :  { %v6025_v36 = vadd.f32 %v6024_v25, %v5828_v42  ;;  %v6160_v17 = vadd.f32 %v6127_v19, %v6030_v27  ;;  %v6157_v42 = vadd.f32 %v6112_v32, %v6015_v18 }
0x1a1b   :  { %v7895_v45 = vpop.f32.mrf.mxu1 }
0x1a1c   :  { %v6040_v21 = vadd.f32 %v7895_v45, %v7869_v38  ;;  %v6159_v54 = vadd.f32 %v6122_v10, %v6025_v36  ;;  %v6176_v9 = vmax.f32 %v6160_v17, 0.0  ;;  %v6097_v38 = vpop.permute.xlu0 %6096  ;;  %v6173_v11 = vmax.f32 %v6157_v42, 0.0  ;;  %v6184_v10 = vld [vmem:[%s9881_s1 + $0x5c0] sm:$0xff] }
0x1a1d   :  { %v6034_v35 = vpop.f32.mrf.mxu1 }
0x1a1e   :  { %v6035_v23 = vadd.f32 %v6034_v35, %v5838_v24  ;;  %v6162_v48 = vadd.f32 %v6137_v40, %v6040_v21  ;;  %v6175_v50 = vmax.f32 %v6159_v54, 0.0  ;;  %v6000_v24 = vadd.f32 %v7883_v46, %v9821_v56  ;;  %v6186_v21 = vld [vmem:[%s9881_s1 + $0x5d0] sm:$0xff] }
0x1a1f   :  { %v7898_v5 = vpop.f32.mrf.mxu1  ;;  %v6172_v40 = vmax.f32 %v6156_v52, 0.0  ;;  %v5985_v56 = vadd.f32 %v9833_v4, %v9819_v1 }
0x1a20   :  { %v6050_v34 = vadd.f32 %v7898_v5, %v7872_v6  ;;  %v6161_v43 = vadd.f32 %v6132_v16, %v6035_v23  ;;  %v6178_v8 = vmax.f32 %v6162_v48, 0.0  ;;  %v6174_v6 = vmax.f32 %v6158_v22, 0.0  ;;  %v6087_v13 = vpop.permute.xlu0 %6086  ;;  %v6185_v5 = vld [vmem:[%s9881_s1 + $0x5c8] sm:$0xff] }
0x1a21   :  { %v6044_v26 = vpop.f32.mrf.mxu1  ;;  %v6154_v3 = vadd.f32 %v6097_v38, %v6000_v24  ;;  %v6152_v12 = vadd.f32 %v6087_v13, %v5990_v58 }
0x1a22   :  { %v6164_v0 = vadd.f32 %v6147_v37, %v6050_v34  ;;  %v6045_v29 = vadd.f32 %v6044_v26, %v5848_v63  ;;  %v6177_v2 = vmax.f32 %v6161_v43, 0.0  ;;  %v6092_v63 = vpop.permute.xlu1 %6091  ;;  %v6155_v37 = vadd.f32 %v6102_v28, %v6005_v7  ;;  %v6187_v34 = vld [vmem:[%s9881_s1 + $0x5d8] sm:$0xff]  ;;  %v6188_v26 = vld [vmem:[%s9881_s1 + $0x5e0] sm:$0xff] }
0x1a23   :  { %v6153_v46 = vadd.f32 %v6092_v63, %v5995_v59  ;;  %v6170_v41 = vmax.f32 %v6154_v3, 0.0  ;;  %v6168_v4 = vmax.f32 %v6152_v12, 0.0 }
0x1a24   :  { %v6180_v30 = vmax.f32 %v6164_v0, 0.0  ;;  %v6163_v20 = vadd.f32 %v6142_v47, %v6045_v29  ;;  %v6171_v31 = vmax.f32 %v6155_v37, 0.0  ;;  %v6077_v25 = vpop.permute.xlu0 %6076  ;;  %v6350_v37 = vld [vmem:[%s9881_s1 + $0x628] sm:$0x3f] }
0x1a25   :  { %v6169_v16 = vmax.f32 %v6153_v46, 0.0  ;;  %v6150_v1 = vadd.f32 %v6077_v25, %v5980_v15 }
0x1a26   :  { %v6179_v39 = vmax.f32 %v6163_v20, 0.0  ;;  %7899 = vmatprep.subr.mxu0 %v6180_v30  ;;  %v6082_v47 = vpop.permute.xlu1 %6081 }
0x1a27   :  { %7900 = vmatpush3.msra.mxu0 %v6180_v30  ;;  %v6151_v60 = vadd.f32 %v6082_v47, %v5985_v56  ;;  %v6166_v33 = vmax.f32 %v6150_v1, 0.0 }
0x1a28   :  { %7901 = vmatprep.subr.mxu0 %v6179_v39  ;;  %v6235_v29 = vpop.permute.xlu0 %6234 }
0x1a29   :  { %7902 = vmatpush3.msra.mxu0 %v6179_v39  ;;  %v6167_v35 = vmax.f32 %v6151_v60, 0.0 }
0x1a2a   :  { %7903 = vmatprep.subr.mxu0 %v6178_v8  ;;  %v6072_v45 = vpop.permute.xlu1 %6071 }
0x1a2b   :  { %7904 = vmatpush3.msra.mxu0 %v6178_v8  ;;  %v6149_v19 = vadd.f32 %v6072_v45, %v5975_v55 }
0x1a2c   :  { %7905 = vmatprep.subr.mxu0 %v6177_v2  ;;  %v6225_v20 = vpop.permute.xlu0 %6224 }
0x1a2d   :  { %7906 = vmatpush3.msra.mxu0 %v6177_v2  ;;  %v6165_v57 = vmax.f32 %v6149_v19, 0.0 }
0x1a2e   :  { %7907 = vmatprep.subr.mxu0 %v6176_v9  ;;  %v6230_v27 = vpop.permute.xlu1 %6229 }
0x1a2f   :  { %7908 = vmatpush3.msra.mxu0 %v6176_v9 }
0x1a30   :  { %7909 = vmatprep.subr.mxu0 %v6175_v50  ;;  %v6215_v18 = vpop.permute.xlu0 %6214 }
0x1a31   :  { %7910 = vmatpush3.msra.mxu0 %v6175_v50 }
0x1a32   :  { %7911 = vmatprep.subr.mxu0 %v6174_v6  ;;  %v6220_v36 = vpop.permute.xlu1 %6219 }
0x1a33   :  { %7912 = vmatpush3.msra.mxu0 %v6174_v6 }
0x1a34   :  { %7913 = vmatprep.subr.mxu0 %v6173_v11  ;;  %v6205_v42 = vpop.permute.xlu0 %6204 }
0x1a35   :  { %7914 = vmatpush3.msra.mxu0 %v6173_v11 }
0x1a36   :  { %7915 = vmatprep.subr.mxu0 %v6172_v40  ;;  %v6210_v28 = vpop.permute.xlu1 %6209 }
0x1a37   :  { %7916 = vmatpush3.msra.mxu0 %v6172_v40 }
0x1a38   :  { %7917 = vmatprep.subr.mxu0 %v6171_v31  ;;  %v6355_v11 = vpop.permute.xlu0 %6354 }
0x1a39   :  { %7918 = vmatpush3.msra.mxu0 %v6171_v31 }
0x1a3a   :  { %7919 = vmatprep.subr.mxu0 %v6170_v41  ;;  %v6200_v24 = vpop.permute.xlu1 %6199 }
0x1a3b   :  { %7920 = vmatpush3.msra.mxu0 %v6170_v41 }
0x1a3c   :  { %7921 = vmatprep.subr.mxu0 %v6169_v16 }
0x1a3d   :  { %7922 = vmatpush3.msra.mxu0 %v6169_v16 }
0x1a3e   :  { %7923 = vmatprep.subr.mxu0 %v6168_v4 }
0x1a3f   :  { %7924 = vmatpush3.msra.mxu0 %v6168_v4 }
0x1a40   :  { %7925 = vmatprep.subr.mxu0 %v6167_v35 }
0x1a41   :  { %7926 = vmatpush3.msra.mxu0 %v6167_v35 }
0x1a42   :  { %7927 = vmatprep.subr.mxu0 %v6166_v33 }
0x1a43   :  { %7928 = vmatpush3.msra.mxu0 %v6166_v33 }
0x1a44   :  { %7929 = vmatprep.subr.mxu0 %v6165_v57 }
0x1a45   :  { %7930 = vmatpush3.msra.mxu0 %v6165_v57 }
0x1a46   :  { %7932 = vmatmul.mubr.f32.vlgmr.msra.gmra.mxu0 %v6182_v53 }
0x1a47   :  { %7934 = vmatprep.mubr.f32.mxu0 %v6183_v61 }
0x1a4a   :  { %7935 = vmatmul.mubr.f32.gmra.mxu0 %v6184_v10 }
0x1a4b   :  { %7937 = vmatprep.mubr.f32.mxu0 %v6185_v5 }
0x1a4e   :  { %7938 = vmatmul.mubr.f32.gmra.mxu0 %v6186_v21 }
0x1a4f   :  { %7940 = vmatprep.mubr.f32.mxu0 %v6187_v34 }
0x1a52   :  { %7941 = vmatmul.mubr.f32.gmra.mxu0 %v6188_v26 }
0x1b06   :  { %v7933_v23 = vpop.f32.mrf.mxu0 }
0x1b07   :  { %v6309_v50 = vadd.f32 %v7933_v23, %v6205_v42 }
0x1b08   :  { %v6303_v0 = vpop.f32.mrf.mxu0 }
0x1b09   :  { %v6304_v52 = vadd.f32 %v6303_v0, %v6200_v24  ;;  %v6343_v63 = vmax.f32 %v6309_v50, 0.0 }
0x1b0a   :  { %v7936_v44 = vpop.f32.mrf.mxu0 }
0x1b0b   :  { %v6319_v51 = vadd.f32 %v7936_v44, %v6215_v18  ;;  %v6342_v59 = vmax.f32 %v6304_v52, 0.0 }
0x1b0c   :  { %v6313_v48 = vpop.f32.mrf.mxu0 }
0x1b0d   :  { %v6314_v9 = vadd.f32 %v6313_v48, %v6210_v28  ;;  %v6345_v38 = vmax.f32 %v6319_v51, 0.0 }
0x1b0e   :  { %v7939_v30 = vpop.f32.mrf.mxu0 }
0x1b0f   :  { %v6329_v17 = vadd.f32 %v7939_v30, %v6225_v20  ;;  %v6344_v6 = vmax.f32 %v6314_v9, 0.0 }
0x1b10   :  { %v6323_v32 = vpop.f32.mrf.mxu0 }
0x1b11   :  { %v6324_v54 = vadd.f32 %v6323_v32, %v6220_v36  ;;  %v6347_v22 = vmax.f32 %v6329_v17, 0.0 }
0x1b12   :  { %v7942_v43 = vpop.f32.mrf.mxu0 }
0x1b13   :  { %v6339_v39 = vadd.f32 %v7942_v43, %v6235_v29  ;;  %v6346_v7 = vmax.f32 %v6324_v54, 0.0 }
0x1b14   :  { %v6333_v62 = vpop.f32.mrf.mxu0 }
0x1b15   :  { %v6349_v8 = vmax.f32 %v6339_v39, 0.0  ;;  %v6334_v49 = vadd.f32 %v6333_v62, %v6230_v27 }
0x1b17   :  { %v6348_v2 = vmax.f32 %v6334_v49, 0.0  ;;  %7944 = vmatpush3.msra.mxu1 %v6349_v8 }
0x1b18   :  { %7945 = vmatprep.subr.mxu1 %v8082_v14 }
0x1b19   :  { %7946 = vmatpush3.msra.mxu1 %v6348_v2 }
0x1b1a   :  { %7947 = vmatprep.subr.mxu1 %v8082_v14 }
0x1b1b   :  { %7948 = vmatpush3.msra.mxu1 %v6347_v22 }
0x1b1c   :  { %7949 = vmatprep.subr.mxu1 %v8082_v14 }
0x1b1d   :  { %7950 = vmatpush3.msra.mxu1 %v6346_v7 }
0x1b1e   :  { %7951 = vmatprep.subr.mxu1 %v8082_v14 }
0x1b1f   :  { %7952 = vmatpush3.msra.mxu1 %v6345_v38 }
0x1b20   :  { %7953 = vmatprep.subr.mxu1 %v8082_v14 }
0x1b21   :  { %7954 = vmatpush3.msra.mxu1 %v6344_v6 }
0x1b22   :  { %7955 = vmatprep.subr.mxu1 %v8082_v14 }
0x1b23   :  { %7956 = vmatpush3.msra.mxu1 %v6343_v63 }
0x1b24   :  { %7957 = vmatprep.subr.mxu1 %v8082_v14 }
0x1b25   :  { %7958 = vmatpush3.msra.mxu1 %v6342_v59 }
0x1b26   :  { %7960 = vmatmul.mubr.msk.f32.vlgmr.msra.gmra.mxu1 %vm773_vm11, %v6350_v37 }
0x1be6   :  { %v6426_v58 = vpop.f32.mrf.mxu1 }
0x1be7   :  { %v6427_v3 = vadd.f32 %v6426_v58, %v6355_v11 }
0x1be8   :  { %v7961_v40 = vpop.f32.mrf.mxu1 }
0x1be9   :  { %v6430_v13 = vmax.f32 %v6427_v3, 0.0 }
0x1beb   :  { %6432 = vst.msk [vmem:[%s9884_s3] sm:$0x3f] %vm6431_vm10, %v6430_v13 }

</bundles_post_ra>
